<compile_context>
chip_gen: v5e
topology: v5e:2x2
jax: 0.10.0
libtpu: 0.0.40
codegen_flags: <defaults>
</compile_context>

<pallas_src>
import jax
import jax.numpy as jnp
from jax import lax
from jax.experimental import pallas as pl
from jax.experimental.pallas import tpu as pltpu

LRELU_SLOPE = 0.2
BN_EPS = 1e-5
K = 4          # conv kernel size  (fixed by the module)
S = 2          # conv stride       (fixed by the module)


# ------------------------------ fused Pallas kernel ------------------------------

def _make_kernel(N, Cin, Ci, Co, H, W):
    OH, OW = H // S, W // S
    HW, NHW, M = H * W, N * H * W, N * OH * OW
    assert OW & (OW - 1) == 0 and OH & (OH - 1) == 0, "spatial dims must be 2*pow2"
    q_shift = OW.bit_length() - 1

    def kernel(x_ref, wd_ref, wu_ref, sdn_ref, sup_ref, gb_ref, out_ref):
        # ---- LeakyReLU(0.2): torch's inplace op also feeds the skip connection ----
        x = x_ref[...]                                          # (N*Cin, H*W)
        lx = jnp.where(x >= 0.0, x, LRELU_SLOPE * x)

        # channel-major view (Cin, N*H*W) for the conv tap gathers
        ch_rows = []
        for ci in range(Cin):
            parts = [lx[n * Cin + ci:n * Cin + ci + 1, :] for n in range(N)]
            ch_rows.append(parts[0] if N == 1 else jnp.concatenate(parts, axis=1))
        lxcm = ch_rows[0] if Cin == 1 else jnp.concatenate(ch_rows, axis=0)

        # coarse-grid (n, p, q) lane indices + boundary-mask helper
        li = lax.broadcasted_iota(jnp.int32, (1, M), 1)
        q_idx = li & (OW - 1)
        p_idx = (li >> q_shift) & (OH - 1)

        def bound_mask(lo_p, hi_p, lo_q, hi_q):
            m = None
            def _and(acc, new):
                return new if acc is None else (acc & new)
            if lo_p > 0:
                m = _and(m, p_idx >= lo_p)
            if hi_p < OH - 1:
                m = _and(m, p_idx <= hi_p)
            if lo_q > 0:
                m = _and(m, q_idx >= lo_q)
            if hi_q < OW - 1:
                m = _and(m, q_idx <= hi_q)
            return m

        sdn = sdn_ref[...]                                      # (NHW, M) 0/1 gather
        sup = sup_ref[...]                                      # (M, NHW) 0/1 scatter

        # ---- Conv2d(k=4, s=2, p=1, bias=False): 16 tap gathers + one MXU matmul ----
        xcol_blocks = []
        for kh in range(K):
            for kw in range(K):
                a, b = kh - 1, kw - 1                            # padding = 1
                delta = a * W + b
                src = lxcm if delta == 0 else jnp.roll(lxcm, -delta, axis=1)
                g = jnp.dot(src, sdn, preferred_element_type=jnp.float32)   # (Cin, M)
                mask = bound_mask(max(0, (-a + 1) // 2), min(OH - 1, (H - 1 - a) // 2),
                                  max(0, (-b + 1) // 2), min(OW - 1, (W - 1 - b) // 2))
                if mask is not None:
                    g = jnp.where(mask, g, 0.0)
                xcol_blocks.append(g)
        xcol = jnp.concatenate(xcol_blocks, axis=0)              # (K*K*Cin, M)

        d = jnp.dot(wd_ref[...], xcol, preferred_element_type=jnp.float32)  # (Ci, M)
        d = jnp.maximum(d, 0.0)                                  # ReLU before up conv

        # ---- ConvTranspose2d(k=4, s=2, p=1): 4-phase sub-pixel conv on a 3x3 window --
        dcol_blocks = []
        for dri in range(3):
            dr = dri - 1
            for dci in range(3):
                dc = dci - 1
                delta = dr * OW + dc
                t = d if delta == 0 else jnp.roll(d, -delta, axis=1)
                mask = bound_mask(max(0, -dr), min(OH - 1, OH - 1 - dr),
                                  max(0, -dc), min(OW - 1, OW - 1 - dc))
                if mask is not None:
                    t = jnp.where(mask, t, 0.0)
                dcol_blocks.append(t)
        dcol = jnp.concatenate(dcol_blocks, axis=0)              # (9*Ci, M)

        u_all = jnp.dot(wu_ref[...], dcol, preferred_element_type=jnp.float32)  # (4*Co, M)

        # scatter the 4 parity phases into dense (Co, N*H*W) lane order
        bup = None
        for r in range(2):
            for s in range(2):
                ph = 2 * r + s
                u_ph = jnp.dot(u_all[ph * Co:(ph + 1) * Co, :], sup,
                               preferred_element_type=jnp.float32)           # (Co, NHW)
                shift = r * (2 * OW) + s
                if shift:
                    u_ph = jnp.roll(u_ph, shift, axis=1)
                bup = u_ph if bup is None else bup + u_ph

        # ---- BatchNorm2d (training mode: biased batch stats over N,H,W; eps=1e-5) ----
        # TODO(synk): running_mean/running_var buffer updates (training side effect)
        # are not emitted; only the forward output is produced.
        mean = jnp.mean(bup, axis=1, keepdims=True)
        diff = bup - mean
        var = jnp.mean(diff * diff, axis=1, keepdims=True)
        inv = lax.rsqrt(var + BN_EPS)
        gamma = gb_ref[:, 0:1]
        beta = gb_ref[:, 1:2]
        bn = diff * (inv * gamma) + beta                         # (Co, NHW)

        # ---- concat([leaky_relu(ipt), BN(...)], dim=1), written as one dense store ----
        pieces = []
        for n in range(N):
            pieces.append(lx[n * Cin:(n + 1) * Cin, :])
            pieces.append(bn[:, n * HW:(n + 1) * HW])
        out_ref[...] = jnp.concatenate(pieces, axis=0)           # (N*(Cin+Co), H*W)

    return kernel


# ------------------------------------ wrapper ------------------------------------

@jax.jit
def unet_inner_block(x, w_down, w_up, gamma, beta):
    """x: (N,Cin,H,W); w_down: (Ci,Cin,4,4) [Conv2d]; w_up: (Ci,Co,4,4)
    [ConvTranspose2d]; gamma/beta: (Co,) BatchNorm2d affine parameters."""
    N, Cin, H, W = x.shape
    Ci = w_down.shape[0]
    Co = w_up.shape[1]
    OH, OW = H // S, W // S
    HW, NHW, M = H * W, N * H * W, N * OH * OW

    # ---- tiny, data-independent prep (weight reshapes; constants folded by XLA) ----
    # down weight: columns ordered (kh, kw, ci) to match the in-kernel tap stacking
    wd_mat = jnp.transpose(w_down, (0, 2, 3, 1)).reshape(Ci, K * K * Cin)

    # per-phase sub-pixel weights laid over the 3x3 shifted window of the down map
    kh_of = {0: {0: 3, 1: 1}, 1: {1: 2, 2: 0}}   # output parity -> {window offset: k}
    zero_tap = jnp.zeros((Co, Ci), w_up.dtype)
    phase_rows = []
    for r in (0, 1):
        for s_ in (0, 1):
            blocks = []
            for dri in range(3):
                for dci in range(3):
                    if dri in kh_of[r] and dci in kh_of[s_]:
                        kh, kw = kh_of[r][dri], kh_of[s_][dci]
                        blocks.append(jnp.transpose(w_up[:, :, kh, kw]))  # (Co, Ci)
                    else:
                        blocks.append(zero_tap)
            phase_rows.append(jnp.concatenate(blocks, axis=1))            # (Co, 9*Ci)
    wu_all = jnp.concatenate(phase_rows, axis=0)                          # (4*Co, 9*Ci)

    # 0/1 selection matrices between the coarse (n,p,q) lane space (M) and the fine
    # (n,h,w) lane space (NHW); data-independent -> constant-folded at compile time.
    lc = jnp.arange(M, dtype=jnp.int32)
    fine_of_coarse = 4 * lc - 2 * (lc % OW)       # (n,p,q) -> lane of (n, 2p, 2q)
    lf = jnp.arange(NHW, dtype=jnp.int32)
    s_up = (fine_of_coarse[:, None] == lf[None, :]).astype(jnp.float32)   # (M, NHW)
    s_dn = s_up.T                                                         # (NHW, M)

    gb = jnp.stack([gamma, beta], axis=1).astype(jnp.float32)             # (Co, 2)

    out2d = pl.pallas_call(
        _make_kernel(N, Cin, Ci, Co, H, W),
        out_shape=jax.ShapeDtypeStruct((N * (Cin + Co), HW), jnp.float32),
        in_specs=[pl.BlockSpec(memory_space=pltpu.MemorySpace.VMEM)] * 6,
        out_specs=pl.BlockSpec(memory_space=pltpu.MemorySpace.VMEM),
    )(x.reshape(N * Cin, HW), wd_mat, wu_all, s_dn, s_up, gb)

    return out2d.reshape(N, Cin + Co, H, W)


# ------------------------------ pure-JAX reference -------------------------------

def reference(x, w_down, w_up, gamma, beta):
    lre = jnp.where(x >= 0, x, LRELU_SLOPE * x)
    dn = jax.lax.conv_general_dilated(
        lre, w_down, (2, 2), ((1, 1), (1, 1)),
        dimension_numbers=('NCHW', 'OIHW', 'NCHW'),
        precision=jax.lax.Precision.HIGHEST)
    up_w = jnp.transpose(w_up, (1, 0, 2, 3))[:, :, ::-1, ::-1]
    up = jax.lax.conv_general_dilated(
        jnp.maximum(dn, 0.0), up_w, (1, 1), ((2, 2), (2, 2)),
        lhs_dilation=(2, 2),
        dimension_numbers=('NCHW', 'OIHW', 'NCHW'),
        precision=jax.lax.Precision.HIGHEST)
    m = up.mean(axis=(0, 2, 3), keepdims=True)
    v = ((up - m) ** 2).mean(axis=(0, 2, 3), keepdims=True)
    bn = (up - m) / jnp.sqrt(v + BN_EPS) * gamma.reshape(1, -1, 1, 1) \
        + beta.reshape(1, -1, 1, 1)
    return jnp.concatenate([lre, bn], axis=1)


if __name__ == "__main__":
    key = jax.random.PRNGKey(0)
    N, Cin, H, W = 2, 4, 16, 16
    inner_c, outer_c = 8, 4      # input_channel=None -> input_channel=outer_channel=4

    k1, k2, k3, k4, k5 = jax.random.split(key, 5)
    x = jax.random.normal(k1, (N, Cin, H, W), jnp.float32)
    # Conv2d(Cin, inner_c, 4, 2, 1, bias=False): weight (inner_c, Cin, 4, 4)
    w_down = 0.1 * jax.random.normal(k2, (inner_c, Cin, 4, 4), jnp.float32)
    # ConvTranspose2d(inner_c, outer_c, 4, 2, 1, bias=False): weight (inner_c, outer_c, 4, 4)
    w_up = 0.1 * jax.random.normal(k3, (inner_c, outer_c, 4, 4), jnp.float32)
    # BatchNorm2d(outer_c) affine params (non-trivial values to exercise the path)
    gamma = 1.0 + 0.1 * jax.random.normal(k4, (outer_c,), jnp.float32)
    beta = 0.1 * jax.random.normal(k5, (outer_c,), jnp.float32)

    out = jax.block_until_ready(unet_inner_block(x, w_down, w_up, gamma, beta))
    ref = jax.block_until_ready(reference(x, w_down, w_up, gamma, beta))

    assert out.shape == (N, Cin + outer_c, H, W), out.shape
    err = float(jnp.max(jnp.abs(out - ref)))
    assert jnp.allclose(out, ref, atol=1e-3, rtol=1e-3), err
    print("KERNEL_OK")
</pallas_src>

<mosaic_0001>
module attributes {stable_mosaic.version = 11 : i64} {
  func.func @kernel(%arg0: memref<8x256xf32, #tpu.memory_space<vmem>>, %arg1: memref<8x64xf32, #tpu.memory_space<vmem>>, %arg2: memref<16x72xf32, #tpu.memory_space<vmem>>, %arg3: memref<512x128xf32, #tpu.memory_space<vmem>>, %arg4: memref<128x512xf32, #tpu.memory_space<vmem>>, %arg5: memref<4x2xf32, #tpu.memory_space<vmem>>, %arg6: memref<16x256xf32, #tpu.memory_space<vmem>>) attributes {dimension_semantics = [], scalar_prefetch = 0 : i64, scratch_operands = 0 : i64, tpu.core_type = #tpu.core_type<tc>} {
    %c0 = arith.constant 0 : index
    %c0_0 = arith.constant 0 : index
    %0 = vector.load %arg0[%c0, %c0_0] : memref<8x256xf32, #tpu.memory_space<vmem>>, vector<8x256xf32>
    %cst = arith.constant 0.000000e+00 : f32
    %1 = vector.broadcast %cst : f32 to vector<8x256xf32>
    %2 = arith.cmpf oge, %0, %1 : vector<8x256xf32>
    %cst_1 = arith.constant 2.000000e-01 : f32
    %3 = vector.broadcast %cst_1 : f32 to vector<8x256xf32>
    %4 = arith.mulf %3, %0 : vector<8x256xf32>
    %5 = arith.select %2, %0, %4 : vector<8x256xi1>, vector<8x256xf32>
    %6 = vector.extract_strided_slice %5 {offsets = [0, 0], sizes = [1, 256], strides = [1, 1]} : vector<8x256xf32> to vector<1x256xf32>
    %7 = vector.extract_strided_slice %5 {offsets = [4, 0], sizes = [1, 256], strides = [1, 1]} : vector<8x256xf32> to vector<1x256xf32>
    %8 = tpu.concatenate %6, %7 in 1 : vector<1x256xf32>, vector<1x256xf32> -> vector<1x512xf32>
    %9 = vector.extract_strided_slice %5 {offsets = [1, 0], sizes = [1, 256], strides = [1, 1]} : vector<8x256xf32> to vector<1x256xf32>
    %10 = vector.extract_strided_slice %5 {offsets = [5, 0], sizes = [1, 256], strides = [1, 1]} : vector<8x256xf32> to vector<1x256xf32>
    %11 = tpu.concatenate %9, %10 in 1 : vector<1x256xf32>, vector<1x256xf32> -> vector<1x512xf32>
    %12 = vector.extract_strided_slice %5 {offsets = [2, 0], sizes = [1, 256], strides = [1, 1]} : vector<8x256xf32> to vector<1x256xf32>
    %13 = vector.extract_strided_slice %5 {offsets = [6, 0], sizes = [1, 256], strides = [1, 1]} : vector<8x256xf32> to vector<1x256xf32>
    %14 = tpu.concatenate %12, %13 in 1 : vector<1x256xf32>, vector<1x256xf32> -> vector<1x512xf32>
    %15 = vector.extract_strided_slice %5 {offsets = [3, 0], sizes = [1, 256], strides = [1, 1]} : vector<8x256xf32> to vector<1x256xf32>
    %16 = vector.extract_strided_slice %5 {offsets = [7, 0], sizes = [1, 256], strides = [1, 1]} : vector<8x256xf32> to vector<1x256xf32>
    %17 = tpu.concatenate %15, %16 in 1 : vector<1x256xf32>, vector<1x256xf32> -> vector<1x512xf32>
    %18 = tpu.concatenate %8, %11, %14, %17 in 0 : vector<1x512xf32>, vector<1x512xf32>, vector<1x512xf32>, vector<1x512xf32> -> vector<4x512xf32>
    %19 = tpu.iota {dimensions = array<i32: 1>} : vector<1x128xi32>
    %c7_i32 = arith.constant 7 : i32
    %20 = vector.broadcast %c7_i32 : i32 to vector<1x128xi32>
    %21 = arith.andi %19, %20 : vector<1x128xi32>
    %c3_i32 = arith.constant 3 : i32
    %22 = vector.broadcast %c3_i32 : i32 to vector<1x128xi32>
    %23 = arith.shrsi %19, %22 : vector<1x128xi32>
    %c7_i32_2 = arith.constant 7 : i32
    %24 = vector.broadcast %c7_i32_2 : i32 to vector<1x128xi32>
    %25 = arith.andi %23, %24 : vector<1x128xi32>
    %c0_3 = arith.constant 0 : index
    %c0_4 = arith.constant 0 : index
    %26 = vector.load %arg3[%c0_3, %c0_4] : memref<512x128xf32, #tpu.memory_space<vmem>>, vector<512x128xf32>
    %c0_5 = arith.constant 0 : index
    %c0_6 = arith.constant 0 : index
    %27 = vector.load %arg4[%c0_5, %c0_6] : memref<128x512xf32, #tpu.memory_space<vmem>>, vector<128x512xf32>
    %28 = vector.extract_strided_slice %18 {offsets = [0, 495], sizes = [4, 17], strides = [1, 1]} : vector<4x512xf32> to vector<4x17xf32>
    %29 = vector.extract_strided_slice %18 {offsets = [0, 0], sizes = [4, 495], strides = [1, 1]} : vector<4x512xf32> to vector<4x495xf32>
    %30 = tpu.concatenate %28, %29 in 1 : vector<4x17xf32>, vector<4x495xf32> -> vector<4x512xf32>
    %cst_7 = arith.constant dense<0.000000e+00> : vector<4x128xf32>
    %31 = tpu.matmul %30, %26, %cst_7 {dimension_numbers = #tpu.dot_dimension_numbers<[1], [0], [0], [1], [0, 0, 1, 1], [], []>} : vector<4x512xf32>, vector<512x128xf32>, vector<4x128xf32> -> vector<4x128xf32>
    %c1_i32 = arith.constant 1 : i32
    %32 = vector.broadcast %c1_i32 : i32 to vector<1x128xi32>
    %33 = arith.cmpi sge, %25, %32 : vector<1x128xi32>
    %c1_i32_8 = arith.constant 1 : i32
    %34 = vector.broadcast %c1_i32_8 : i32 to vector<1x128xi32>
    %35 = arith.cmpi sge, %21, %34 : vector<1x128xi32>
    %36 = arith.andi %33, %35 : vector<1x128xi1>
    %cst_9 = arith.constant 0.000000e+00 : f32
    %37 = vector.shape_cast %36 : vector<1x128xi1> to vector<1x128xi1>
    %38 = vector.broadcast %37 : vector<1x128xi1> to vector<4x128xi1>
    %39 = vector.broadcast %cst_9 : f32 to vector<4x128xf32>
    %40 = arith.select %38, %31, %39 : vector<4x128xi1>, vector<4x128xf32>
    %41 = vector.extract_strided_slice %18 {offsets = [0, 496], sizes = [4, 16], strides = [1, 1]} : vector<4x512xf32> to vector<4x16xf32>
    %42 = vector.extract_strided_slice %18 {offsets = [0, 0], sizes = [4, 496], strides = [1, 1]} : vector<4x512xf32> to vector<4x496xf32>
    %43 = tpu.concatenate %41, %42 in 1 : vector<4x16xf32>, vector<4x496xf32> -> vector<4x512xf32>
    %cst_10 = arith.constant dense<0.000000e+00> : vector<4x128xf32>
    %44 = tpu.matmul %43, %26, %cst_10 {dimension_numbers = #tpu.dot_dimension_numbers<[1], [0], [0], [1], [0, 0, 1, 1], [], []>} : vector<4x512xf32>, vector<512x128xf32>, vector<4x128xf32> -> vector<4x128xf32>
    %c1_i32_11 = arith.constant 1 : i32
    %45 = vector.broadcast %c1_i32_11 : i32 to vector<1x128xi32>
    %46 = arith.cmpi sge, %25, %45 : vector<1x128xi32>
    %cst_12 = arith.constant 0.000000e+00 : f32
    %47 = vector.shape_cast %46 : vector<1x128xi1> to vector<1x128xi1>
    %48 = vector.broadcast %47 : vector<1x128xi1> to vector<4x128xi1>
    %49 = vector.broadcast %cst_12 : f32 to vector<4x128xf32>
    %50 = arith.select %48, %44, %49 : vector<4x128xi1>, vector<4x128xf32>
    %51 = vector.extract_strided_slice %18 {offsets = [0, 497], sizes = [4, 15], strides = [1, 1]} : vector<4x512xf32> to vector<4x15xf32>
    %52 = vector.extract_strided_slice %18 {offsets = [0, 0], sizes = [4, 497], strides = [1, 1]} : vector<4x512xf32> to vector<4x497xf32>
    %53 = tpu.concatenate %51, %52 in 1 : vector<4x15xf32>, vector<4x497xf32> -> vector<4x512xf32>
    %cst_13 = arith.constant dense<0.000000e+00> : vector<4x128xf32>
    %54 = tpu.matmul %53, %26, %cst_13 {dimension_numbers = #tpu.dot_dimension_numbers<[1], [0], [0], [1], [0, 0, 1, 1], [], []>} : vector<4x512xf32>, vector<512x128xf32>, vector<4x128xf32> -> vector<4x128xf32>
    %c1_i32_14 = arith.constant 1 : i32
    %55 = vector.broadcast %c1_i32_14 : i32 to vector<1x128xi32>
    %56 = arith.cmpi sge, %25, %55 : vector<1x128xi32>
    %cst_15 = arith.constant 0.000000e+00 : f32
    %57 = vector.shape_cast %56 : vector<1x128xi1> to vector<1x128xi1>
    %58 = vector.broadcast %57 : vector<1x128xi1> to vector<4x128xi1>
    %59 = vector.broadcast %cst_15 : f32 to vector<4x128xf32>
    %60 = arith.select %58, %54, %59 : vector<4x128xi1>, vector<4x128xf32>
    %61 = vector.extract_strided_slice %18 {offsets = [0, 498], sizes = [4, 14], strides = [1, 1]} : vector<4x512xf32> to vector<4x14xf32>
    %62 = vector.extract_strided_slice %18 {offsets = [0, 0], sizes = [4, 498], strides = [1, 1]} : vector<4x512xf32> to vector<4x498xf32>
    %63 = tpu.concatenate %61, %62 in 1 : vector<4x14xf32>, vector<4x498xf32> -> vector<4x512xf32>
    %cst_16 = arith.constant dense<0.000000e+00> : vector<4x128xf32>
    %64 = tpu.matmul %63, %26, %cst_16 {dimension_numbers = #tpu.dot_dimension_numbers<[1], [0], [0], [1], [0, 0, 1, 1], [], []>} : vector<4x512xf32>, vector<512x128xf32>, vector<4x128xf32> -> vector<4x128xf32>
    %c1_i32_17 = arith.constant 1 : i32
    %65 = vector.broadcast %c1_i32_17 : i32 to vector<1x128xi32>
    %66 = arith.cmpi sge, %25, %65 : vector<1x128xi32>
    %c6_i32 = arith.constant 6 : i32
    %67 = vector.broadcast %c6_i32 : i32 to vector<1x128xi32>
    %68 = arith.cmpi sle, %21, %67 : vector<1x128xi32>
    %69 = arith.andi %66, %68 : vector<1x128xi1>
    %cst_18 = arith.constant 0.000000e+00 : f32
    %70 = vector.shape_cast %69 : vector<1x128xi1> to vector<1x128xi1>
    %71 = vector.broadcast %70 : vector<1x128xi1> to vector<4x128xi1>
    %72 = vector.broadcast %cst_18 : f32 to vector<4x128xf32>
    %73 = arith.select %71, %64, %72 : vector<4x128xi1>, vector<4x128xf32>
    %74 = vector.extract_strided_slice %18 {offsets = [0, 511], sizes = [4, 1], strides = [1, 1]} : vector<4x512xf32> to vector<4x1xf32>
    %75 = vector.extract_strided_slice %18 {offsets = [0, 0], sizes = [4, 511], strides = [1, 1]} : vector<4x512xf32> to vector<4x511xf32>
    %76 = tpu.concatenate %74, %75 in 1 : vector<4x1xf32>, vector<4x511xf32> -> vector<4x512xf32>
    %cst_19 = arith.constant dense<0.000000e+00> : vector<4x128xf32>
    %77 = tpu.matmul %76, %26, %cst_19 {dimension_numbers = #tpu.dot_dimension_numbers<[1], [0], [0], [1], [0, 0, 1, 1], [], []>} : vector<4x512xf32>, vector<512x128xf32>, vector<4x128xf32> -> vector<4x128xf32>
    %c1_i32_20 = arith.constant 1 : i32
    %78 = vector.broadcast %c1_i32_20 : i32 to vector<1x128xi32>
    %79 = arith.cmpi sge, %21, %78 : vector<1x128xi32>
    %cst_21 = arith.constant 0.000000e+00 : f32
    %80 = vector.shape_cast %79 : vector<1x128xi1> to vector<1x128xi1>
    %81 = vector.broadcast %80 : vector<1x128xi1> to vector<4x128xi1>
    %82 = vector.broadcast %cst_21 : f32 to vector<4x128xf32>
    %83 = arith.select %81, %77, %82 : vector<4x128xi1>, vector<4x128xf32>
    %cst_22 = arith.constant dense<0.000000e+00> : vector<4x128xf32>
    %84 = tpu.matmul %18, %26, %cst_22 {dimension_numbers = #tpu.dot_dimension_numbers<[1], [0], [0], [1], [0, 0, 1, 1], [], []>} : vector<4x512xf32>, vector<512x128xf32>, vector<4x128xf32> -> vector<4x128xf32>
    %85 = vector.extract_strided_slice %18 {offsets = [0, 1], sizes = [4, 511], strides = [1, 1]} : vector<4x512xf32> to vector<4x511xf32>
    %86 = vector.extract_strided_slice %18 {offsets = [0, 0], sizes = [4, 1], strides = [1, 1]} : vector<4x512xf32> to vector<4x1xf32>
    %87 = tpu.concatenate %85, %86 in 1 : vector<4x511xf32>, vector<4x1xf32> -> vector<4x512xf32>
    %cst_23 = arith.constant dense<0.000000e+00> : vector<4x128xf32>
    %88 = tpu.matmul %87, %26, %cst_23 {dimension_numbers = #tpu.dot_dimension_numbers<[1], [0], [0], [1], [0, 0, 1, 1], [], []>} : vector<4x512xf32>, vector<512x128xf32>, vector<4x128xf32> -> vector<4x128xf32>
    %89 = vector.extract_strided_slice %18 {offsets = [0, 2], sizes = [4, 510], strides = [1, 1]} : vector<4x512xf32> to vector<4x510xf32>
    %90 = vector.extract_strided_slice %18 {offsets = [0, 0], sizes = [4, 2], strides = [1, 1]} : vector<4x512xf32> to vector<4x2xf32>
    %91 = tpu.concatenate %89, %90 in 1 : vector<4x510xf32>, vector<4x2xf32> -> vector<4x512xf32>
    %cst_24 = arith.constant dense<0.000000e+00> : vector<4x128xf32>
    %92 = tpu.matmul %91, %26, %cst_24 {dimension_numbers = #tpu.dot_dimension_numbers<[1], [0], [0], [1], [0, 0, 1, 1], [], []>} : vector<4x512xf32>, vector<512x128xf32>, vector<4x128xf32> -> vector<4x128xf32>
    %c6_i32_25 = arith.constant 6 : i32
    %93 = vector.broadcast %c6_i32_25 : i32 to vector<1x128xi32>
    %94 = arith.cmpi sle, %21, %93 : vector<1x128xi32>
    %cst_26 = arith.constant 0.000000e+00 : f32
    %95 = vector.shape_cast %94 : vector<1x128xi1> to vector<1x128xi1>
    %96 = vector.broadcast %95 : vector<1x128xi1> to vector<4x128xi1>
    %97 = vector.broadcast %cst_26 : f32 to vector<4x128xf32>
    %98 = arith.select %96, %92, %97 : vector<4x128xi1>, vector<4x128xf32>
    %99 = vector.extract_strided_slice %18 {offsets = [0, 15], sizes = [4, 497], strides = [1, 1]} : vector<4x512xf32> to vector<4x497xf32>
    %100 = vector.extract_strided_slice %18 {offsets = [0, 0], sizes = [4, 15], strides = [1, 1]} : vector<4x512xf32> to vector<4x15xf32>
    %101 = tpu.concatenate %99, %100 in 1 : vector<4x497xf32>, vector<4x15xf32> -> vector<4x512xf32>
    %cst_27 = arith.constant dense<0.000000e+00> : vector<4x128xf32>
    %102 = tpu.matmul %101, %26, %cst_27 {dimension_numbers = #tpu.dot_dimension_numbers<[1], [0], [0], [1], [0, 0, 1, 1], [], []>} : vector<4x512xf32>, vector<512x128xf32>, vector<4x128xf32> -> vector<4x128xf32>
    %c1_i32_28 = arith.constant 1 : i32
    %103 = vector.broadcast %c1_i32_28 : i32 to vector<1x128xi32>
    %104 = arith.cmpi sge, %21, %103 : vector<1x128xi32>
    %cst_29 = arith.constant 0.000000e+00 : f32
    %105 = vector.shape_cast %104 : vector<1x128xi1> to vector<1x128xi1>
    %106 = vector.broadcast %105 : vector<1x128xi1> to vector<4x128xi1>
    %107 = vector.broadcast %cst_29 : f32 to vector<4x128xf32>
    %108 = arith.select %106, %102, %107 : vector<4x128xi1>, vector<4x128xf32>
    %109 = vector.extract_strided_slice %18 {offsets = [0, 16], sizes = [4, 496], strides = [1, 1]} : vector<4x512xf32> to vector<4x496xf32>
    %110 = vector.extract_strided_slice %18 {offsets = [0, 0], sizes = [4, 16], strides = [1, 1]} : vector<4x512xf32> to vector<4x16xf32>
    %111 = tpu.concatenate %109, %110 in 1 : vector<4x496xf32>, vector<4x16xf32> -> vector<4x512xf32>
    %cst_30 = arith.constant dense<0.000000e+00> : vector<4x128xf32>
    %112 = tpu.matmul %111, %26, %cst_30 {dimension_numbers = #tpu.dot_dimension_numbers<[1], [0], [0], [1], [0, 0, 1, 1], [], []>} : vector<4x512xf32>, vector<512x128xf32>, vector<4x128xf32> -> vector<4x128xf32>
    %113 = vector.extract_strided_slice %18 {offsets = [0, 17], sizes = [4, 495], strides = [1, 1]} : vector<4x512xf32> to vector<4x495xf32>
    %114 = vector.extract_strided_slice %18 {offsets = [0, 0], sizes = [4, 17], strides = [1, 1]} : vector<4x512xf32> to vector<4x17xf32>
    %115 = tpu.concatenate %113, %114 in 1 : vector<4x495xf32>, vector<4x17xf32> -> vector<4x512xf32>
    %cst_31 = arith.constant dense<0.000000e+00> : vector<4x128xf32>
    %116 = tpu.matmul %115, %26, %cst_31 {dimension_numbers = #tpu.dot_dimension_numbers<[1], [0], [0], [1], [0, 0, 1, 1], [], []>} : vector<4x512xf32>, vector<512x128xf32>, vector<4x128xf32> -> vector<4x128xf32>
    %117 = vector.extract_strided_slice %18 {offsets = [0, 18], sizes = [4, 494], strides = [1, 1]} : vector<4x512xf32> to vector<4x494xf32>
    %118 = vector.extract_strided_slice %18 {offsets = [0, 0], sizes = [4, 18], strides = [1, 1]} : vector<4x512xf32> to vector<4x18xf32>
    %119 = tpu.concatenate %117, %118 in 1 : vector<4x494xf32>, vector<4x18xf32> -> vector<4x512xf32>
    %cst_32 = arith.constant dense<0.000000e+00> : vector<4x128xf32>
    %120 = tpu.matmul %119, %26, %cst_32 {dimension_numbers = #tpu.dot_dimension_numbers<[1], [0], [0], [1], [0, 0, 1, 1], [], []>} : vector<4x512xf32>, vector<512x128xf32>, vector<4x128xf32> -> vector<4x128xf32>
    %c6_i32_33 = arith.constant 6 : i32
    %121 = vector.broadcast %c6_i32_33 : i32 to vector<1x128xi32>
    %122 = arith.cmpi sle, %21, %121 : vector<1x128xi32>
    %cst_34 = arith.constant 0.000000e+00 : f32
    %123 = vector.shape_cast %122 : vector<1x128xi1> to vector<1x128xi1>
    %124 = vector.broadcast %123 : vector<1x128xi1> to vector<4x128xi1>
    %125 = vector.broadcast %cst_34 : f32 to vector<4x128xf32>
    %126 = arith.select %124, %120, %125 : vector<4x128xi1>, vector<4x128xf32>
    %127 = vector.extract_strided_slice %18 {offsets = [0, 31], sizes = [4, 481], strides = [1, 1]} : vector<4x512xf32> to vector<4x481xf32>
    %128 = vector.extract_strided_slice %18 {offsets = [0, 0], sizes = [4, 31], strides = [1, 1]} : vector<4x512xf32> to vector<4x31xf32>
    %129 = tpu.concatenate %127, %128 in 1 : vector<4x481xf32>, vector<4x31xf32> -> vector<4x512xf32>
    %cst_35 = arith.constant dense<0.000000e+00> : vector<4x128xf32>
    %130 = tpu.matmul %129, %26, %cst_35 {dimension_numbers = #tpu.dot_dimension_numbers<[1], [0], [0], [1], [0, 0, 1, 1], [], []>} : vector<4x512xf32>, vector<512x128xf32>, vector<4x128xf32> -> vector<4x128xf32>
    %c6_i32_36 = arith.constant 6 : i32
    %131 = vector.broadcast %c6_i32_36 : i32 to vector<1x128xi32>
    %132 = arith.cmpi sle, %25, %131 : vector<1x128xi32>
    %c1_i32_37 = arith.constant 1 : i32
    %133 = vector.broadcast %c1_i32_37 : i32 to vector<1x128xi32>
    %134 = arith.cmpi sge, %21, %133 : vector<1x128xi32>
    %135 = arith.andi %132, %134 : vector<1x128xi1>
    %cst_38 = arith.constant 0.000000e+00 : f32
    %136 = vector.shape_cast %135 : vector<1x128xi1> to vector<1x128xi1>
    %137 = vector.broadcast %136 : vector<1x128xi1> to vector<4x128xi1>
    %138 = vector.broadcast %cst_38 : f32 to vector<4x128xf32>
    %139 = arith.select %137, %130, %138 : vector<4x128xi1>, vector<4x128xf32>
    %140 = vector.extract_strided_slice %18 {offsets = [0, 32], sizes = [4, 480], strides = [1, 1]} : vector<4x512xf32> to vector<4x480xf32>
    %141 = vector.extract_strided_slice %18 {offsets = [0, 0], sizes = [4, 32], strides = [1, 1]} : vector<4x512xf32> to vector<4x32xf32>
    %142 = tpu.concatenate %140, %141 in 1 : vector<4x480xf32>, vector<4x32xf32> -> vector<4x512xf32>
    %cst_39 = arith.constant dense<0.000000e+00> : vector<4x128xf32>
    %143 = tpu.matmul %142, %26, %cst_39 {dimension_numbers = #tpu.dot_dimension_numbers<[1], [0], [0], [1], [0, 0, 1, 1], [], []>} : vector<4x512xf32>, vector<512x128xf32>, vector<4x128xf32> -> vector<4x128xf32>
    %c6_i32_40 = arith.constant 6 : i32
    %144 = vector.broadcast %c6_i32_40 : i32 to vector<1x128xi32>
    %145 = arith.cmpi sle, %25, %144 : vector<1x128xi32>
    %cst_41 = arith.constant 0.000000e+00 : f32
    %146 = vector.shape_cast %145 : vector<1x128xi1> to vector<1x128xi1>
    %147 = vector.broadcast %146 : vector<1x128xi1> to vector<4x128xi1>
    %148 = vector.broadcast %cst_41 : f32 to vector<4x128xf32>
    %149 = arith.select %147, %143, %148 : vector<4x128xi1>, vector<4x128xf32>
    %150 = vector.extract_strided_slice %18 {offsets = [0, 33], sizes = [4, 479], strides = [1, 1]} : vector<4x512xf32> to vector<4x479xf32>
    %151 = vector.extract_strided_slice %18 {offsets = [0, 0], sizes = [4, 33], strides = [1, 1]} : vector<4x512xf32> to vector<4x33xf32>
    %152 = tpu.concatenate %150, %151 in 1 : vector<4x479xf32>, vector<4x33xf32> -> vector<4x512xf32>
    %cst_42 = arith.constant dense<0.000000e+00> : vector<4x128xf32>
    %153 = tpu.matmul %152, %26, %cst_42 {dimension_numbers = #tpu.dot_dimension_numbers<[1], [0], [0], [1], [0, 0, 1, 1], [], []>} : vector<4x512xf32>, vector<512x128xf32>, vector<4x128xf32> -> vector<4x128xf32>
    %c6_i32_43 = arith.constant 6 : i32
    %154 = vector.broadcast %c6_i32_43 : i32 to vector<1x128xi32>
    %155 = arith.cmpi sle, %25, %154 : vector<1x128xi32>
    %cst_44 = arith.constant 0.000000e+00 : f32
    %156 = vector.shape_cast %155 : vector<1x128xi1> to vector<1x128xi1>
    %157 = vector.broadcast %156 : vector<1x128xi1> to vector<4x128xi1>
    %158 = vector.broadcast %cst_44 : f32 to vector<4x128xf32>
    %159 = arith.select %157, %153, %158 : vector<4x128xi1>, vector<4x128xf32>
    %160 = vector.extract_strided_slice %18 {offsets = [0, 34], sizes = [4, 478], strides = [1, 1]} : vector<4x512xf32> to vector<4x478xf32>
    %161 = vector.extract_strided_slice %18 {offsets = [0, 0], sizes = [4, 34], strides = [1, 1]} : vector<4x512xf32> to vector<4x34xf32>
    %162 = tpu.concatenate %160, %161 in 1 : vector<4x478xf32>, vector<4x34xf32> -> vector<4x512xf32>
    %cst_45 = arith.constant dense<0.000000e+00> : vector<4x128xf32>
    %163 = tpu.matmul %162, %26, %cst_45 {dimension_numbers = #tpu.dot_dimension_numbers<[1], [0], [0], [1], [0, 0, 1, 1], [], []>} : vector<4x512xf32>, vector<512x128xf32>, vector<4x128xf32> -> vector<4x128xf32>
    %c6_i32_46 = arith.constant 6 : i32
    %164 = vector.broadcast %c6_i32_46 : i32 to vector<1x128xi32>
    %165 = arith.cmpi sle, %25, %164 : vector<1x128xi32>
    %c6_i32_47 = arith.constant 6 : i32
    %166 = vector.broadcast %c6_i32_47 : i32 to vector<1x128xi32>
    %167 = arith.cmpi sle, %21, %166 : vector<1x128xi32>
    %168 = arith.andi %165, %167 : vector<1x128xi1>
    %cst_48 = arith.constant 0.000000e+00 : f32
    %169 = vector.shape_cast %168 : vector<1x128xi1> to vector<1x128xi1>
    %170 = vector.broadcast %169 : vector<1x128xi1> to vector<4x128xi1>
    %171 = vector.broadcast %cst_48 : f32 to vector<4x128xf32>
    %172 = arith.select %170, %163, %171 : vector<4x128xi1>, vector<4x128xf32>
    %173 = tpu.concatenate %40, %50, %60, %73, %83, %84, %88, %98, %108, %112, %116, %126, %139, %149, %159, %172 in 0 : vector<4x128xf32>, vector<4x128xf32>, vector<4x128xf32>, vector<4x128xf32>, vector<4x128xf32>, vector<4x128xf32>, vector<4x128xf32>, vector<4x128xf32>, vector<4x128xf32>, vector<4x128xf32>, vector<4x128xf32>, vector<4x128xf32>, vector<4x128xf32>, vector<4x128xf32>, vector<4x128xf32>, vector<4x128xf32> -> vector<64x128xf32>
    %c0_49 = arith.constant 0 : index
    %c0_50 = arith.constant 0 : index
    %174 = vector.load %arg1[%c0_49, %c0_50] : memref<8x64xf32, #tpu.memory_space<vmem>>, vector<8x64xf32>
    %cst_51 = arith.constant dense<0.000000e+00> : vector<8x128xf32>
    %175 = tpu.matmul %174, %173, %cst_51 {dimension_numbers = #tpu.dot_dimension_numbers<[1], [0], [0], [1], [0, 0, 1, 1], [], []>} : vector<8x64xf32>, vector<64x128xf32>, vector<8x128xf32> -> vector<8x128xf32>
    %cst_52 = arith.constant 0.000000e+00 : f32
    %176 = vector.broadcast %cst_52 : f32 to vector<8x128xf32>
    %177 = arith.maximumf %175, %176 : vector<8x128xf32>
    %178 = vector.extract_strided_slice %177 {offsets = [0, 119], sizes = [8, 9], strides = [1, 1]} : vector<8x128xf32> to vector<8x9xf32>
    %179 = vector.extract_strided_slice %177 {offsets = [0, 0], sizes = [8, 119], strides = [1, 1]} : vector<8x128xf32> to vector<8x119xf32>
    %180 = tpu.concatenate %178, %179 in 1 : vector<8x9xf32>, vector<8x119xf32> -> vector<8x128xf32>
    %c1_i32_53 = arith.constant 1 : i32
    %181 = vector.broadcast %c1_i32_53 : i32 to vector<1x128xi32>
    %182 = arith.cmpi sge, %25, %181 : vector<1x128xi32>
    %c1_i32_54 = arith.constant 1 : i32
    %183 = vector.broadcast %c1_i32_54 : i32 to vector<1x128xi32>
    %184 = arith.cmpi sge, %21, %183 : vector<1x128xi32>
    %185 = arith.andi %182, %184 : vector<1x128xi1>
    %cst_55 = arith.constant 0.000000e+00 : f32
    %186 = vector.shape_cast %185 : vector<1x128xi1> to vector<1x128xi1>
    %187 = vector.broadcast %186 : vector<1x128xi1> to vector<8x128xi1>
    %188 = vector.broadcast %cst_55 : f32 to vector<8x128xf32>
    %189 = arith.select %187, %180, %188 : vector<8x128xi1>, vector<8x128xf32>
    %190 = vector.extract_strided_slice %177 {offsets = [0, 120], sizes = [8, 8], strides = [1, 1]} : vector<8x128xf32> to vector<8x8xf32>
    %191 = vector.extract_strided_slice %177 {offsets = [0, 0], sizes = [8, 120], strides = [1, 1]} : vector<8x128xf32> to vector<8x120xf32>
    %192 = tpu.concatenate %190, %191 in 1 : vector<8x8xf32>, vector<8x120xf32> -> vector<8x128xf32>
    %c1_i32_56 = arith.constant 1 : i32
    %193 = vector.broadcast %c1_i32_56 : i32 to vector<1x128xi32>
    %194 = arith.cmpi sge, %25, %193 : vector<1x128xi32>
    %cst_57 = arith.constant 0.000000e+00 : f32
    %195 = vector.shape_cast %194 : vector<1x128xi1> to vector<1x128xi1>
    %196 = vector.broadcast %195 : vector<1x128xi1> to vector<8x128xi1>
    %197 = vector.broadcast %cst_57 : f32 to vector<8x128xf32>
    %198 = arith.select %196, %192, %197 : vector<8x128xi1>, vector<8x128xf32>
    %199 = vector.extract_strided_slice %177 {offsets = [0, 121], sizes = [8, 7], strides = [1, 1]} : vector<8x128xf32> to vector<8x7xf32>
    %200 = vector.extract_strided_slice %177 {offsets = [0, 0], sizes = [8, 121], strides = [1, 1]} : vector<8x128xf32> to vector<8x121xf32>
    %201 = tpu.concatenate %199, %200 in 1 : vector<8x7xf32>, vector<8x121xf32> -> vector<8x128xf32>
    %c1_i32_58 = arith.constant 1 : i32
    %202 = vector.broadcast %c1_i32_58 : i32 to vector<1x128xi32>
    %203 = arith.cmpi sge, %25, %202 : vector<1x128xi32>
    %c6_i32_59 = arith.constant 6 : i32
    %204 = vector.broadcast %c6_i32_59 : i32 to vector<1x128xi32>
    %205 = arith.cmpi sle, %21, %204 : vector<1x128xi32>
    %206 = arith.andi %203, %205 : vector<1x128xi1>
    %cst_60 = arith.constant 0.000000e+00 : f32
    %207 = vector.shape_cast %206 : vector<1x128xi1> to vector<1x128xi1>
    %208 = vector.broadcast %207 : vector<1x128xi1> to vector<8x128xi1>
    %209 = vector.broadcast %cst_60 : f32 to vector<8x128xf32>
    %210 = arith.select %208, %201, %209 : vector<8x128xi1>, vector<8x128xf32>
    %211 = vector.extract_strided_slice %177 {offsets = [0, 127], sizes = [8, 1], strides = [1, 1]} : vector<8x128xf32> to vector<8x1xf32>
    %212 = vector.extract_strided_slice %177 {offsets = [0, 0], sizes = [8, 127], strides = [1, 1]} : vector<8x128xf32> to vector<8x127xf32>
    %213 = tpu.concatenate %211, %212 in 1 : vector<8x1xf32>, vector<8x127xf32> -> vector<8x128xf32>
    %c1_i32_61 = arith.constant 1 : i32
    %214 = vector.broadcast %c1_i32_61 : i32 to vector<1x128xi32>
    %215 = arith.cmpi sge, %21, %214 : vector<1x128xi32>
    %cst_62 = arith.constant 0.000000e+00 : f32
    %216 = vector.shape_cast %215 : vector<1x128xi1> to vector<1x128xi1>
    %217 = vector.broadcast %216 : vector<1x128xi1> to vector<8x128xi1>
    %218 = vector.broadcast %cst_62 : f32 to vector<8x128xf32>
    %219 = arith.select %217, %213, %218 : vector<8x128xi1>, vector<8x128xf32>
    %220 = vector.extract_strided_slice %177 {offsets = [0, 1], sizes = [8, 127], strides = [1, 1]} : vector<8x128xf32> to vector<8x127xf32>
    %221 = vector.extract_strided_slice %177 {offsets = [0, 0], sizes = [8, 1], strides = [1, 1]} : vector<8x128xf32> to vector<8x1xf32>
    %222 = tpu.concatenate %220, %221 in 1 : vector<8x127xf32>, vector<8x1xf32> -> vector<8x128xf32>
    %c6_i32_63 = arith.constant 6 : i32
    %223 = vector.broadcast %c6_i32_63 : i32 to vector<1x128xi32>
    %224 = arith.cmpi sle, %21, %223 : vector<1x128xi32>
    %cst_64 = arith.constant 0.000000e+00 : f32
    %225 = vector.shape_cast %224 : vector<1x128xi1> to vector<1x128xi1>
    %226 = vector.broadcast %225 : vector<1x128xi1> to vector<8x128xi1>
    %227 = vector.broadcast %cst_64 : f32 to vector<8x128xf32>
    %228 = arith.select %226, %222, %227 : vector<8x128xi1>, vector<8x128xf32>
    %229 = vector.extract_strided_slice %177 {offsets = [0, 7], sizes = [8, 121], strides = [1, 1]} : vector<8x128xf32> to vector<8x121xf32>
    %230 = vector.extract_strided_slice %177 {offsets = [0, 0], sizes = [8, 7], strides = [1, 1]} : vector<8x128xf32> to vector<8x7xf32>
    %231 = tpu.concatenate %229, %230 in 1 : vector<8x121xf32>, vector<8x7xf32> -> vector<8x128xf32>
    %c6_i32_65 = arith.constant 6 : i32
    %232 = vector.broadcast %c6_i32_65 : i32 to vector<1x128xi32>
    %233 = arith.cmpi sle, %25, %232 : vector<1x128xi32>
    %c1_i32_66 = arith.constant 1 : i32
    %234 = vector.broadcast %c1_i32_66 : i32 to vector<1x128xi32>
    %235 = arith.cmpi sge, %21, %234 : vector<1x128xi32>
    %236 = arith.andi %233, %235 : vector<1x128xi1>
    %cst_67 = arith.constant 0.000000e+00 : f32
    %237 = vector.shape_cast %236 : vector<1x128xi1> to vector<1x128xi1>
    %238 = vector.broadcast %237 : vector<1x128xi1> to vector<8x128xi1>
    %239 = vector.broadcast %cst_67 : f32 to vector<8x128xf32>
    %240 = arith.select %238, %231, %239 : vector<8x128xi1>, vector<8x128xf32>
    %241 = vector.extract_strided_slice %177 {offsets = [0, 8], sizes = [8, 120], strides = [1, 1]} : vector<8x128xf32> to vector<8x120xf32>
    %242 = vector.extract_strided_slice %177 {offsets = [0, 0], sizes = [8, 8], strides = [1, 1]} : vector<8x128xf32> to vector<8x8xf32>
    %243 = tpu.concatenate %241, %242 in 1 : vector<8x120xf32>, vector<8x8xf32> -> vector<8x128xf32>
    %c6_i32_68 = arith.constant 6 : i32
    %244 = vector.broadcast %c6_i32_68 : i32 to vector<1x128xi32>
    %245 = arith.cmpi sle, %25, %244 : vector<1x128xi32>
    %cst_69 = arith.constant 0.000000e+00 : f32
    %246 = vector.shape_cast %245 : vector<1x128xi1> to vector<1x128xi1>
    %247 = vector.broadcast %246 : vector<1x128xi1> to vector<8x128xi1>
    %248 = vector.broadcast %cst_69 : f32 to vector<8x128xf32>
    %249 = arith.select %247, %243, %248 : vector<8x128xi1>, vector<8x128xf32>
    %250 = vector.extract_strided_slice %177 {offsets = [0, 9], sizes = [8, 119], strides = [1, 1]} : vector<8x128xf32> to vector<8x119xf32>
    %251 = vector.extract_strided_slice %177 {offsets = [0, 0], sizes = [8, 9], strides = [1, 1]} : vector<8x128xf32> to vector<8x9xf32>
    %252 = tpu.concatenate %250, %251 in 1 : vector<8x119xf32>, vector<8x9xf32> -> vector<8x128xf32>
    %c6_i32_70 = arith.constant 6 : i32
    %253 = vector.broadcast %c6_i32_70 : i32 to vector<1x128xi32>
    %254 = arith.cmpi sle, %25, %253 : vector<1x128xi32>
    %c6_i32_71 = arith.constant 6 : i32
    %255 = vector.broadcast %c6_i32_71 : i32 to vector<1x128xi32>
    %256 = arith.cmpi sle, %21, %255 : vector<1x128xi32>
    %257 = arith.andi %254, %256 : vector<1x128xi1>
    %cst_72 = arith.constant 0.000000e+00 : f32
    %258 = vector.shape_cast %257 : vector<1x128xi1> to vector<1x128xi1>
    %259 = vector.broadcast %258 : vector<1x128xi1> to vector<8x128xi1>
    %260 = vector.broadcast %cst_72 : f32 to vector<8x128xf32>
    %261 = arith.select %259, %252, %260 : vector<8x128xi1>, vector<8x128xf32>
    %262 = tpu.concatenate %189, %198, %210, %219, %177, %228, %240, %249, %261 in 0 : vector<8x128xf32>, vector<8x128xf32>, vector<8x128xf32>, vector<8x128xf32>, vector<8x128xf32>, vector<8x128xf32>, vector<8x128xf32>, vector<8x128xf32>, vector<8x128xf32> -> vector<72x128xf32>
    %c0_73 = arith.constant 0 : index
    %c0_74 = arith.constant 0 : index
    %263 = vector.load %arg2[%c0_73, %c0_74] : memref<16x72xf32, #tpu.memory_space<vmem>>, vector<16x72xf32>
    %cst_75 = arith.constant dense<0.000000e+00> : vector<16x128xf32>
    %264 = tpu.matmul %263, %262, %cst_75 {dimension_numbers = #tpu.dot_dimension_numbers<[1], [0], [0], [1], [0, 0, 1, 1], [], []>} : vector<16x72xf32>, vector<72x128xf32>, vector<16x128xf32> -> vector<16x128xf32>
    %265 = vector.extract_strided_slice %264 {offsets = [0, 0], sizes = [4, 128], strides = [1, 1]} : vector<16x128xf32> to vector<4x128xf32>
    %cst_76 = arith.constant dense<0.000000e+00> : vector<4x512xf32>
    %266 = tpu.matmul %265, %27, %cst_76 {dimension_numbers = #tpu.dot_dimension_numbers<[1], [0], [0], [1], [0, 0, 1, 1], [], []>} : vector<4x128xf32>, vector<128x512xf32>, vector<4x512xf32> -> vector<4x512xf32>
    %267 = vector.extract_strided_slice %264 {offsets = [4, 0], sizes = [4, 128], strides = [1, 1]} : vector<16x128xf32> to vector<4x128xf32>
    %cst_77 = arith.constant dense<0.000000e+00> : vector<4x512xf32>
    %268 = tpu.matmul %267, %27, %cst_77 {dimension_numbers = #tpu.dot_dimension_numbers<[1], [0], [0], [1], [0, 0, 1, 1], [], []>} : vector<4x128xf32>, vector<128x512xf32>, vector<4x512xf32> -> vector<4x512xf32>
    %269 = vector.extract_strided_slice %268 {offsets = [0, 511], sizes = [4, 1], strides = [1, 1]} : vector<4x512xf32> to vector<4x1xf32>
    %270 = vector.extract_strided_slice %268 {offsets = [0, 0], sizes = [4, 511], strides = [1, 1]} : vector<4x512xf32> to vector<4x511xf32>
    %271 = tpu.concatenate %269, %270 in 1 : vector<4x1xf32>, vector<4x511xf32> -> vector<4x512xf32>
    %272 = arith.addf %266, %271 : vector<4x512xf32>
    %273 = vector.extract_strided_slice %264 {offsets = [8, 0], sizes = [4, 128], strides = [1, 1]} : vector<16x128xf32> to vector<4x128xf32>
    %cst_78 = arith.constant dense<0.000000e+00> : vector<4x512xf32>
    %274 = tpu.matmul %273, %27, %cst_78 {dimension_numbers = #tpu.dot_dimension_numbers<[1], [0], [0], [1], [0, 0, 1, 1], [], []>} : vector<4x128xf32>, vector<128x512xf32>, vector<4x512xf32> -> vector<4x512xf32>
    %275 = vector.extract_strided_slice %274 {offsets = [0, 496], sizes = [4, 16], strides = [1, 1]} : vector<4x512xf32> to vector<4x16xf32>
    %276 = vector.extract_strided_slice %274 {offsets = [0, 0], sizes = [4, 496], strides = [1, 1]} : vector<4x512xf32> to vector<4x496xf32>
    %277 = tpu.concatenate %275, %276 in 1 : vector<4x16xf32>, vector<4x496xf32> -> vector<4x512xf32>
    %278 = arith.addf %272, %277 : vector<4x512xf32>
    %279 = vector.extract_strided_slice %264 {offsets = [12, 0], sizes = [4, 128], strides = [1, 1]} : vector<16x128xf32> to vector<4x128xf32>
    %cst_79 = arith.constant dense<0.000000e+00> : vector<4x512xf32>
    %280 = tpu.matmul %279, %27, %cst_79 {dimension_numbers = #tpu.dot_dimension_numbers<[1], [0], [0], [1], [0, 0, 1, 1], [], []>} : vector<4x128xf32>, vector<128x512xf32>, vector<4x512xf32> -> vector<4x512xf32>
    %281 = vector.extract_strided_slice %280 {offsets = [0, 495], sizes = [4, 17], strides = [1, 1]} : vector<4x512xf32> to vector<4x17xf32>
    %282 = vector.extract_strided_slice %280 {offsets = [0, 0], sizes = [4, 495], strides = [1, 1]} : vector<4x512xf32> to vector<4x495xf32>
    %283 = tpu.concatenate %281, %282 in 1 : vector<4x17xf32>, vector<4x495xf32> -> vector<4x512xf32>
    %284 = arith.addf %278, %283 : vector<4x512xf32>
    %cst_80 = arith.constant dense<0.000000e+00> : vector<4xf32>
    %285 = vector.multi_reduction <add>, %284, %cst_80 [1] : vector<4x512xf32> to vector<4xf32>
    %286 = vector.shape_cast %285 : vector<4xf32> to vector<4x1xf32>
    %cst_81 = arith.constant 5.120000e+02 : f32
    %287 = vector.broadcast %cst_81 : f32 to vector<4x1xf32>
    %288 = arith.divf %286, %287 : vector<4x1xf32>
    %289 = vector.broadcast %288 : vector<4x1xf32> to vector<4x512xf32>
    %290 = arith.subf %284, %289 : vector<4x512xf32>
    %291 = arith.mulf %290, %290 : vector<4x512xf32>
    %cst_82 = arith.constant dense<0.000000e+00> : vector<4xf32>
    %292 = vector.multi_reduction <add>, %291, %cst_82 [1] : vector<4x512xf32> to vector<4xf32>
    %293 = vector.shape_cast %292 : vector<4xf32> to vector<4x1xf32>
    %cst_83 = arith.constant 5.120000e+02 : f32
    %294 = vector.broadcast %cst_83 : f32 to vector<4x1xf32>
    %295 = arith.divf %293, %294 : vector<4x1xf32>
    %cst_84 = arith.constant 9.99999974E-6 : f32
    %296 = vector.broadcast %cst_84 : f32 to vector<4x1xf32>
    %297 = arith.addf %295, %296 : vector<4x1xf32>
    %298 = math.rsqrt %297 : vector<4x1xf32>
    %c0_85 = arith.constant 0 : index
    %c0_86 = arith.constant 0 : index
    %299 = vector.load %arg5[%c0_85, %c0_86] : memref<4x2xf32, #tpu.memory_space<vmem>>, vector<4x1xf32>
    %c0_87 = arith.constant 0 : index
    %c1 = arith.constant 1 : index
    %300 = vector.load %arg5[%c0_87, %c1] : memref<4x2xf32, #tpu.memory_space<vmem>>, vector<4x1xf32>
    %301 = arith.mulf %298, %299 : vector<4x1xf32>
    %302 = vector.broadcast %301 : vector<4x1xf32> to vector<4x512xf32>
    %303 = arith.mulf %290, %302 : vector<4x512xf32>
    %304 = vector.broadcast %300 : vector<4x1xf32> to vector<4x512xf32>
    %305 = arith.addf %303, %304 : vector<4x512xf32>
    %306 = vector.extract_strided_slice %5 {offsets = [0, 0], sizes = [4, 256], strides = [1, 1]} : vector<8x256xf32> to vector<4x256xf32>
    %307 = vector.extract_strided_slice %305 {offsets = [0, 0], sizes = [4, 256], strides = [1, 1]} : vector<4x512xf32> to vector<4x256xf32>
    %308 = vector.extract_strided_slice %5 {offsets = [4, 0], sizes = [4, 256], strides = [1, 1]} : vector<8x256xf32> to vector<4x256xf32>
    %309 = vector.extract_strided_slice %305 {offsets = [0, 256], sizes = [4, 256], strides = [1, 1]} : vector<4x512xf32> to vector<4x256xf32>
    %310 = tpu.concatenate %306, %307, %308, %309 in 0 : vector<4x256xf32>, vector<4x256xf32>, vector<4x256xf32>, vector<4x256xf32> -> vector<16x256xf32>
    %c0_88 = arith.constant 0 : index
    %c0_89 = arith.constant 0 : index
    %311 = vector.load %arg6[%c0_88, %c0_89] : memref<16x256xf32, #tpu.memory_space<vmem>>, vector<16x256xf32>
    tpu.vector_store %arg6[%c0_88, %c0_89], %310 {strides = array<i32>} : memref<16x256xf32, #tpu.memory_space<vmem>>, vector<16x256xf32>,
    return
  }
}

</mosaic_0001>

<bundles_post_ra>
// kernel: unet_inner_block.1
= control target key start
LH: loop header
LB: loop body
LE: loop exit
PB: predicated region body
PF: predicated region fallthrough
CT: control target
= control target key end

     0   :  { %s2695_s28 = smov 17   ;;  %s2696_s29 = smov 16   ;;  %vm187_vm2 = vcmask 138240   ;;  %vm291_vm3 = vcmask 130048   ;;  %vm392_vm4 = vcmask 121856   ;;  %vm491_vm5 = vcmask 113664   ;;  %s5675_s0 = inlined_call_operand.vmem [shape: f32[8,256], index: 0, kind: input, shape index: {}]   ;;  %s5676_s3 = inlined_call_operand.vmem [shape: f32[512,128], index: 3, kind: input, shape index: {}]   ;;  %s5677_s1 = inlined_call_operand.vmem [shape: f32[8,64], index: 1, kind: input, shape index: {}]   ;;  %s5678_s4 = inlined_call_operand.vmem [shape: f32[128,512], index: 4, kind: input, shape index: {}]   ;;  %s5679_s2 = inlined_call_operand.vmem [shape: f32[16,72], index: 2, kind: input, shape index: {}]   ;;  %s5680_s5 = inlined_call_operand.vmem [shape: f32[4,2], index: 5, kind: input, shape index: {}]   ;;  %s5681_s6 = inlined_call_operand.vmem [shape: f32[16,256], index: 6, kind: output, shape index: {}]  }
   0x1   :  { %v23_v0 = vld [vmem:[%s5675_s0] sm:$0xff]  ;;  %v24_v1 = vld [vmem:[%s5675_s0 + $0x8] sm:$0xff]  ;;  %v2763_v2 = vld [vmem:[%s5676_s3 + $0x178] sm:$0xff]  ;;  %s2697_s24 = smov 15   ;;  %s2698_s14 = smov 14   ;;  %vm594_vm6 = vcmask 7168  }
   0x2   :  { %vm25_vm0 = vcmp.ge.f32.partialorder %v23_v0, 0.0  ;;  %vm26_vm1 = vcmp.ge.f32.partialorder %v24_v1, 0.0  ;;  %v27_v3 = vmul.f32 0.2, %v23_v0  ;;  %v28_v4 = vmul.f32 0.2, %v24_v1  ;;  %236 = vmatpush.msra.mxu2 %v2763_v2 }
   0x3   :  { %v2769_v5 = vld [vmem:[%s5676_s3 + $0x170] sm:$0xff]  ;;  %v2774_v6 = vld [vmem:[%s5676_s3 + $0x78] sm:$0xff]  ;;  %v2790_v10 = vld [vmem:[%s5676_s3 + $0x168] sm:$0xff]  ;;  %s2699_s16 = smov 1   ;;  %s2701_s17 = smov 126   ;;  %vm1788_vm10 = vcmask 1043456  }
   0x4   :  { %5844 = vst [vmem:[#allocation2_spill] sm:$0xff] %v2769_v5  ;;  %v2779_v7 = vld [vmem:[%s5676_s3 + $0xf8] sm:$0xff]  ;;  %v2781_v8 = vsel %vm25_vm0, %v23_v0, %v27_v3  ;;  %v2783_v9 = vsel %vm26_vm1, %v24_v1, %v28_v4  ;;  %237 = vmatpush.msra.mxu2 %v2769_v5  ;;  %196 = vmatpush.msra.mxu0 %v2774_v6  ;;  %v2800_v12 = vld [vmem:[%s5676_s3 + $0x70] sm:$0xff]  ;;  %v2815_v15 = vld [vmem:[%s5676_s3 + $0x160] sm:$0xff]  ;;  %s2702_s20 = smov 113   ;;  %s2703_s18 = smov 112  }
   0x5   :  { %5845 = vst [vmem:[#allocation3_spill] sm:$0xff] %v2781_v8  ;;  %v2795_v11 = vld [vmem:[%s5676_s3 + $0x1f8] sm:$0xff]  ;;  %v2803_v13 = vrot.slane %v2781_v8, 4  ;;  %216 = vmatpush.msra.mxu1 %v2779_v7  ;;  %v2810_v14 = vld [vmem:[%s5676_s3 + $0xf0] sm:$0xff]  ;;  %v2832_v18 = vld [vmem:[%s5676_s3 + $0x68] sm:$0xff]  ;;  %v2856_v22 = vrot.slane %v2783_v9, 4 }
   0x6   :  { %5846 = vst [vmem:[#allocation4_spill] sm:$0xff] %v2783_v9  ;;  %256 = vmatpush.msra.mxu3 %v2795_v11  ;;  %v2820_v16 = vld [vmem:[%s5676_s3 + $0x1f0] sm:$0xff]  ;;  %238 = vmatpush.msra.mxu2 %v2790_v10  ;;  %v2837_v19 = vld [vmem:[%s5676_s3 + $0xe8] sm:$0xff]  ;;  %v2844_v20 = vld [vmem:[%s5676_s3 + $0x158] sm:$0xff]  ;;  %vm774_vm11 = vcmask 1039360   ;;  %vm872_vm12 = vcmask 1031168  }
   0x7   :  { %5847 = vst [vmem:[#allocation5_spill] sm:$0xff] %v2803_v13  ;;  %197 = vmatpush.msra.mxu0 %v2800_v12  ;;  %v2826_v17 = vpack.i.bf16 %v2803_v13, %v2783_v9  ;;  %217 = vmatpush.msra.mxu1 %v2810_v14  ;;  %v2849_v21 = vld [vmem:[%s5676_s3 + $0x1e8] sm:$0xff]  ;;  %v2861_v23 = vld [vmem:[%s5676_s3 + $0x60] sm:$0xff]  ;;  %v2873_v25 = vld [vmem:[%s5676_s3 + $0x150] sm:$0xff]  ;;  %v2906_v31 = vpack.i.bf16 %v2781_v8, %v2856_v22  ;;  %vm973_vm15 = vcmask 924672   ;;  %vm1072_vm0 = vcmask 916480  }
   0x8   :  { %239 = vmatpush.msra.mxu2 %v2815_v15  ;;  %257 = vmatpush.msra.mxu3 %v2820_v16  ;;  %5849 = vst [vmem:[#allocation7_spill] sm:$0xff] %v2856_v22  ;;  %v2866_v24 = vld [vmem:[%s5676_s3 + $0xe0] sm:$0xff]  ;;  %v2885_v27 = vld [vmem:[%s5676_s3 + $0x58] sm:$0xff]  ;;  %v2897_v29 = vld [vmem:[%s5676_s3 + $0x148] sm:$0xff]  ;;  %s2706_s9 = smov 97   ;;  %s2707_s10 = smov 96  }
   0x9   :  { %5848 = vst [vmem:[#allocation6_spill] sm:$0xff] %v2826_v17  ;;  %2411 = vrot.lane.b32.xlu0 %v2826_v17, %s2695_s28  ;;  %2421 = vrot.lane.b32.xlu1 %v2826_v17, %s2696_s29  ;;  %v2878_v26 = vld [vmem:[%s5676_s3 + $0x1e0] sm:$0xff]  ;;  %v2890_v28 = vld [vmem:[%s5676_s3 + $0xd8] sm:$0xff]  ;;  %vm1170_vm1 = vcmask 908288   ;;  %s2708_s11 = smov 95   ;;  %s2709_s30 = smov 94  }
   0xa   :  { %198 = vmatpush.msra.mxu0 %v2832_v18  ;;  %218 = vmatpush.msra.mxu1 %v2837_v19  ;;  %5850 = vst [vmem:[#allocation8_spill] sm:$0xff] %v2873_v25  ;;  %v2902_v30 = vld [vmem:[%s5676_s3 + $0x1d8] sm:$0xff]  ;;  %v2913_v32 = vld [vmem:[%s5676_s3 + $0x50] sm:$0xff]  ;;  %v2927_v34 = vld [vmem:[%s5676_s3 + $0x140] sm:$0xff]  ;;  %s2710_s27 = smov 121   ;;  %s2711_s0 = smov 120  }
   0xb   :  { %5851 = vst [vmem:[#allocation9_spill] sm:$0xff] %v2878_v26  ;;  %240 = vmatpush.msra.mxu2 %v2844_v20  ;;  %258 = vmatpush.msra.mxu3 %v2849_v21  ;;  %v2918_v33 = vld [vmem:[%s5676_s3 + $0xd0] sm:$0xff]  ;;  %v2939_v36 = vld [vmem:[%s5676_s3 + $0x48] sm:$0xff]  ;;  %v2953_v38 = vld [vmem:[%s5676_s3 + $0x138] sm:$0xff]  ;;  %s2712_s7 = smov 119   ;;  %s2713_s8 = smov 7  }
   0xc   :  { %5852 = vst [vmem:[#allocation10_spill] sm:$0xff] %v2890_v28  ;;  %199 = vmatpush.msra.mxu0 %v2861_v23  ;;  %219 = vmatpush.msra.mxu1 %v2866_v24  ;;  %v2932_v35 = vld [vmem:[%s5676_s3 + $0x1d0] sm:$0xff]  ;;  %v2944_v37 = vld [vmem:[%s5676_s3 + $0xc8] sm:$0xff]  ;;  %v2965_v40 = vld [vmem:[%s5676_s3 + $0x40] sm:$0xff] }
   0xd   :  { %5853 = vst [vmem:[#allocation11_spill] sm:$0xff] %v2906_v31  ;;  %241 = vmatpush.msra.mxu2 %v2873_v25  ;;  %259 = vmatpush.msra.mxu3 %v2878_v26  ;;  %v2958_v39 = vld [vmem:[%s5676_s3 + $0x1c8] sm:$0xff]  ;;  %v2972_v41 = vld [vmem:[%s5676_s3 + $0xc0] sm:$0xff]  ;;  %v2977_v42 = vld [vmem:[%s5676_s3 + $0x130] sm:$0xff] }
   0xe   :  { %200 = vmatpush.msra.mxu0 %v2885_v27  ;;  %220 = vmatpush.msra.mxu1 %v2890_v28  ;;  %5854 = vst [vmem:[#allocation12_spill] sm:$0xff] %v2939_v36  ;;  %v2984_v43 = vld [vmem:[%s5676_s3 + $0x1c0] sm:$0xff]  ;;  %v2989_v44 = vld [vmem:[%s5676_s3 + $0x38] sm:$0xff]  ;;  %v3002_v46 = vld [vmem:[%s5676_s3 + $0x128] sm:$0xff] }
   0xf   :  { %242 = vmatpush.msra.mxu2 %v2897_v29  ;;  %260 = vmatpush.msra.mxu3 %v2902_v30  ;;  %5855 = vst [vmem:[#allocation13_spill] sm:$0xff] %v2958_v39  ;;  %v2997_v45 = vld [vmem:[%s5676_s3 + $0xb8] sm:$0xff]  ;;  %v3016_v48 = vld [vmem:[%s5676_s3 + $0x30] sm:$0xff]  ;;  %v3028_v50 = vld [vmem:[%s5676_s3 + $0x120] sm:$0xff] }
  0x10   :  { %201 = vmatpush.msra.mxu0 %v2913_v32  ;;  %221 = vmatpush.msra.mxu1 %v2918_v33  ;;  %5856 = vst [vmem:[#allocation14_spill] sm:$0xff] %v2989_v44  ;;  %v3011_v47 = vld [vmem:[%s5676_s3 + $0x1b8] sm:$0xff]  ;;  %v3023_v49 = vld [vmem:[%s5676_s3 + $0xb0] sm:$0xff]  ;;  %v3040_v52 = vld [vmem:[%s5676_s3 + $0x28] sm:$0xff] }
  0x11   :  { %2416 = vrot.lane.b32.xlu0 %v2906_v31, %s2695_s28  ;;  %2426 = vrot.lane.b32.xlu1 %v2906_v31, %s2696_s29  ;;  %5857 = vst [vmem:[#allocation15_spill] sm:$0xff] %v3011_v47  ;;  %v3035_v51 = vld [vmem:[%s5676_s3 + $0x1b0] sm:$0xff]  ;;  %v3047_v53 = vld [vmem:[%s5676_s3 + $0xa8] sm:$0xff] }
  0x12   :  { %243 = vmatpush.msra.mxu2 %v2927_v34  ;;  %261 = vmatpush.msra.mxu3 %v2932_v35  ;;  %5858 = vst [vmem:[#allocation16_spill] sm:$0xff] %v3023_v49  ;;  %v3052_v54 = vld [vmem:[%s5676_s3 + $0x118] sm:$0xff]  ;;  %v3059_v55 = vld [vmem:[%s5676_s3 + $0x1a8] sm:$0xff]  ;;  %v3066_v56 = vld [vmem:[%s5676_s3 + $0x20] sm:$0xff] }
  0x13   :  { %202 = vmatpush.msra.mxu0 %v2939_v36  ;;  %222 = vmatpush.msra.mxu1 %v2944_v37  ;;  %5859 = vst [vmem:[#allocation17_spill] sm:$0xff] %v3028_v50  ;;  %v3071_v57 = vld [vmem:[%s5676_s3 + $0xa0] sm:$0xff]  ;;  %v3078_v58 = vld [vmem:[%s5676_s3 + $0x110] sm:$0xff]  ;;  %v3091_v60 = vld [vmem:[%s5676_s3 + $0x18] sm:$0xff] }
  0x14   :  { %244 = vmatpush.msra.mxu2 %v2953_v38  ;;  %262 = vmatpush.msra.mxu3 %v2958_v39  ;;  %5860 = vst [vmem:[#allocation18_spill] sm:$0xff] %v3059_v55  ;;  %v3083_v59 = vld [vmem:[%s5676_s3 + $0x1a0] sm:$0xff]  ;;  %v3096_v61 = vld [vmem:[%s5676_s3 + $0x98] sm:$0xff]  ;;  %v3103_v62 = vld [vmem:[%s5676_s3 + $0x108] sm:$0xff] }
  0x15   :  { %2431 = vrot.lane.b32.xlu2 %v2826_v17, %s2697_s24  ;;  %203 = vmatpush.msra.mxu0 %v2965_v40  ;;  %5861 = vst [vmem:[#allocation19_spill] sm:$0xff] %v3066_v56  ;;  %v3108_v63 = vld [vmem:[%s5676_s3 + $0x198] sm:$0xff]  ;;  %v3115_v0 = vld [vmem:[%s5676_s3 + $0x10] sm:$0xff]  ;;  %v3127_v3 = vld [vmem:[%s5676_s3 + $0x100] sm:$0xff] }
  0x16   :  { %223 = vmatpush.msra.mxu1 %v2972_v41  ;;  %245 = vmatpush.msra.mxu2 %v2977_v42  ;;  %5862 = vst [vmem:[#allocation20_spill] sm:$0xff] %v3103_v62  ;;  %v3120_v1 = vld [vmem:[%s5676_s3 + $0x90] sm:$0xff]  ;;  %v3139_v9 = vld [vmem:[%s5676_s3 + $0x8] sm:$0xff]  ;;  %v3158_v13 = vld [vmem:[%s5676_s3] sm:$0xff] }
  0x17   :  { %263 = vmatpush.msra.mxu3 %v2984_v43  ;;  %204 = vmatpush.msra.mxu0 %v2989_v44  ;;  %5863 = vst [vmem:[#allocation21_spill] sm:$0xff] %v3108_v63  ;;  %v3132_v4 = vld [vmem:[%s5676_s3 + $0x190] sm:$0xff]  ;;  %v3146_v8 = vld [vmem:[%s5676_s3 + $0x88] sm:$0xff] }
  0x18   :  { %224 = vmatpush.msra.mxu1 %v2997_v45  ;;  %246 = vmatpush.msra.mxu2 %v3002_v46  ;;  %5864 = vst [vmem:[#allocation22_spill] sm:$0xff] %v3115_v0  ;;  %v3151_v22 = vld [vmem:[%s5676_s3 + $0x188] sm:$0xff] }
  0x19   :  { %2441 = vrot.lane.b32.xlu0 %v2826_v17, %s2698_s14  ;;  %2446 = vrot.lane.b32.xlu1 %v2906_v31, %s2698_s14  ;;  %5865 = vst [vmem:[#allocation23_spill] sm:$0xff] %v3120_v1  ;;  %v3165_v17 = vld [vmem:[%s5676_s3 + $0x80] sm:$0xff] }
  0x1a   :  { %264 = vmatpush.msra.mxu3 %v3011_v47  ;;  %205 = vmatpush.msra.mxu0 %v3016_v48  ;;  %5866 = vst [vmem:[#allocation24_spill] sm:$0xff] %v3127_v3 }
  0x1b   :  { %225 = vmatpush.msra.mxu1 %v3023_v49  ;;  %247 = vmatpush.msra.mxu2 %v3028_v50  ;;  %5867 = vst [vmem:[#allocation25_spill] sm:$0xff] %v3132_v4 }
  0x1c   :  { %265 = vmatpush.msra.mxu3 %v3035_v51  ;;  %206 = vmatpush.msra.mxu0 %v3040_v52  ;;  %5868 = vst [vmem:[#allocation26_spill] sm:$0xff] %v3139_v9 }
  0x1d   :  { %226 = vmatpush.msra.mxu1 %v3047_v53  ;;  %248 = vmatpush.msra.mxu2 %v3052_v54  ;;  %5869 = vst [vmem:[#allocation27_spill] sm:$0xff] %v3146_v8 }
  0x1e   :  { %266 = vmatpush.msra.mxu3 %v3059_v55  ;;  %2436 = vrot.lane.b32.xlu2 %v2906_v31, %s2697_s24  ;;  %5870 = vst [vmem:[#allocation28_spill] sm:$0xff] %v3151_v22  ;;  %v3170_v31 = vld [vmem:[%s5676_s3 + $0x180] sm:$0xff]  ;;  %s2700_s24 = smov 127  }
  0x1f   :  { %207 = vmatpush.msra.mxu0 %v3066_v56  ;;  %227 = vmatpush.msra.mxu1 %v3071_v57  ;;  %5871 = vst [vmem:[#allocation29_spill] sm:$0xff] %v3158_v13 }
  0x20   :  { %249 = vmatpush.msra.mxu2 %v3078_v58  ;;  %267 = vmatpush.msra.mxu3 %v3083_v59  ;;  %5872 = vst [vmem:[#allocation30_spill] sm:$0xff] %v3165_v17 }
  0x21   :  { %208 = vmatpush.msra.mxu0 %v3091_v60  ;;  %228 = vmatpush.msra.mxu1 %v3096_v61  ;;  %5873 = vst [vmem:[#allocation31_spill] sm:$0xff] %v3170_v31 }
  0x22   :  { %250 = vmatpush.msra.mxu2 %v3103_v62  ;;  %268 = vmatpush.msra.mxu3 %v3108_v63 }
  0x23   :  { %209 = vmatpush.msra.mxu0 %v3115_v0  ;;  %229 = vmatpush.msra.mxu1 %v3120_v1 }
  0x24   :  { %251 = vmatpush.msra.mxu2 %v3127_v3  ;;  %269 = vmatpush.msra.mxu3 %v3132_v4 }
  0x25   :  { %210 = vmatpush.msra.mxu0 %v3139_v9  ;;  %230 = vmatpush.msra.mxu1 %v3146_v8 }
  0x26   :  { %340 = vmatpush.msrb.mxu2 %v2763_v2  ;;  %270 = vmatpush.msra.mxu3 %v3151_v22 }
  0x27   :  { %211 = vmatpush.msra.mxu0 %v3158_v13  ;;  %231 = vmatpush.msra.mxu1 %v3165_v17 }
  0x28   :  { %341 = vmatpush.msrb.mxu2 %v2769_v5  ;;  %271 = vmatpush.msra.mxu3 %v3170_v31 }
  0x29   :  { %300 = vmatpush.msrb.mxu0 %v2774_v6  ;;  %320 = vmatpush.msrb.mxu1 %v2779_v7 }
  0x2a   :  { %342 = vmatpush.msrb.mxu2 %v2790_v10  ;;  %360 = vmatpush.msrb.mxu3 %v2795_v11 }
  0x2b   :  { %301 = vmatpush.msrb.mxu0 %v2800_v12  ;;  %321 = vmatpush.msrb.mxu1 %v2810_v14 }
  0x2c   :  { %343 = vmatpush.msrb.mxu2 %v2815_v15  ;;  %361 = vmatpush.msrb.mxu3 %v2820_v16 }
  0x2d   :  { %302 = vmatpush.msrb.mxu0 %v2832_v18  ;;  %322 = vmatpush.msrb.mxu1 %v2837_v19 }
  0x2e   :  { %344 = vmatpush.msrb.mxu2 %v2844_v20  ;;  %362 = vmatpush.msrb.mxu3 %v2849_v21 }
  0x2f   :  { %303 = vmatpush.msrb.mxu0 %v2861_v23  ;;  %323 = vmatpush.msrb.mxu1 %v2866_v24 }
  0x30   :  { %345 = vmatpush.msrb.mxu2 %v2873_v25  ;;  %363 = vmatpush.msrb.mxu3 %v2878_v26 }
  0x31   :  { %304 = vmatpush.msrb.mxu0 %v2885_v27  ;;  %324 = vmatpush.msrb.mxu1 %v2890_v28 }
  0x32   :  { %346 = vmatpush.msrb.mxu2 %v2897_v29  ;;  %364 = vmatpush.msrb.mxu3 %v2902_v30 }
  0x33   :  { %305 = vmatpush.msrb.mxu0 %v2913_v32  ;;  %325 = vmatpush.msrb.mxu1 %v2918_v33 }
  0x34   :  { %347 = vmatpush.msrb.mxu2 %v2927_v34  ;;  %365 = vmatpush.msrb.mxu3 %v2932_v35 }
  0x35   :  { %306 = vmatpush.msrb.mxu0 %v2939_v36  ;;  %326 = vmatpush.msrb.mxu1 %v2944_v37 }
  0x36   :  { %348 = vmatpush.msrb.mxu2 %v2953_v38  ;;  %366 = vmatpush.msrb.mxu3 %v2958_v39 }
  0x37   :  { %307 = vmatpush.msrb.mxu0 %v2965_v40  ;;  %327 = vmatpush.msrb.mxu1 %v2972_v41 }
  0x38   :  { %349 = vmatpush.msrb.mxu2 %v2977_v42  ;;  %367 = vmatpush.msrb.mxu3 %v2984_v43 }
  0x39   :  { %308 = vmatpush.msrb.mxu0 %v2989_v44  ;;  %328 = vmatpush.msrb.mxu1 %v2997_v45 }
  0x3a   :  { %350 = vmatpush.msrb.mxu2 %v3002_v46  ;;  %368 = vmatpush.msrb.mxu3 %v3011_v47 }
  0x3b   :  { %309 = vmatpush.msrb.mxu0 %v3016_v48  ;;  %329 = vmatpush.msrb.mxu1 %v3023_v49 }
  0x3c   :  { %351 = vmatpush.msrb.mxu2 %v3028_v50  ;;  %369 = vmatpush.msrb.mxu3 %v3035_v51 }
  0x3d   :  { %310 = vmatpush.msrb.mxu0 %v3040_v52  ;;  %330 = vmatpush.msrb.mxu1 %v3047_v53 }
  0x3e   :  { %352 = vmatpush.msrb.mxu2 %v3052_v54  ;;  %370 = vmatpush.msrb.mxu3 %v3059_v55 }
  0x3f   :  { %311 = vmatpush.msrb.mxu0 %v3066_v56  ;;  %331 = vmatpush.msrb.mxu1 %v3071_v57 }
  0x40   :  { %353 = vmatpush.msrb.mxu2 %v3078_v58  ;;  %371 = vmatpush.msrb.mxu3 %v3083_v59 }
  0x41   :  { %312 = vmatpush.msrb.mxu0 %v3091_v60  ;;  %332 = vmatpush.msrb.mxu1 %v3096_v61 }
  0x42   :  { %354 = vmatpush.msrb.mxu2 %v3103_v62  ;;  %372 = vmatpush.msrb.mxu3 %v3108_v63 }
  0x43   :  { %313 = vmatpush.msrb.mxu0 %v3115_v0  ;;  %333 = vmatpush.msrb.mxu1 %v3120_v1  ;;  %v5874_v0 = vld [vmem:[#allocation11_spill] sm:$0xff] }
  0x44   :  { %355 = vmatpush.msrb.mxu2 %v3127_v3  ;;  %373 = vmatpush.msrb.mxu3 %v3132_v4 }
  0x45   :  { %314 = vmatpush.msrb.mxu0 %v3139_v9  ;;  %334 = vmatpush.msrb.mxu1 %v3146_v8 }
  0x46   :  { %374 = vmatpush.msrb.mxu3 %v3151_v22  ;;  %2456 = vrot.lane.b32.xlu0 %v5874_v0, %s2699_s16  ;;  %v5875_v22 = vld [vmem:[#allocation6_spill] sm:$0xff] }
  0x47   :  { %315 = vmatpush.msrb.mxu0 %v3158_v13  ;;  %335 = vmatpush.msrb.mxu1 %v3165_v17 }
  0x48   :  { %375 = vmatpush.msrb.mxu3 %v3170_v31  ;;  %2451 = vrot.lane.b32.xlu2 %v5875_v22, %s2699_s16 }
  0x7b   :  { %v2412_v1 = vpop.permute.xlu0 %2411  ;;  %v2422_v63 = vpop.permute.xlu1 %2421 }
  0x7c   :  { %v2414_v3 = vunpack.i.h.bf16 %v2412_v1  ;;  %v2413_v4 = vunpack.i.l.bf16 %v2412_v1  ;;  %v2424_v0 = vunpack.i.h.bf16 %v2422_v63  ;;  %v2423_v8 = vunpack.i.l.bf16 %v2422_v63 }
  0x7e   :  { %v189_v9 = vsel %vm187_vm2, %v2413_v4, %v2414_v3  ;;  %v293_v63 = vsel %vm291_vm3, %v2423_v8, %v2424_v0 }
  0x7f   :  { %252 = vmatmul.f32.vlgmr.msra.gmra.mxu2 %v189_v9 }
  0x80   :  { %441 = vmatpush.msra.mxu2 %v2763_v2 }
  0x82   :  { %442 = vmatpush.msra.mxu2 %v2769_v5 }
  0x83   :  { %v2417_v31 = vpop.permute.xlu0 %2416  ;;  %v2427_v22 = vpop.permute.xlu1 %2426 }
  0x84   :  { %v2419_v17 = vunpack.i.h.bf16 %v2417_v31  ;;  %v2418_v13 = vunpack.i.l.bf16 %v2417_v31  ;;  %443 = vmatpush.msra.mxu2 %v2790_v10  ;;  %v2428_v31 = vunpack.i.l.bf16 %v2427_v22 }
  0x86   :  { %v195_v1 = vsel %vm187_vm2, %v2418_v13, %v2419_v17  ;;  %v188_v62 = vsel %vm187_vm2, %v2419_v17, %v2413_v4  ;;  %v190_v9 = vsel %vm187_vm2, %v2414_v3, %v2418_v13  ;;  %444 = vmatpush.msra.mxu2 %v2815_v15  ;;  %v2429_v13 = vunpack.i.h.bf16 %v2427_v22  ;;  %v5877_v4 = vld [vmem:[#allocation21_spill] sm:$0xff] }
  0x87   :  { %212 = vmatmul.f32.vlgmr.msra.gmra.mxu0 %v195_v1  ;;  %232 = vmatmul.f32.vlgmr.msra.gmra.mxu1 %v188_v62  ;;  %v294_v17 = vsel %vm291_vm3, %v2424_v0, %v2428_v31  ;;  %v5878_v0 = vld [vmem:[#allocation22_spill] sm:$0xff]  ;;  %v5879_v1 = vld [vmem:[#allocation23_spill] sm:$0xff]  ;;  %v5881_v22 = vld [vmem:[#allocation25_spill] sm:$0xff] }
  0x88   :  { %272 = vmatmul.f32.vlgmr.msra.gmra.mxu3 %v190_v9  ;;  %401 = vmatpush.msra.mxu0 %v2774_v6  ;;  %v299_v62 = vsel %vm291_vm3, %v2428_v31, %v2429_v13  ;;  %v292_v3 = vsel %vm291_vm3, %v2429_v13, %v2423_v8  ;;  %v5876_v8 = vld [vmem:[#allocation20_spill] sm:$0xff]  ;;  %v5882_v31 = vld [vmem:[#allocation26_spill] sm:$0xff] }
  0x89   :  { %421 = vmatpush.msra.mxu1 %v2779_v7  ;;  %461 = vmatpush.msra.mxu3 %v2795_v11  ;;  %v5880_v9 = vld [vmem:[#allocation24_spill] sm:$0xff] }
  0x8a   :  { %402 = vmatpush.msra.mxu0 %v2800_v12  ;;  %445 = vmatpush.msra.mxu2 %v2844_v20  ;;  %v5884_v13 = vld [vmem:[#allocation28_spill] sm:$0xff] }
  0x8b   :  { %422 = vmatpush.msra.mxu1 %v2810_v14  ;;  %462 = vmatpush.msra.mxu3 %v2820_v16 }
  0x8c   :  { %403 = vmatpush.msra.mxu0 %v2832_v18  ;;  %356 = vmatmul.f32.vlgmr.msrb.gmra.mxu2 %v293_v63  ;;  %v5883_v63 = vld [vmem:[#allocation27_spill] sm:$0xff] }
  0x8d   :  { %423 = vmatpush.msra.mxu1 %v2837_v19  ;;  %463 = vmatpush.msra.mxu3 %v2849_v21 }
  0x8e   :  { %404 = vmatpush.msra.mxu0 %v2861_v23  ;;  %446 = vmatpush.msra.mxu2 %v2873_v25 }
  0x8f   :  { %424 = vmatpush.msra.mxu1 %v2866_v24  ;;  %464 = vmatpush.msra.mxu3 %v2878_v26 }
  0x90   :  { %376 = vmatmul.f32.vlgmr.msrb.gmra.mxu3 %v294_v17  ;;  %405 = vmatpush.msra.mxu0 %v2885_v27  ;;  %v5885_v17 = vld [vmem:[#allocation29_spill] sm:$0xff] }
  0x91   :  { %425 = vmatpush.msra.mxu1 %v2890_v28  ;;  %447 = vmatpush.msra.mxu2 %v2897_v29 }
  0x92   :  { %465 = vmatpush.msra.mxu3 %v2902_v30  ;;  %316 = vmatmul.f32.vlgmr.msrb.gmra.mxu0 %v299_v62  ;;  %v5886_v62 = vld [vmem:[#allocation30_spill] sm:$0xff] }
  0x93   :  { %336 = vmatmul.f32.vlgmr.msrb.gmra.mxu1 %v292_v3  ;;  %406 = vmatpush.msra.mxu0 %v2913_v32  ;;  %v5887_v3 = vld [vmem:[#allocation31_spill] sm:$0xff] }
  0x94   :  { %426 = vmatpush.msra.mxu1 %v2918_v33  ;;  %448 = vmatpush.msra.mxu2 %v2927_v34 }
  0x95   :  { %466 = vmatpush.msra.mxu3 %v2932_v35  ;;  %407 = vmatpush.msra.mxu0 %v2939_v36 }
  0x96   :  { %427 = vmatpush.msra.mxu1 %v2944_v37  ;;  %449 = vmatpush.msra.mxu2 %v2953_v38 }
  0x97   :  { %467 = vmatpush.msra.mxu3 %v2958_v39  ;;  %408 = vmatpush.msra.mxu0 %v2965_v40 }
  0x98   :  { %428 = vmatpush.msra.mxu1 %v2972_v41  ;;  %450 = vmatpush.msra.mxu2 %v2977_v42 }
  0x99   :  { %468 = vmatpush.msra.mxu3 %v2984_v43  ;;  %409 = vmatpush.msra.mxu0 %v2989_v44 }
  0x9a   :  { %429 = vmatpush.msra.mxu1 %v2997_v45  ;;  %451 = vmatpush.msra.mxu2 %v3002_v46 }
  0x9b   :  { %469 = vmatpush.msra.mxu3 %v3011_v47  ;;  %410 = vmatpush.msra.mxu0 %v3016_v48 }
  0x9c   :  { %430 = vmatpush.msra.mxu1 %v3023_v49  ;;  %452 = vmatpush.msra.mxu2 %v3028_v50 }
  0x9d   :  { %470 = vmatpush.msra.mxu3 %v3035_v51  ;;  %411 = vmatpush.msra.mxu0 %v3040_v52 }
  0x9e   :  { %431 = vmatpush.msra.mxu1 %v3047_v53  ;;  %453 = vmatpush.msra.mxu2 %v3052_v54 }
  0x9f   :  { %471 = vmatpush.msra.mxu3 %v3059_v55  ;;  %412 = vmatpush.msra.mxu0 %v3066_v56 }
  0xa0   :  { %432 = vmatpush.msra.mxu1 %v3071_v57  ;;  %454 = vmatpush.msra.mxu2 %v3078_v58 }
  0xa1   :  { %472 = vmatpush.msra.mxu3 %v3083_v59  ;;  %413 = vmatpush.msra.mxu0 %v3091_v60 }
  0xa2   :  { %433 = vmatpush.msra.mxu1 %v3096_v61  ;;  %455 = vmatpush.msra.mxu2 %v5876_v8 }
  0xa3   :  { %473 = vmatpush.msra.mxu3 %v5877_v4  ;;  %414 = vmatpush.msra.mxu0 %v5878_v0 }
  0xa4   :  { %434 = vmatpush.msra.mxu1 %v5879_v1  ;;  %456 = vmatpush.msra.mxu2 %v5880_v9 }
  0xa5   :  { %474 = vmatpush.msra.mxu3 %v5881_v22  ;;  %415 = vmatpush.msra.mxu0 %v5882_v31 }
  0xa6   :  { %540 = vmatpush.msrb.mxu2 %v2763_v2  ;;  %435 = vmatpush.msra.mxu1 %v5883_v63 }
  0xa7   :  { %475 = vmatpush.msra.mxu3 %v5884_v13  ;;  %416 = vmatpush.msra.mxu0 %v5885_v17 }
  0xa8   :  { %541 = vmatpush.msrb.mxu2 %v2769_v5  ;;  %436 = vmatpush.msra.mxu1 %v5886_v62  ;;  %v2432_v5 = vpop.permute.xlu2 %2431 }
  0xa9   :  { %476 = vmatpush.msra.mxu3 %v5887_v3  ;;  %500 = vmatpush.msrb.mxu0 %v2774_v6 }
  0xaa   :  { %520 = vmatpush.msrb.mxu1 %v2779_v7  ;;  %542 = vmatpush.msrb.mxu2 %v2790_v10 }
  0xab   :  { %560 = vmatpush.msrb.mxu3 %v2795_v11  ;;  %501 = vmatpush.msrb.mxu0 %v2800_v12 }
  0xac   :  { %521 = vmatpush.msrb.mxu1 %v2810_v14  ;;  %543 = vmatpush.msrb.mxu2 %v2815_v15 }
  0xad   :  { %561 = vmatpush.msrb.mxu3 %v2820_v16  ;;  %502 = vmatpush.msrb.mxu0 %v2832_v18 }
  0xae   :  { %522 = vmatpush.msrb.mxu1 %v2837_v19  ;;  %544 = vmatpush.msrb.mxu2 %v2844_v20 }
  0xaf   :  { %562 = vmatpush.msrb.mxu3 %v2849_v21  ;;  %503 = vmatpush.msrb.mxu0 %v2861_v23 }
  0xb0   :  { %523 = vmatpush.msrb.mxu1 %v2866_v24  ;;  %545 = vmatpush.msrb.mxu2 %v2873_v25  ;;  %v2434_v25 = vunpack.i.h.bf16 %v2432_v5 }
  0xb1   :  { %563 = vmatpush.msrb.mxu3 %v2878_v26  ;;  %504 = vmatpush.msrb.mxu0 %v2885_v27  ;;  %v2433_v26 = vunpack.i.l.bf16 %v2432_v5 }
  0xb2   :  { %524 = vmatpush.msrb.mxu1 %v2890_v28  ;;  %546 = vmatpush.msrb.mxu2 %v2897_v29  ;;  %v2437_v28 = vpop.permute.xlu2 %2436 }
  0xb3   :  { %564 = vmatpush.msrb.mxu3 %v2902_v30  ;;  %505 = vmatpush.msrb.mxu0 %v2913_v32  ;;  %v394_v5 = vsel %vm392_vm4, %v2433_v26, %v2434_v25 }
  0xb4   :  { %525 = vmatpush.msrb.mxu1 %v2918_v33  ;;  %547 = vmatpush.msrb.mxu2 %v2927_v34 }
  0xb5   :  { %565 = vmatpush.msrb.mxu3 %v2932_v35  ;;  %506 = vmatpush.msrb.mxu0 %v2939_v36  ;;  %v2438_v36 = vunpack.i.l.bf16 %v2437_v28 }
  0xb6   :  { %526 = vmatpush.msrb.mxu1 %v2944_v37  ;;  %548 = vmatpush.msrb.mxu2 %v2953_v38 }
  0xb7   :  { %566 = vmatpush.msrb.mxu3 %v2958_v39  ;;  %507 = vmatpush.msrb.mxu0 %v2965_v40  ;;  %v2439_v39 = vunpack.i.h.bf16 %v2437_v28 }
  0xb8   :  { %527 = vmatpush.msrb.mxu1 %v2972_v41  ;;  %549 = vmatpush.msrb.mxu2 %v2977_v42 }
  0xb9   :  { %567 = vmatpush.msrb.mxu3 %v2984_v43  ;;  %508 = vmatpush.msrb.mxu0 %v2989_v44  ;;  %v395_v44 = vsel %vm392_vm4, %v2434_v25, %v2438_v36  ;;  %v400_v28 = vsel %vm392_vm4, %v2438_v36, %v2439_v39  ;;  %v5889_v36 = vld [vmem:[#allocation7_spill] sm:$0xff] }
  0xba   :  { %528 = vmatpush.msrb.mxu1 %v2997_v45  ;;  %550 = vmatpush.msrb.mxu2 %v3002_v46 }
  0xbb   :  { %568 = vmatpush.msrb.mxu3 %v3011_v47  ;;  %509 = vmatpush.msrb.mxu0 %v3016_v48 }
  0xbc   :  { %529 = vmatpush.msrb.mxu1 %v3023_v49  ;;  %551 = vmatpush.msrb.mxu2 %v3028_v50  ;;  %v393_v50 = vsel %vm392_vm4, %v2439_v39, %v2433_v26  ;;  %v2442_v49 = vpop.permute.xlu0 %2441  ;;  %vm1268_vm4 = vcmask 900096  }
  0xbd   :  { %569 = vmatpush.msrb.mxu3 %v3035_v51  ;;  %457 = vmatmul.f32.vlgmr.msra.gmra.mxu2 %v394_v5  ;;  %v2444_v25 = vunpack.i.h.bf16 %v2442_v49  ;;  %v2443_v5 = vunpack.i.l.bf16 %v2442_v49 }
  0xbe   :  { %510 = vmatpush.msrb.mxu0 %v3040_v52  ;;  %530 = vmatpush.msrb.mxu1 %v3047_v53 }
  0xbf   :  { %552 = vmatpush.msrb.mxu2 %v3052_v54  ;;  %570 = vmatpush.msrb.mxu3 %v3059_v55  ;;  %v5888_v55 = vld [vmem:[#allocation5_spill] sm:$0xff]  ;;  %v493_v39 = vsel %vm491_vm5, %v2443_v5, %v2444_v25 }
  0xc0   :  { %477 = vmatmul.f32.vlgmr.msra.gmra.mxu3 %v395_v44  ;;  %511 = vmatpush.msrb.mxu0 %v3066_v56  ;;  %v3373_v44 = vpack.i.bf16 %v5889_v36, %v5888_v55  ;;  %v2447_v56 = vpop.permute.xlu1 %2446 }
  0xc1   :  { %531 = vmatpush.msrb.mxu1 %v3071_v57  ;;  %553 = vmatpush.msrb.mxu2 %v3078_v58  ;;  %v2448_v26 = vunpack.i.l.bf16 %v2447_v56  ;;  %v2449_v49 = vunpack.i.h.bf16 %v2447_v56 }
  0xc2   :  { %571 = vmatpush.msrb.mxu3 %v3083_v59  ;;  %417 = vmatmul.f32.vlgmr.msra.gmra.mxu0 %v400_v28  ;;  %5890 = vst [vmem:[#allocation11_spill] sm:$0xff] %v3373_v44  ;;  %v5891_v28 = vld [vmem:[#allocation2_spill] sm:$0xff] }
  0xc3   :  { %437 = vmatmul.f32.vlgmr.msra.gmra.mxu1 %v393_v50  ;;  %512 = vmatpush.msrb.mxu0 %v3091_v60  ;;  %v494_v50 = vsel %vm491_vm5, %v2444_v25, %v2448_v26  ;;  %v499_v56 = vsel %vm491_vm5, %v2448_v26, %v2449_v49  ;;  %v492_v36 = vsel %vm491_vm5, %v2449_v49, %v2443_v5  ;;  %v5892_v25 = vld [vmem:[#allocation3_spill] sm:$0xff]  ;;  %v5895_v5 = vld [vmem:[#allocation8_spill] sm:$0xff]  ;;  %v5897_v26 = vld [vmem:[#allocation10_spill] sm:$0xff]  ;;  %vm1367_vm5 = vcmask 793600  }
  0xc4   :  { %532 = vmatpush.msrb.mxu1 %v3096_v61  ;;  %554 = vmatpush.msrb.mxu2 %v5876_v8  ;;  %v5898_v49 = vld [vmem:[#allocation12_spill] sm:$0xff] }
  0xc5   :  { %572 = vmatpush.msrb.mxu3 %v5877_v4  ;;  %513 = vmatpush.msrb.mxu0 %v5878_v0 }
  0xc6   :  { %533 = vmatpush.msrb.mxu1 %v5879_v1  ;;  %555 = vmatpush.msrb.mxu2 %v5880_v9 }
  0xc7   :  { %573 = vmatpush.msrb.mxu3 %v5881_v22  ;;  %2461 = vrot.lane.b32.xlu1 %v3373_v44, %s2700_s24 }
  0xc8   :  { %643 = vmatpush.msra.mxu2 %v2763_v2  ;;  %514 = vmatpush.msrb.mxu0 %v5882_v31 }
  0xc9   :  { %534 = vmatpush.msrb.mxu1 %v5883_v63  ;;  %574 = vmatpush.msrb.mxu3 %v5884_v13 }
  0xca   :  { %556 = vmatmul.f32.vlgmr.msrb.gmra.mxu2 %v493_v39  ;;  %515 = vmatpush.msrb.mxu0 %v5885_v17  ;;  %v5893_v39 = vld [vmem:[#allocation4_spill] sm:$0xff] }
  0xcb   :  { %644 = vmatpush.msra.mxu2 %v5891_v28  ;;  %535 = vmatpush.msrb.mxu1 %v5886_v62  ;;  %v3404_v55 = vpack.i.bf16 %v5893_v39, %v5892_v25  ;;  %v5902_v39 = vld [vmem:[#allocation17_spill] sm:$0xff]  ;;  %v5903_v25 = vld [vmem:[#allocation18_spill] sm:$0xff] }
  0xcc   :  { %575 = vmatpush.msrb.mxu3 %v5887_v3  ;;  %603 = vmatpush.msra.mxu0 %v2774_v6 }
  0xcd   :  { %576 = vmatmul.f32.vlgmr.msrb.gmra.mxu3 %v494_v50  ;;  %623 = vmatpush.msra.mxu1 %v2779_v7  ;;  %5894 = vst [vmem:[#allocation6_spill] sm:$0xff] %v3404_v55  ;;  %v5899_v50 = vld [vmem:[#allocation13_spill] sm:$0xff] }
  0xce   :  { %645 = vmatpush.msra.mxu2 %v2790_v10  ;;  %663 = vmatpush.msra.mxu3 %v2795_v11 }
  0xcf   :  { %516 = vmatmul.f32.vlgmr.msrb.gmra.mxu0 %v499_v56  ;;  %536 = vmatmul.f32.vlgmr.msrb.gmra.mxu1 %v492_v36  ;;  %v5896_v36 = vld [vmem:[#allocation9_spill] sm:$0xff]  ;;  %v5900_v56 = vld [vmem:[#allocation14_spill] sm:$0xff] }
  0xd0   :  { %604 = vmatpush.msra.mxu0 %v2800_v12  ;;  %624 = vmatpush.msra.mxu1 %v2810_v14 }
  0xd1   :  { %646 = vmatpush.msra.mxu2 %v2815_v15  ;;  %664 = vmatpush.msra.mxu3 %v2820_v16 }
  0xd2   :  { %2471 = vrot.lane.b32.xlu0 %v3373_v44, %s2701_s17  ;;  %605 = vmatpush.msra.mxu0 %v2832_v18  ;;  %v5901_v44 = vld [vmem:[#allocation16_spill] sm:$0xff] }
  0xd3   :  { %625 = vmatpush.msra.mxu1 %v2837_v19  ;;  %647 = vmatpush.msra.mxu2 %v2844_v20 }
  0xd4   :  { %665 = vmatpush.msra.mxu3 %v2849_v21  ;;  %2476 = vrot.lane.b32.xlu1 %v3404_v55, %s2701_s17 }
  0xd5   :  { %606 = vmatpush.msra.mxu0 %v2861_v23  ;;  %626 = vmatpush.msra.mxu1 %v2866_v24 }
  0xd6   :  { %648 = vmatpush.msra.mxu2 %v5895_v5  ;;  %666 = vmatpush.msra.mxu3 %v5896_v36 }
  0xd7   :  { %607 = vmatpush.msra.mxu0 %v2885_v27  ;;  %627 = vmatpush.msra.mxu1 %v5897_v26 }
  0xd8   :  { %649 = vmatpush.msra.mxu2 %v2897_v29  ;;  %667 = vmatpush.msra.mxu3 %v2902_v30 }
  0xd9   :  { %608 = vmatpush.msra.mxu0 %v2913_v32  ;;  %628 = vmatpush.msra.mxu1 %v2918_v33 }
  0xda   :  { %650 = vmatpush.msra.mxu2 %v2927_v34  ;;  %668 = vmatpush.msra.mxu3 %v2932_v35 }
  0xdb   :  { %609 = vmatpush.msra.mxu0 %v5898_v49  ;;  %629 = vmatpush.msra.mxu1 %v2944_v37 }
  0xdc   :  { %651 = vmatpush.msra.mxu2 %v2953_v38  ;;  %669 = vmatpush.msra.mxu3 %v5899_v50 }
  0xdd   :  { %610 = vmatpush.msra.mxu0 %v2965_v40  ;;  %630 = vmatpush.msra.mxu1 %v2972_v41 }
  0xde   :  { %652 = vmatpush.msra.mxu2 %v2977_v42  ;;  %670 = vmatpush.msra.mxu3 %v2984_v43 }
  0xdf   :  { %611 = vmatpush.msra.mxu0 %v5900_v56  ;;  %631 = vmatpush.msra.mxu1 %v2997_v45 }
  0xe0   :  { %653 = vmatpush.msra.mxu2 %v3002_v46  ;;  %671 = vmatpush.msra.mxu3 %v3011_v47  ;;  %v5904_v47 = vld [vmem:[#allocation19_spill] sm:$0xff] }
  0xe1   :  { %612 = vmatpush.msra.mxu0 %v3016_v48  ;;  %632 = vmatpush.msra.mxu1 %v5901_v44 }
  0xe2   :  { %654 = vmatpush.msra.mxu2 %v5902_v39  ;;  %672 = vmatpush.msra.mxu3 %v3035_v51 }
  0xe3   :  { %613 = vmatpush.msra.mxu0 %v3040_v52  ;;  %633 = vmatpush.msra.mxu1 %v3047_v53 }
  0xe4   :  { %655 = vmatpush.msra.mxu2 %v3052_v54  ;;  %673 = vmatpush.msra.mxu3 %v5903_v25 }
  0xe5   :  { %2466 = vrot.lane.b32.xlu2 %v3404_v55, %s2700_s24  ;;  %614 = vmatpush.msra.mxu0 %v5904_v47 }
  0xe6   :  { %634 = vmatpush.msra.mxu1 %v3071_v57  ;;  %656 = vmatpush.msra.mxu2 %v3078_v58 }
  0xe7   :  { %674 = vmatpush.msra.mxu3 %v3083_v59  ;;  %615 = vmatpush.msra.mxu0 %v3091_v60 }
  0xe8   :  { %635 = vmatpush.msra.mxu1 %v3096_v61  ;;  %657 = vmatpush.msra.mxu2 %v5876_v8 }
  0xe9   :  { %675 = vmatpush.msra.mxu3 %v5877_v4  ;;  %616 = vmatpush.msra.mxu0 %v5878_v0 }
  0xea   :  { %636 = vmatpush.msra.mxu1 %v5879_v1  ;;  %658 = vmatpush.msra.mxu2 %v5880_v9 }
  0xeb   :  { %676 = vmatpush.msra.mxu3 %v5881_v22  ;;  %617 = vmatpush.msra.mxu0 %v5882_v31 }
  0xec   :  { %726 = vmatpush.msrb.mxu2 %v2763_v2  ;;  %637 = vmatpush.msra.mxu1 %v5883_v63  ;;  %v2452_v2 = vpop.permute.xlu2 %2451 }
  0xed   :  { %677 = vmatpush.msra.mxu3 %v5884_v13  ;;  %618 = vmatpush.msra.mxu0 %v5885_v17 }
  0xee   :  { %727 = vmatpush.msrb.mxu2 %v5891_v28  ;;  %638 = vmatpush.msra.mxu1 %v5886_v62  ;;  %v3678_v28 = vld [vmem:[%s5676_s3 + $0x1d8] sm:$0xff] }
  0xef   :  { %678 = vmatpush.msra.mxu3 %v5887_v3  ;;  %686 = vmatpush.msrb.mxu0 %v2774_v6  ;;  %v2454_v6 = vunpack.i.h.bf16 %v2452_v2  ;;  %5920 = vst [vmem:[#allocation29_spill] sm:$0xff] %v3678_v28 }
  0xf0   :  { %706 = vmatpush.msrb.mxu1 %v2779_v7  ;;  %728 = vmatpush.msrb.mxu2 %v2790_v10  ;;  %v2453_v7 = vunpack.i.l.bf16 %v2452_v2  ;;  %v2457_v10 = vpop.permute.xlu0 %2456 }
  0xf1   :  { %746 = vmatpush.msrb.mxu3 %v2795_v11  ;;  %687 = vmatpush.msrb.mxu0 %v2800_v12  ;;  %v5905_v11 = vld [vmem:[#allocation15_spill] sm:$0xff]  ;;  %v2458_v12 = vunpack.i.l.bf16 %v2457_v10 }
  0xf2   :  { %707 = vmatpush.msrb.mxu1 %v2810_v14  ;;  %729 = vmatpush.msrb.mxu2 %v2815_v15  ;;  %v596_v14 = vsel %vm594_vm6, %v2453_v7, %v2454_v6  ;;  %v2459_v15 = vunpack.i.h.bf16 %v2457_v10  ;;  %v3741_v10 = vld [vmem:[%s5676_s3 + $0xc0] sm:$0xff] }
  0xf3   :  { %747 = vmatpush.msrb.mxu3 %v2820_v16  ;;  %688 = vmatpush.msrb.mxu0 %v2832_v18 }
  0xf4   :  { %708 = vmatpush.msrb.mxu1 %v2837_v19  ;;  %730 = vmatpush.msrb.mxu2 %v2844_v20  ;;  %v597_v19 = vsel %vm594_vm6, %v2454_v6, %v2458_v12  ;;  %v3729_v6 = vld [vmem:[%s5676_s3 + $0x1c8] sm:$0xff] }
  0xf5   :  { %748 = vmatpush.msrb.mxu3 %v2849_v21  ;;  %689 = vmatpush.msrb.mxu0 %v2861_v23  ;;  %v602_v23 = vsel %vm594_vm6, %v2458_v12, %v2459_v15  ;;  %5928 = vst [vmem:[#allocation13_spill] sm:$0xff] %v3729_v6  ;;  %v3753_v12 = vld [vmem:[%s5676_s3 + $0x1c0] sm:$0xff] }
  0xf6   :  { %709 = vmatpush.msrb.mxu1 %v2866_v24  ;;  %731 = vmatpush.msrb.mxu2 %v5895_v5  ;;  %v3696_v5 = vld [vmem:[%s5676_s3 + $0x140] sm:$0xff] }
  0xf7   :  { %749 = vmatpush.msrb.mxu3 %v5896_v36  ;;  %690 = vmatpush.msrb.mxu0 %v2885_v27  ;;  %v595_v27 = vsel %vm594_vm6, %v2459_v15, %v2453_v7  ;;  %5923 = vst [vmem:[#allocation2_spill] sm:$0xff] %v3696_v5  ;;  %v3702_v36 = vld [vmem:[%s5676_s3 + $0x1d0] sm:$0xff]  ;;  %v3735_v7 = vld [vmem:[%s5676_s3 + $0x40] sm:$0xff]  ;;  %v3766_v15 = vld [vmem:[%s5676_s3 + $0xb8] sm:$0xff] }
  0xf8   :  { %710 = vmatpush.msrb.mxu1 %v5897_v26  ;;  %732 = vmatpush.msrb.mxu2 %v2897_v29  ;;  %5924 = vst [vmem:[#allocation8_spill] sm:$0xff] %v3702_v36  ;;  %v3708_v26 = vld [vmem:[%s5676_s3 + $0x48] sm:$0xff] }
  0xf9   :  { %750 = vmatpush.msrb.mxu3 %v2902_v30  ;;  %691 = vmatpush.msrb.mxu0 %v2913_v32  ;;  %v3533_v32 = vld [vmem:[%s5676_s3 + $0x178] sm:$0xff]  ;;  %5925 = vst [vmem:[#allocation9_spill] sm:$0xff] %v3708_v26 }
  0xfa   :  { %711 = vmatpush.msrb.mxu1 %v2918_v33  ;;  %733 = vmatpush.msrb.mxu2 %v2927_v34  ;;  %v5906_v34 = vld [vmem:[#allocation5_spill] sm:$0xff]  ;;  %5929 = vst [vmem:[#allocation14_spill] sm:$0xff] %v3735_v7 }
  0xfb   :  { %751 = vmatpush.msrb.mxu3 %v2932_v35  ;;  %692 = vmatpush.msrb.mxu0 %v5898_v49 }
  0xfc   :  { %712 = vmatpush.msrb.mxu1 %v2944_v37  ;;  %734 = vmatpush.msrb.mxu2 %v2953_v38  ;;  %v3546_v38 = vld [vmem:[%s5676_s3 + $0x170] sm:$0xff] }
  0xfd   :  { %752 = vmatpush.msrb.mxu3 %v5899_v50  ;;  %693 = vmatpush.msrb.mxu0 %v2965_v40  ;;  %5907 = vst [vmem:[#allocation20_spill] sm:$0xff] %v3546_v38  ;;  %v3716_v50 = vld [vmem:[%s5676_s3 + $0xc8] sm:$0xff] }
  0xfe   :  { %713 = vmatpush.msrb.mxu1 %v2972_v41  ;;  %735 = vmatpush.msrb.mxu2 %v2977_v42  ;;  %v3554_v41 = vld [vmem:[%s5676_s3 + $0x78] sm:$0xff]  ;;  %v5908_v42 = vld [vmem:[#allocation7_spill] sm:$0xff] }
  0xff   :  { %753 = vmatpush.msrb.mxu3 %v2984_v43  ;;  %694 = vmatpush.msrb.mxu0 %v5900_v56  ;;  %v3561_v43 = vld [vmem:[%s5676_s3 + $0xf8] sm:$0xff] }
 0x100   :  { %714 = vmatpush.msrb.mxu1 %v2997_v45  ;;  %736 = vmatpush.msrb.mxu2 %v3002_v46  ;;  %v3722_v56 = vld [vmem:[%s5676_s3 + $0x138] sm:$0xff] }
 0x101   :  { %754 = vmatpush.msrb.mxu3 %v5905_v11  ;;  %695 = vmatpush.msrb.mxu0 %v3016_v48  ;;  %v3573_v48 = vld [vmem:[%s5676_s3 + $0x1f8] sm:$0xff]  ;;  %5927 = vst [vmem:[#allocation12_spill] sm:$0xff] %v3722_v56  ;;  %v3747_v11 = vld [vmem:[%s5676_s3 + $0x130] sm:$0xff] }
 0x102   :  { %715 = vmatpush.msrb.mxu1 %v5901_v44  ;;  %737 = vmatpush.msrb.mxu2 %v5902_v39  ;;  %v253_v21 = vpop.f32.mrf.mxu2  ;;  %v3672_v44 = vld [vmem:[%s5676_s3 + $0x148] sm:$0xff]  ;;  %v3690_v39 = vld [vmem:[%s5676_s3 + $0xd0] sm:$0xff] }
 0x103   :  { %755 = vmatpush.msrb.mxu3 %v3035_v51  ;;  %696 = vmatpush.msrb.mxu0 %v3040_v52  ;;  %v5909_v51 = vld [vmem:[#allocation3_spill] sm:$0xff]  ;;  %v5910_v52 = vld [vmem:[#allocation4_spill] sm:$0xff]  ;;  %5922 = vst [vmem:[#allocation31_spill] sm:$0xff] %v3690_v39 }
 0x104   :  { %716 = vmatpush.msrb.mxu1 %v3047_v53  ;;  %738 = vmatpush.msrb.mxu2 %v3052_v54  ;;  %v213_v16 = vpop.f32.mrf.mxu0  ;;  %v233_v18 = vpop.f32.mrf.mxu1  ;;  %v43_v53 = vlaneseq }
 0x105   :  { %756 = vmatpush.msrb.mxu3 %v5903_v25  ;;  %659 = vmatmul.f32.vlgmr.msra.gmra.mxu2 %v596_v14  ;;  %v234_v20 = vadd.f32 %v233_v18, %v213_v16  ;;  %v3684_v25 = vld [vmem:[%s5676_s3 + $0x50] sm:$0xff]  ;;  %v3759_v14 = vld [vmem:[%s5676_s3 + $0x38] sm:$0xff]  ;;  %v3772_v16 = vld [vmem:[%s5676_s3 + $0x128] sm:$0xff]  ;;  %v5931_v18 = vmov 0 }
 0x106   :  { %697 = vmatpush.msrb.mxu0 %v5904_v47  ;;  %717 = vmatpush.msrb.mxu1 %v3071_v57  ;;  %v3567_v47 = vld [vmem:[%s5676_s3 + $0x168] sm:$0xff]  ;;  %v3583_v57 = vld [vmem:[%s5676_s3 + $0x70] sm:$0xff]  ;;  %5921 = vst [vmem:[#allocation30_spill] sm:$0xff] %v3684_v25 }
 0x107   :  { %739 = vmatpush.msrb.mxu2 %v3078_v58  ;;  %757 = vmatpush.msrb.mxu3 %v3083_v59  ;;  %v254_v24 = vadd.f32 %v253_v21, %v234_v20  ;;  %v3589_v58 = vld [vmem:[%s5676_s3 + $0xf0] sm:$0xff]  ;;  %v3595_v59 = vld [vmem:[%s5676_s3 + $0x160] sm:$0xff]  ;;  %5930 = vst [vmem:[#allocation16_spill] sm:$0xff] %v3772_v16  ;;  %v3787_v20 = vld [vmem:[%s5676_s3 + $0x1b8] sm:$0xff] }
 0x108   :  { %679 = vmatmul.f32.vlgmr.msra.gmra.mxu3 %v597_v19  ;;  %698 = vmatpush.msrb.mxu0 %v3091_v60  ;;  %v3601_v60 = vld [vmem:[%s5676_s3 + $0x1f0] sm:$0xff] }
 0x109   :  { %718 = vmatpush.msrb.mxu1 %v3096_v61  ;;  %740 = vmatpush.msrb.mxu2 %v5876_v8  ;;  %v5911_v61 = vld [vmem:[#allocation11_spill] sm:$0xff]  ;;  %v3793_v21 = vld [vmem:[%s5676_s3 + $0x30] sm:$0xff] }
 0x10a   :  { %758 = vmatpush.msrb.mxu3 %v5877_v4  ;;  %619 = vmatmul.f32.vlgmr.msra.gmra.mxu0 %v602_v23  ;;  %v3609_v8 = vld [vmem:[%s5676_s3 + $0x68] sm:$0xff]  ;;  %5934 = vst [vmem:[#allocation18_spill] sm:$0xff] %v3793_v21  ;;  %v3799_v23 = vld [vmem:[%s5676_s3 + $0xb0] sm:$0xff] }
 0x10b   :  { %639 = vmatmul.f32.vlgmr.msra.gmra.mxu1 %v595_v27  ;;  %699 = vmatpush.msrb.mxu0 %v5878_v0  ;;  %v273_v29 = vpop.f32.mrf.mxu3  ;;  %v3615_v4 = vld [vmem:[%s5676_s3 + $0xe8] sm:$0xff]  ;;  %v3621_v0 = vld [vmem:[%s5676_s3 + $0x158] sm:$0xff]  ;;  %v3811_v27 = vld [vmem:[%s5676_s3 + $0x1b0] sm:$0xff] }
 0x10c   :  { %719 = vmatpush.msrb.mxu1 %v5879_v1  ;;  %741 = vmatpush.msrb.mxu2 %v5880_v9  ;;  %v3527_v30 = vadd.f32 %v273_v29, %v254_v24  ;;  %5912 = vst [vmem:[#allocation21_spill] sm:$0xff] %v3621_v0  ;;  %v3624_v1 = vand.u32 127, %v43_v53  ;;  %v3629_v9 = vld [vmem:[%s5676_s3 + $0x1e8] sm:$0xff]  ;;  %v3805_v24 = vld [vmem:[%s5676_s3 + $0x120] sm:$0xff]  ;;  %v5936_v29 = vmov 0 }
 0x10d   :  { %759 = vmatpush.msrb.mxu3 %v5881_v22  ;;  %700 = vmatpush.msrb.mxu0 %v5882_v31  ;;  %v3635_v22 = vld [vmem:[%s5676_s3 + $0x60] sm:$0xff]  ;;  %5935 = vst [vmem:[#allocation19_spill] sm:$0xff] %v3805_v24 }
 0x10e   :  { %824 = vmatpush.msra.mxu2 %v3533_v32  ;;  %720 = vmatpush.msrb.mxu1 %v5883_v63  ;;  %5913 = vst [vmem:[#allocation22_spill] sm:$0xff] %v3624_v1  ;;  %v3641_v31 = vld [vmem:[%s5676_s3 + $0xe0] sm:$0xff]  ;;  %v3647_v63 = vld [vmem:[%s5676_s3 + $0x150] sm:$0xff]  ;;  %v5741_v2 = vand.u32 7, %v3624_v1 }
 0x10f   :  { %760 = vmatpush.msrb.mxu3 %v5884_v13  ;;  %2486 = vrot.lane.b32.xlu0 %v3404_v55, %s2702_s20  ;;  %v317_v33 = vpop.f32.mrf.mxu0  ;;  %v357_v37 = vpop.f32.mrf.mxu2  ;;  %5914 = vst [vmem:[#allocation23_spill] sm:$0xff] %v3635_v22  ;;  %v3653_v13 = vld [vmem:[%s5676_s3 + $0x1e0] sm:$0xff] }
 0x110   :  { %742 = vmatmul.f32.vlgmr.msrb.gmra.mxu2 %v5906_v34  ;;  %701 = vmatpush.msrb.mxu0 %v5885_v17  ;;  %v337_v35 = vpop.f32.mrf.mxu1  ;;  %5915 = vst [vmem:[#allocation24_spill] sm:$0xff] %v3641_v31  ;;  %v3659_v17 = vld [vmem:[%s5676_s3 + $0x58] sm:$0xff]  ;;  %vm3777_vm8 = vcmp.ge.s32.totalorder %v5741_v2, 1  ;;  %v3857_v53 = vld [vmem:[%s5676_s3 + $0xa0] sm:$0xff]  ;;  %v3893_v34 = vld [vmem:[%s5676_s3 + $0x108] sm:$0xff] }
 0x111   :  { %825 = vmatpush.msra.mxu2 %v3546_v38  ;;  %721 = vmatpush.msrb.mxu1 %v5886_v62  ;;  %v338_v40 = vadd.f32 %v337_v35, %v317_v33  ;;  %5916 = vst [vmem:[#allocation25_spill] sm:$0xff] %v3647_v63  ;;  %v46_v62 = vshra.s32 %v3624_v1, 3  ;;  %v5932_v18 = vsel %vm3777_vm8, 4294967295, %v5931_v18  ;;  %v3827_v35 = vld [vmem:[%s5676_s3 + $0x28] sm:$0xff]  ;;  %v3878_v2 = vld [vmem:[%s5676_s3 + $0x18] sm:$0xff]  ;;  %v3951_v1 = vld [vmem:[%s5676_s3] sm:$0xff] }
 0x112   :  { %761 = vmatpush.msrb.mxu3 %v5887_v3  ;;  %784 = vmatpush.msra.mxu0 %v3554_v41  ;;  %5917 = vst [vmem:[#allocation26_spill] sm:$0xff] %v3653_v13  ;;  %v3666_v3 = vld [vmem:[%s5676_s3 + $0xd8] sm:$0xff] }
 0x113   :  { %762 = vmatmul.f32.vlgmr.msrb.gmra.mxu3 %v5908_v42  ;;  %804 = vmatpush.msra.mxu1 %v3561_v43  ;;  %v358_v45 = vadd.f32 %v357_v37, %v338_v40  ;;  %v377_v46 = vpop.f32.mrf.mxu3  ;;  %5918 = vst [vmem:[#allocation27_spill] sm:$0xff] %v3659_v17  ;;  %v3711_v49 = vand.u32 7, %v46_v62  ;;  %v3833_v37 = vld [vmem:[%s5676_s3 + $0xa8] sm:$0xff]  ;;  %v3839_v40 = vld [vmem:[%s5676_s3 + $0x118] sm:$0xff]  ;;  %v3866_v62 = vld [vmem:[%s5676_s3 + $0x110] sm:$0xff] }
 0x114   :  { %826 = vmatpush.msra.mxu2 %v3567_v47  ;;  %844 = vmatpush.msra.mxu3 %v3573_v48  ;;  %5919 = vst [vmem:[#allocation28_spill] sm:$0xff] %v3666_v3 }
 0x115   :  { %702 = vmatmul.f32.vlgmr.msrb.gmra.mxu0 %v5909_v51  ;;  %722 = vmatmul.f32.vlgmr.msrb.gmra.mxu1 %v5910_v52  ;;  %v3578_v54 = vadd.f32 %v377_v46, %v358_v45  ;;  %5926 = vst [vmem:[#allocation10_spill] sm:$0xff] %v3711_v49  ;;  %vm276_vm7 = vcmp.ge.s32.totalorder %v3711_v49, 1  ;;  %v3845_v45 = vld [vmem:[%s5676_s3 + $0x1a8] sm:$0xff]  ;;  %v3851_v46 = vld [vmem:[%s5676_s3 + $0x20] sm:$0xff]  ;;  %v3899_v52 = vld [vmem:[%s5676_s3 + $0x198] sm:$0xff] }
 0x116   :  { %785 = vmatpush.msra.mxu0 %v3583_v57  ;;  %805 = vmatpush.msra.mxu1 %v3589_v58  ;;  %5933 = vst [vmem:[#allocation17_spill] sm:$0xff] %v5932_v18  ;;  %vm3820_vm9 = vmand %vm276_vm7, %vm3777_vm8  ;;  %v3905_v51 = vld [vmem:[%s5676_s3 + $0x10] sm:$0xff]  ;;  %v3936_v18 = vld [vmem:[%s5676_s3 + $0x88] sm:$0xff] }
 0x117   :  { %827 = vmatpush.msra.mxu2 %v3595_v59  ;;  %845 = vmatpush.msra.mxu3 %v3601_v60  ;;  %v382_v19 = vsel %vm276_vm7, %v3578_v54, 0.0  ;;  %v5937_v29 = vsel %vm3820_vm9, 4294967295, %v5936_v29  ;;  %5939 = vst [vmem:[#allocation32_spill] sm:$0xff] %v3833_v37  ;;  %v281_v54 = vsel %vm3820_vm9, %v3527_v30, 0.0  ;;  %v3884_v30 = vld [vmem:[%s5676_s3 + $0x98] sm:$0xff]  ;;  %v3942_v49 = vld [vmem:[%s5676_s3 + $0x188] sm:$0xff] }
 0x118   :  { %2491 = vrot.lane.b32.xlu1 %v5911_v61, %s2703_s18  ;;  %786 = vmatpush.msra.mxu0 %v3609_v8  ;;  %5938 = vst [vmem:[#allocation15_spill] sm:$0xff] %v5937_v29  ;;  %v1765_v33 = vrot.slane %v382_v19, 4  ;;  %v3872_v19 = vld [vmem:[%s5676_s3 + $0x1a0] sm:$0xff]  ;;  %v3923_v29 = vld [vmem:[%s5676_s3 + $0x190] sm:$0xff] }
 0x119   :  { %806 = vmatpush.msra.mxu1 %v3615_v4  ;;  %828 = vmatpush.msra.mxu2 %v3621_v0  ;;  %5940 = vst [vmem:[#allocation33_spill] sm:$0xff] %v3839_v40 }
 0x11a   :  { %846 = vmatpush.msra.mxu3 %v3629_v9  ;;  %787 = vmatpush.msra.mxu0 %v3635_v22  ;;  %5941 = vst [vmem:[#allocation34_spill] sm:$0xff] %v3845_v45  ;;  %v3888_v42 = vsel %vm1788_vm10, %v281_v54, %v1765_v33  ;;  %v3911_v33 = vld [vmem:[%s5676_s3 + $0x90] sm:$0xff]  ;;  %v3917_v54 = vld [vmem:[%s5676_s3 + $0x100] sm:$0xff] }
 0x11b   :  { %807 = vmatpush.msra.mxu1 %v3641_v31  ;;  %829 = vmatpush.msra.mxu2 %v3647_v63  ;;  %5942 = vst [vmem:[#allocation35_spill] sm:$0xff] %v3851_v46 }
 0x11c   :  { %847 = vmatpush.msra.mxu3 %v3653_v13  ;;  %788 = vmatpush.msra.mxu0 %v3659_v17  ;;  %5943 = vst [vmem:[#allocation36_spill] sm:$0xff] %v3857_v53 }
 0x11d   :  { %808 = vmatpush.msra.mxu1 %v3666_v3  ;;  %830 = vmatpush.msra.mxu2 %v3672_v44  ;;  %5944 = vst [vmem:[#allocation37_spill] sm:$0xff] %v3888_v42  ;;  %v3930_v42 = vld [vmem:[%s5676_s3 + $0x8] sm:$0xff] }
 0x11e   :  { %848 = vmatpush.msra.mxu3 %v3678_v28  ;;  %789 = vmatpush.msra.mxu0 %v3684_v25  ;;  %5945 = vst [vmem:[#allocation38_spill] sm:$0xff] %v3936_v18 }
 0x11f   :  { %809 = vmatpush.msra.mxu1 %v3690_v39  ;;  %831 = vmatpush.msra.mxu2 %v3696_v5 }
 0x120   :  { %849 = vmatpush.msra.mxu3 %v3702_v36  ;;  %790 = vmatpush.msra.mxu0 %v3708_v26 }
 0x121   :  { %810 = vmatpush.msra.mxu1 %v3716_v50  ;;  %832 = vmatpush.msra.mxu2 %v3722_v56 }
 0x122   :  { %850 = vmatpush.msra.mxu3 %v3729_v6  ;;  %791 = vmatpush.msra.mxu0 %v3735_v7 }
 0x123   :  { %811 = vmatpush.msra.mxu1 %v3741_v10  ;;  %833 = vmatpush.msra.mxu2 %v3747_v11 }
 0x124   :  { %851 = vmatpush.msra.mxu3 %v3753_v12  ;;  %792 = vmatpush.msra.mxu0 %v3759_v14 }
 0x125   :  { %812 = vmatpush.msra.mxu1 %v3766_v15  ;;  %834 = vmatpush.msra.mxu2 %v3772_v16 }
 0x126   :  { %852 = vmatpush.msra.mxu3 %v3787_v20  ;;  %793 = vmatpush.msra.mxu0 %v3793_v21 }
 0x127   :  { %813 = vmatpush.msra.mxu1 %v3799_v23  ;;  %835 = vmatpush.msra.mxu2 %v3805_v24 }
 0x128   :  { %853 = vmatpush.msra.mxu3 %v3811_v27  ;;  %2481 = vrot.lane.b32.xlu2 %v5911_v61, %s2702_s20  ;;  %s2705_s20 = smov 110  }
 0x129   :  { %794 = vmatpush.msra.mxu0 %v3827_v35  ;;  %814 = vmatpush.msra.mxu1 %v3833_v37 }
 0x12a   :  { %836 = vmatpush.msra.mxu2 %v3839_v40  ;;  %854 = vmatpush.msra.mxu3 %v3845_v45 }
 0x12b   :  { %795 = vmatpush.msra.mxu0 %v3851_v46  ;;  %815 = vmatpush.msra.mxu1 %v3857_v53 }
 0x12c   :  { %837 = vmatpush.msra.mxu2 %v3866_v62  ;;  %855 = vmatpush.msra.mxu3 %v3872_v19 }
 0x12d   :  { %796 = vmatpush.msra.mxu0 %v3878_v2  ;;  %816 = vmatpush.msra.mxu1 %v3884_v30 }
 0x12e   :  { %838 = vmatpush.msra.mxu2 %v3893_v34  ;;  %856 = vmatpush.msra.mxu3 %v3899_v52 }
 0x12f   :  { %797 = vmatpush.msra.mxu0 %v3905_v51  ;;  %817 = vmatpush.msra.mxu1 %v3911_v33 }
 0x130   :  { %839 = vmatpush.msra.mxu2 %v3917_v54  ;;  %857 = vmatpush.msra.mxu3 %v3923_v29 }
 0x131   :  { %798 = vmatpush.msra.mxu0 %v3930_v42  ;;  %818 = vmatpush.msra.mxu1 %v3936_v18  ;;  %v3957_v18 = vld [vmem:[%s5676_s3 + $0x80] sm:$0xff] }
 0x132   :  { %922 = vmatpush.msrb.mxu2 %v3533_v32  ;;  %858 = vmatpush.msra.mxu3 %v3942_v49 }
 0x133   :  { %2496 = vrot.lane.b32.xlu2 %v3404_v55, %s2703_s18  ;;  %799 = vmatpush.msra.mxu0 %v3951_v1  ;;  %s2704_s18 = smov 111  }
 0x134   :  { %923 = vmatpush.msrb.mxu2 %v3546_v38  ;;  %819 = vmatpush.msra.mxu1 %v3957_v18  ;;  %v3963_v38 = vld [vmem:[%s5676_s3 + $0x180] sm:$0xff] }
 0x135   :  { %859 = vmatpush.msra.mxu3 %v3963_v38  ;;  %882 = vmatpush.msrb.mxu0 %v3554_v41 }
 0x136   :  { %902 = vmatpush.msrb.mxu1 %v3561_v43  ;;  %924 = vmatpush.msrb.mxu2 %v3567_v47 }
 0x137   :  { %942 = vmatpush.msrb.mxu3 %v3573_v48  ;;  %883 = vmatpush.msrb.mxu0 %v3583_v57 }
 0x138   :  { %903 = vmatpush.msrb.mxu1 %v3589_v58  ;;  %925 = vmatpush.msrb.mxu2 %v3595_v59 }
 0x139   :  { %943 = vmatpush.msrb.mxu3 %v3601_v60  ;;  %884 = vmatpush.msrb.mxu0 %v3609_v8 }
 0x13a   :  { %904 = vmatpush.msrb.mxu1 %v3615_v4  ;;  %926 = vmatpush.msrb.mxu2 %v3621_v0 }
 0x13b   :  { %944 = vmatpush.msrb.mxu3 %v3629_v9  ;;  %885 = vmatpush.msrb.mxu0 %v3635_v22 }
 0x13c   :  { %905 = vmatpush.msrb.mxu1 %v3641_v31  ;;  %927 = vmatpush.msrb.mxu2 %v3647_v63 }
 0x13d   :  { %945 = vmatpush.msrb.mxu3 %v3653_v13  ;;  %886 = vmatpush.msrb.mxu0 %v3659_v17  ;;  %v2462_v17 = vpop.permute.xlu1 %2461 }
 0x13e   :  { %906 = vmatpush.msrb.mxu1 %v3666_v3  ;;  %928 = vmatpush.msrb.mxu2 %v3672_v44 }
 0x13f   :  { %946 = vmatpush.msrb.mxu3 %v3678_v28  ;;  %887 = vmatpush.msrb.mxu0 %v3684_v25  ;;  %v418_v0 = vpop.f32.mrf.mxu0  ;;  %v2467_v28 = vpop.permute.xlu2 %2466 }
 0x140   :  { %907 = vmatpush.msrb.mxu1 %v3690_v39  ;;  %929 = vmatpush.msrb.mxu2 %v3696_v5  ;;  %v438_v31 = vpop.f32.mrf.mxu1  ;;  %v458_v22 = vpop.f32.mrf.mxu2  ;;  %v2464_v5 = vunpack.i.h.bf16 %v2462_v17 }
 0x141   :  { %947 = vmatpush.msrb.mxu3 %v3702_v36  ;;  %888 = vmatpush.msrb.mxu0 %v3708_v26  ;;  %v439_v13 = vadd.f32 %v438_v31, %v418_v0  ;;  %v2463_v36 = vunpack.i.l.bf16 %v2462_v17 }
 0x142   :  { %908 = vmatpush.msrb.mxu1 %v3716_v50  ;;  %930 = vmatpush.msrb.mxu2 %v3722_v56 }
 0x143   :  { %948 = vmatpush.msrb.mxu3 %v3729_v6  ;;  %889 = vmatpush.msrb.mxu0 %v3735_v7  ;;  %v459_v25 = vadd.f32 %v458_v22, %v439_v13  ;;  %v478_v39 = vpop.f32.mrf.mxu3  ;;  %v2468_v22 = vunpack.i.l.bf16 %v2467_v28  ;;  %v777_v31 = vsel %vm774_vm11, %v2463_v36, %v2464_v5  ;;  %v2469_v13 = vunpack.i.h.bf16 %v2467_v28 }
 0x144   :  { %909 = vmatpush.msrb.mxu1 %v3741_v10  ;;  %931 = vmatpush.msrb.mxu2 %v3747_v11 }
 0x145   :  { %949 = vmatpush.msrb.mxu3 %v3753_v12  ;;  %890 = vmatpush.msrb.mxu0 %v3759_v14  ;;  %v3999_v0 = vadd.f32 %v478_v39, %v459_v25  ;;  %v783_v17 = vsel %vm774_vm11, %v2464_v5, %v2468_v22  ;;  %v2472_v25 = vpop.permute.xlu0 %2471  ;;  %v775_v28 = vsel %vm774_vm11, %v2468_v22, %v2469_v13 }
 0x146   :  { %910 = vmatpush.msrb.mxu1 %v3766_v15  ;;  %932 = vmatpush.msrb.mxu2 %v3772_v16  ;;  %v776_v5 = vsel %vm774_vm11, %v2469_v13, %v2463_v36  ;;  %v5946_v13 = vld [vmem:[#allocation38_spill] sm:$0xff]  ;;  %vm1470_vm11 = vcmask 785408  }
 0x147   :  { %950 = vmatpush.msrb.mxu3 %v3787_v20  ;;  %891 = vmatpush.msrb.mxu0 %v3793_v21 }
 0x148   :  { %911 = vmatpush.msrb.mxu1 %v3799_v23  ;;  %933 = vmatpush.msrb.mxu2 %v3805_v24 }
 0x149   :  { %951 = vmatpush.msrb.mxu3 %v3811_v27  ;;  %892 = vmatpush.msrb.mxu0 %v3827_v35 }
 0x14a   :  { %912 = vmatpush.msrb.mxu1 %v3833_v37  ;;  %934 = vmatpush.msrb.mxu2 %v3839_v40 }
 0x14b   :  { %952 = vmatpush.msrb.mxu3 %v3845_v45  ;;  %840 = vmatmul.f32.vlgmr.msra.gmra.mxu2 %v777_v31  ;;  %v2474_v31 = vunpack.i.h.bf16 %v2472_v25 }
 0x14c   :  { %893 = vmatpush.msrb.mxu0 %v3851_v46  ;;  %913 = vmatpush.msrb.mxu1 %v3857_v53  ;;  %v517_v39 = vpop.f32.mrf.mxu0  ;;  %v537_v24 = vpop.f32.mrf.mxu1  ;;  %v2473_v53 = vunpack.i.l.bf16 %v2472_v25 }
 0x14d   :  { %935 = vmatpush.msrb.mxu2 %v3866_v62  ;;  %953 = vmatpush.msrb.mxu3 %v3872_v19  ;;  %v538_v37 = vadd.f32 %v537_v24, %v517_v39  ;;  %v557_v40 = vpop.f32.mrf.mxu2  ;;  %v2477_v46 = vpop.permute.xlu1 %2476  ;;  %v5949_v39 = vmov 0 }
 0x14e   :  { %860 = vmatmul.f32.vlgmr.msra.gmra.mxu3 %v783_v17  ;;  %894 = vmatpush.msrb.mxu0 %v3878_v2  ;;  %v2478_v36 = vunpack.i.l.bf16 %v2477_v46  ;;  %v5947_v17 = vld [vmem:[#allocation22_spill] sm:$0xff] }
 0x14f   :  { %914 = vmatpush.msrb.mxu1 %v3884_v30  ;;  %936 = vmatpush.msrb.mxu2 %v3893_v34  ;;  %v558_v45 = vadd.f32 %v557_v40, %v538_v37  ;;  %v875_v37 = vsel %vm872_vm12, %v2473_v53, %v2474_v31  ;;  %v2479_v40 = vunpack.i.h.bf16 %v2477_v46  ;;  %v5948_v25 = vand.u32 7, %v5947_v17  ;;  %v5952_v46 = vld [vmem:[#allocation20_spill] sm:$0xff]  ;;  %v5960_v17 = vld [vmem:[#allocation26_spill] sm:$0xff] }
 0x150   :  { %954 = vmatpush.msrb.mxu3 %v3899_v52  ;;  %800 = vmatmul.f32.vlgmr.msra.gmra.mxu0 %v775_v28  ;;  %v577_v22 = vpop.f32.mrf.mxu3 }
 0x151   :  { %820 = vmatmul.f32.vlgmr.msra.gmra.mxu1 %v776_v5  ;;  %895 = vmatpush.msrb.mxu0 %v3905_v51  ;;  %v578_v24 = vadd.f32 %v577_v22, %v558_v45  ;;  %v881_v45 = vsel %vm872_vm12, %v2474_v31, %v2478_v36  ;;  %vm4038_vm13 = vcmp.le.s32.totalorder %v5948_v25, 6  ;;  %v873_v28 = vsel %vm872_vm12, %v2478_v36, %v2479_v40  ;;  %v5957_v36 = vld [vmem:[#allocation21_spill] sm:$0xff]  ;;  %v5961_v25 = vld [vmem:[#allocation27_spill] sm:$0xff]  ;;  %v5967_v31 = vld [vmem:[#allocation8_spill] sm:$0xff] }
 0x152   :  { %915 = vmatpush.msrb.mxu1 %v3911_v33  ;;  %937 = vmatpush.msrb.mxu2 %v3917_v54  ;;  %v5950_v39 = vsel %vm4038_vm13, 4294967295, %v5949_v39  ;;  %v874_v5 = vsel %vm872_vm12, %v2479_v40, %v2473_v53  ;;  %vm4053_vm14 = vmand %vm276_vm7, %vm4038_vm13  ;;  %v5954_v22 = vmov 0  ;;  %v5959_v40 = vld [vmem:[#allocation24_spill] sm:$0xff]  ;;  %vm1571_vm12 = vcmask 777216  }
 0x153   :  { %955 = vmatpush.msrb.mxu3 %v3923_v29  ;;  %2501 = vrot.lane.b32.xlu0 %v5911_v61, %s2704_s18  ;;  %5951 = vst [vmem:[#allocation38_spill] sm:$0xff] %v5950_v39  ;;  %v5955_v22 = vsel %vm4053_vm14, 4294967295, %v5954_v22  ;;  %v584_v53 = vsel %vm4053_vm14, %v578_v24, 0.0  ;;  %v5958_v24 = vld [vmem:[#allocation23_spill] sm:$0xff]  ;;  %v5971_v39 = vld [vmem:[#allocation34_spill] sm:$0xff] }
 0x154   :  { %1023 = vmatpush.msra.mxu2 %v3533_v32  ;;  %896 = vmatpush.msrb.mxu0 %v3930_v42  ;;  %5956 = vst [vmem:[#allocation22_spill] sm:$0xff] %v5955_v22  ;;  %v5965_v22 = vld [vmem:[#allocation31_spill] sm:$0xff] }
 0x155   :  { %916 = vmatpush.msrb.mxu1 %v5946_v13  ;;  %956 = vmatpush.msrb.mxu3 %v3942_v49 }
 0x156   :  { %2506 = vrot.lane.b32.xlu1 %v3404_v55, %s2704_s18  ;;  %938 = vmatmul.f32.vlgmr.msrb.gmra.mxu2 %v875_v37  ;;  %v1768_v37 = vrot.slane %v584_v53, 4  ;;  %v5964_v53 = vld [vmem:[#allocation30_spill] sm:$0xff]  ;;  %s2715_s18 = smov 8  }
 0x157   :  { %1024 = vmatpush.msra.mxu2 %v5952_v46  ;;  %897 = vmatpush.msrb.mxu0 %v3951_v1 }
 0x158   :  { %917 = vmatpush.msrb.mxu1 %v3957_v18  ;;  %957 = vmatpush.msrb.mxu3 %v3963_v38 }
 0x159   :  { %958 = vmatmul.f32.vlgmr.msrb.gmra.mxu3 %v881_v45  ;;  %983 = vmatpush.msra.mxu0 %v3554_v41  ;;  %v481_v45 = vsel %vm276_vm7, %v3999_v0, 0.0  ;;  %v5966_v0 = vld [vmem:[#allocation2_spill] sm:$0xff] }
 0x15a   :  { %1003 = vmatpush.msra.mxu1 %v3561_v43  ;;  %1025 = vmatpush.msra.mxu2 %v3567_v47 }
 0x15b   :  { %1043 = vmatpush.msra.mxu3 %v3573_v48  ;;  %898 = vmatmul.f32.vlgmr.msrb.gmra.mxu0 %v873_v28  ;;  %v4082_v28 = vsel %vm1788_vm10, %v481_v45, %v1768_v37  ;;  %v5968_v37 = vld [vmem:[#allocation19_spill] sm:$0xff]  ;;  %v5969_v45 = vld [vmem:[#allocation32_spill] sm:$0xff] }
 0x15c   :  { %918 = vmatmul.f32.vlgmr.msrb.gmra.mxu1 %v874_v5  ;;  %984 = vmatpush.msra.mxu0 %v3583_v57  ;;  %5962 = vst [vmem:[#allocation20_spill] sm:$0xff] %v4082_v28  ;;  %v5963_v5 = vld [vmem:[#allocation29_spill] sm:$0xff] }
 0x15d   :  { %1004 = vmatpush.msra.mxu1 %v3589_v58  ;;  %1026 = vmatpush.msra.mxu2 %v3595_v59  ;;  %v5970_v28 = vld [vmem:[#allocation33_spill] sm:$0xff] }
 0x15e   :  { %1044 = vmatpush.msra.mxu3 %v3601_v60  ;;  %985 = vmatpush.msra.mxu0 %v3609_v8 }
 0x15f   :  { %1005 = vmatpush.msra.mxu1 %v3615_v4  ;;  %1027 = vmatpush.msra.mxu2 %v5957_v36 }
 0x160   :  { %1045 = vmatpush.msra.mxu3 %v3629_v9  ;;  %2516 = vrot.lane.b32.xlu0 %v3404_v55, %s2705_s20  ;;  %v5972_v55 = vld [vmem:[#allocation35_spill] sm:$0xff] }
 0x161   :  { %986 = vmatpush.msra.mxu0 %v5958_v24  ;;  %1006 = vmatpush.msra.mxu1 %v5959_v40 }
 0x162   :  { %1028 = vmatpush.msra.mxu2 %v3647_v63  ;;  %1046 = vmatpush.msra.mxu3 %v5960_v17 }
 0x163   :  { %987 = vmatpush.msra.mxu0 %v5961_v25  ;;  %1007 = vmatpush.msra.mxu1 %v3666_v3 }
 0x164   :  { %1029 = vmatpush.msra.mxu2 %v3672_v44  ;;  %1047 = vmatpush.msra.mxu3 %v5963_v5 }
 0x165   :  { %988 = vmatpush.msra.mxu0 %v5964_v53  ;;  %1008 = vmatpush.msra.mxu1 %v5965_v22 }
 0x166   :  { %1030 = vmatpush.msra.mxu2 %v5966_v0  ;;  %1048 = vmatpush.msra.mxu3 %v5967_v31 }
 0x167   :  { %989 = vmatpush.msra.mxu0 %v3708_v26  ;;  %1009 = vmatpush.msra.mxu1 %v3716_v50 }
 0x168   :  { %1031 = vmatpush.msra.mxu2 %v3722_v56  ;;  %1049 = vmatpush.msra.mxu3 %v3729_v6 }
 0x169   :  { %990 = vmatpush.msra.mxu0 %v3735_v7  ;;  %1010 = vmatpush.msra.mxu1 %v3741_v10 }
 0x16a   :  { %1032 = vmatpush.msra.mxu2 %v3747_v11  ;;  %1050 = vmatpush.msra.mxu3 %v3753_v12 }
 0x16b   :  { %991 = vmatpush.msra.mxu0 %v3759_v14  ;;  %1011 = vmatpush.msra.mxu1 %v3766_v15 }
 0x16c   :  { %1033 = vmatpush.msra.mxu2 %v3772_v16  ;;  %1051 = vmatpush.msra.mxu3 %v3787_v20  ;;  %v5973_v16 = vld [vmem:[#allocation36_spill] sm:$0xff] }
 0x16d   :  { %992 = vmatpush.msra.mxu0 %v3793_v21  ;;  %1012 = vmatpush.msra.mxu1 %v3799_v23 }
 0x16e   :  { %1034 = vmatpush.msra.mxu2 %v5968_v37  ;;  %1052 = vmatpush.msra.mxu3 %v3811_v27 }
 0x16f   :  { %993 = vmatpush.msra.mxu0 %v3827_v35  ;;  %1013 = vmatpush.msra.mxu1 %v5969_v45 }
 0x170   :  { %1035 = vmatpush.msra.mxu2 %v5970_v28  ;;  %1053 = vmatpush.msra.mxu3 %v5971_v39 }
 0x171   :  { %994 = vmatpush.msra.mxu0 %v5972_v55  ;;  %1014 = vmatpush.msra.mxu1 %v5973_v16 }
 0x172   :  { %1036 = vmatpush.msra.mxu2 %v3866_v62  ;;  %1054 = vmatpush.msra.mxu3 %v3872_v19 }
 0x173   :  { %995 = vmatpush.msra.mxu0 %v3878_v2  ;;  %1015 = vmatpush.msra.mxu1 %v3884_v30 }
 0x174   :  { %1037 = vmatpush.msra.mxu2 %v3893_v34  ;;  %1055 = vmatpush.msra.mxu3 %v3899_v52 }
 0x175   :  { %996 = vmatpush.msra.mxu0 %v3905_v51  ;;  %1016 = vmatpush.msra.mxu1 %v3911_v33 }
 0x176   :  { %1038 = vmatpush.msra.mxu2 %v3917_v54  ;;  %1056 = vmatpush.msra.mxu3 %v3923_v29 }
 0x177   :  { %2511 = vrot.lane.b32.xlu2 %v5911_v61, %s2705_s20  ;;  %997 = vmatpush.msra.mxu0 %v3930_v42 }
 0x178   :  { %1122 = vmatpush.msrb.mxu2 %v3533_v32  ;;  %1017 = vmatpush.msra.mxu1 %v5946_v13 }
 0x179   :  { %1057 = vmatpush.msra.mxu3 %v3942_v49  ;;  %998 = vmatpush.msra.mxu0 %v3951_v1 }
 0x17a   :  { %1123 = vmatpush.msrb.mxu2 %v5952_v46  ;;  %1018 = vmatpush.msra.mxu1 %v3957_v18 }
 0x17b   :  { %1058 = vmatpush.msra.mxu3 %v3963_v38  ;;  %1082 = vmatpush.msrb.mxu0 %v3554_v41 }
 0x17c   :  { %1102 = vmatpush.msrb.mxu1 %v3561_v43  ;;  %1124 = vmatpush.msrb.mxu2 %v3567_v47 }
 0x17d   :  { %1142 = vmatpush.msrb.mxu3 %v3573_v48  ;;  %1083 = vmatpush.msrb.mxu0 %v3583_v57 }
 0x17e   :  { %1103 = vmatpush.msrb.mxu1 %v3589_v58  ;;  %1125 = vmatpush.msrb.mxu2 %v3595_v59 }
 0x17f   :  { %1143 = vmatpush.msrb.mxu3 %v3601_v60  ;;  %1084 = vmatpush.msrb.mxu0 %v3609_v8 }
 0x180   :  { %1104 = vmatpush.msrb.mxu1 %v3615_v4  ;;  %1126 = vmatpush.msrb.mxu2 %v5957_v36 }
 0x181   :  { %1144 = vmatpush.msrb.mxu3 %v3629_v9  ;;  %1085 = vmatpush.msrb.mxu0 %v5958_v24 }
 0x182   :  { %1105 = vmatpush.msrb.mxu1 %v5959_v40  ;;  %1127 = vmatpush.msrb.mxu2 %v3647_v63  ;;  %v2482_v63 = vpop.permute.xlu2 %2481 }
 0x183   :  { %1145 = vmatpush.msrb.mxu3 %v5960_v17  ;;  %1086 = vmatpush.msrb.mxu0 %v5961_v25 }
 0x184   :  { %1106 = vmatpush.msrb.mxu1 %v3666_v3  ;;  %1128 = vmatpush.msrb.mxu2 %v3672_v44 }
 0x185   :  { %1146 = vmatpush.msrb.mxu3 %v5963_v5  ;;  %1087 = vmatpush.msrb.mxu0 %v5964_v53 }
 0x186   :  { %1107 = vmatpush.msrb.mxu1 %v5965_v22  ;;  %1129 = vmatpush.msrb.mxu2 %v5966_v0  ;;  %v2483_v0 = vunpack.i.l.bf16 %v2482_v63 }
 0x187   :  { %1147 = vmatpush.msrb.mxu3 %v5967_v31  ;;  %1088 = vmatpush.msrb.mxu0 %v3708_v26  ;;  %v620_v3 = vpop.f32.mrf.mxu0  ;;  %v2484_v31 = vunpack.i.h.bf16 %v2482_v63  ;;  %v2487_v26 = vpop.permute.xlu0 %2486 }
 0x188   :  { %1108 = vmatpush.msrb.mxu1 %v3716_v50  ;;  %1130 = vmatpush.msrb.mxu2 %v3722_v56  ;;  %v640_v25 = vpop.f32.mrf.mxu1  ;;  %v660_v5 = vpop.f32.mrf.mxu2 }
 0x189   :  { %1148 = vmatpush.msrb.mxu3 %v3729_v6  ;;  %1089 = vmatpush.msrb.mxu0 %v3735_v7  ;;  %v641_v53 = vadd.f32 %v640_v25, %v620_v3  ;;  %v5974_v6 = vld [vmem:[#allocation16_spill] sm:$0xff]  ;;  %v2488_v3 = vunpack.i.l.bf16 %v2487_v26  ;;  %v976_v63 = vsel %vm973_vm15, %v2483_v0, %v2484_v31 }
 0x18a   :  { %1109 = vmatpush.msrb.mxu1 %v3741_v10  ;;  %1131 = vmatpush.msrb.mxu2 %v3747_v11 }
 0x18b   :  { %1149 = vmatpush.msrb.mxu3 %v3753_v12  ;;  %1090 = vmatpush.msrb.mxu0 %v3759_v14  ;;  %v661_v56 = vadd.f32 %v660_v5, %v641_v53  ;;  %v680_v7 = vpop.f32.mrf.mxu3  ;;  %v2489_v5 = vunpack.i.h.bf16 %v2487_v26 }
 0x18c   :  { %1110 = vmatpush.msrb.mxu1 %v3766_v15  ;;  %1132 = vmatpush.msrb.mxu2 %v5974_v6 }
 0x18d   :  { %1150 = vmatpush.msrb.mxu3 %v3787_v20  ;;  %1091 = vmatpush.msrb.mxu0 %v3793_v21  ;;  %v4169_v25 = vadd.f32 %v680_v7, %v661_v56  ;;  %v982_v56 = vsel %vm973_vm15, %v2484_v31, %v2488_v3  ;;  %v2492_v7 = vpop.permute.xlu1 %2491  ;;  %v974_v26 = vsel %vm973_vm15, %v2488_v3, %v2489_v5 }
 0x18e   :  { %1111 = vmatpush.msrb.mxu1 %v3799_v23  ;;  %1133 = vmatpush.msrb.mxu2 %v5968_v37  ;;  %v975_v31 = vsel %vm973_vm15, %v2489_v5, %v2483_v0  ;;  %vm1670_vm15 = vcmask 769024  }
 0x18f   :  { %1151 = vmatpush.msrb.mxu3 %v3811_v27  ;;  %1092 = vmatpush.msrb.mxu0 %v3827_v35 }
 0x190   :  { %1112 = vmatpush.msrb.mxu1 %v5969_v45  ;;  %1134 = vmatpush.msrb.mxu2 %v5970_v28 }
 0x191   :  { %1152 = vmatpush.msrb.mxu3 %v5971_v39  ;;  %1039 = vmatmul.f32.vlgmr.msra.gmra.mxu2 %v976_v63  ;;  %v2494_v63 = vunpack.i.h.bf16 %v2492_v7 }
 0x192   :  { %1093 = vmatpush.msrb.mxu0 %v5972_v55  ;;  %1113 = vmatpush.msrb.mxu1 %v5973_v16  ;;  %v703_v53 = vpop.f32.mrf.mxu0  ;;  %v723_v37 = vpop.f32.mrf.mxu1  ;;  %v2493_v16 = vunpack.i.l.bf16 %v2492_v7  ;;  %v5992_v7 = vld [vmem:[#allocation34_spill] sm:$0xff] }
 0x193   :  { %1135 = vmatpush.msrb.mxu2 %v3866_v62  ;;  %1153 = vmatpush.msrb.mxu3 %v3872_v19  ;;  %v724_v45 = vadd.f32 %v723_v37, %v703_v53  ;;  %v743_v28 = vpop.f32.mrf.mxu2  ;;  %v2497_v55 = vpop.permute.xlu2 %2496  ;;  %v685_v53 = vsel %vm3777_vm8, %v4169_v25, 0.0  ;;  %v5978_v25 = vld [vmem:[#allocation25_spill] sm:$0xff] }
 0x194   :  { %1059 = vmatmul.f32.vlgmr.msra.gmra.mxu3 %v982_v56  ;;  %1094 = vmatpush.msrb.mxu0 %v3878_v2  ;;  %v2498_v0 = vunpack.i.l.bf16 %v2497_v55 }
 0x195   :  { %1114 = vmatpush.msrb.mxu1 %v3884_v30  ;;  %1136 = vmatpush.msrb.mxu2 %v3893_v34  ;;  %v744_v39 = vadd.f32 %v743_v28, %v724_v45  ;;  %v1075_v28 = vsel %vm1072_vm0, %v2493_v16, %v2494_v63  ;;  %v2499_v45 = vunpack.i.h.bf16 %v2497_v55 }
 0x196   :  { %1154 = vmatpush.msrb.mxu3 %v3899_v52  ;;  %999 = vmatmul.f32.vlgmr.msra.gmra.mxu0 %v974_v26  ;;  %v763_v3 = vpop.f32.mrf.mxu3 }
 0x197   :  { %1019 = vmatmul.f32.vlgmr.msra.gmra.mxu1 %v975_v31  ;;  %1095 = vmatpush.msrb.mxu0 %v3905_v51  ;;  %v764_v37 = vadd.f32 %v763_v3, %v744_v39  ;;  %v1081_v39 = vsel %vm1072_vm0, %v2494_v63, %v2498_v0  ;;  %v1073_v55 = vsel %vm1072_vm0, %v2498_v0, %v2499_v45  ;;  %v5979_v31 = vld [vmem:[#allocation27_spill] sm:$0xff]  ;;  %v5980_v63 = vld [vmem:[#allocation28_spill] sm:$0xff]  ;;  %v5981_v3 = vld [vmem:[#allocation29_spill] sm:$0xff] }
 0x198   :  { %1115 = vmatpush.msrb.mxu1 %v3911_v33  ;;  %1137 = vmatpush.msrb.mxu2 %v3917_v54  ;;  %v1074_v56 = vsel %vm1072_vm0, %v2499_v45, %v2493_v16  ;;  %v5977_v16 = vld [vmem:[#allocation6_spill] sm:$0xff]  ;;  %v5985_v45 = vld [vmem:[#allocation9_spill] sm:$0xff] }
 0x199   :  { %1155 = vmatpush.msrb.mxu3 %v3923_v29  ;;  %2521 = vrot.lane.b32.xlu1 %v5911_v61, %s2706_s9  ;;  %v1771_v5 = vrot.slane %v764_v37, 4  ;;  %v5982_v37 = vld [vmem:[#allocation30_spill] sm:$0xff] }
 0x19a   :  { %1220 = vmatpush.msra.mxu2 %v3533_v32  ;;  %1096 = vmatpush.msrb.mxu0 %v3930_v42  ;;  %v5983_v0 = vld [vmem:[#allocation2_spill] sm:$0xff] }
 0x19b   :  { %1116 = vmatpush.msrb.mxu1 %v5946_v13  ;;  %1156 = vmatpush.msrb.mxu3 %v3942_v49  ;;  %v4216_v26 = vsel %vm1788_vm10, %v685_v53, %v1771_v5  ;;  %v5987_v5 = vld [vmem:[#allocation13_spill] sm:$0xff]  ;;  %v5990_v53 = vld [vmem:[#allocation32_spill] sm:$0xff] }
 0x19c   :  { %1138 = vmatmul.f32.vlgmr.msrb.gmra.mxu2 %v1075_v28  ;;  %1097 = vmatpush.msrb.mxu0 %v3951_v1  ;;  %5976 = vst [vmem:[#allocation21_spill] sm:$0xff] %v4216_v26  ;;  %v5984_v28 = vld [vmem:[#allocation8_spill] sm:$0xff]  ;;  %v5991_v26 = vld [vmem:[#allocation33_spill] sm:$0xff] }
 0x19d   :  { %1221 = vmatpush.msra.mxu2 %v5952_v46  ;;  %1117 = vmatpush.msrb.mxu1 %v3957_v18 }
 0x19e   :  { %1157 = vmatpush.msrb.mxu3 %v3963_v38  ;;  %1180 = vmatpush.msra.mxu0 %v3554_v41 }
 0x19f   :  { %1158 = vmatmul.f32.vlgmr.msrb.gmra.mxu3 %v1081_v39  ;;  %1200 = vmatpush.msra.mxu1 %v3561_v43  ;;  %v5986_v39 = vld [vmem:[#allocation12_spill] sm:$0xff] }
 0x1a0   :  { %1222 = vmatpush.msra.mxu2 %v3567_v47  ;;  %1240 = vmatpush.msra.mxu3 %v3573_v48 }
 0x1a1   :  { %1098 = vmatmul.f32.vlgmr.msrb.gmra.mxu0 %v1073_v55  ;;  %1118 = vmatmul.f32.vlgmr.msrb.gmra.mxu1 %v1074_v56  ;;  %v5988_v55 = vld [vmem:[#allocation14_spill] sm:$0xff]  ;;  %v5989_v56 = vld [vmem:[#allocation19_spill] sm:$0xff] }
 0x1a2   :  { %1181 = vmatpush.msra.mxu0 %v3583_v57  ;;  %1201 = vmatpush.msra.mxu1 %v3589_v58 }
 0x1a3   :  { %1223 = vmatpush.msra.mxu2 %v3595_v59  ;;  %1241 = vmatpush.msra.mxu3 %v3601_v60 }
 0x1a4   :  { %2531 = vrot.lane.b32.xlu0 %v5911_v61, %s2707_s10  ;;  %1182 = vmatpush.msra.mxu0 %v3609_v8  ;;  %v5993_v61 = vld [vmem:[#allocation35_spill] sm:$0xff] }
 0x1a5   :  { %1202 = vmatpush.msra.mxu1 %v3615_v4  ;;  %1224 = vmatpush.msra.mxu2 %v5957_v36 }
 0x1a6   :  { %1242 = vmatpush.msra.mxu3 %v3629_v9  ;;  %2536 = vrot.lane.b32.xlu1 %v5977_v16, %s2707_s10 }
 0x1a7   :  { %1183 = vmatpush.msra.mxu0 %v5958_v24  ;;  %1203 = vmatpush.msra.mxu1 %v5959_v40 }
 0x1a8   :  { %1225 = vmatpush.msra.mxu2 %v5978_v25  ;;  %1243 = vmatpush.msra.mxu3 %v5960_v17 }
 0x1a9   :  { %1184 = vmatpush.msra.mxu0 %v5979_v31  ;;  %1204 = vmatpush.msra.mxu1 %v5980_v63 }
 0x1aa   :  { %1226 = vmatpush.msra.mxu2 %v3672_v44  ;;  %1244 = vmatpush.msra.mxu3 %v5981_v3 }
 0x1ab   :  { %1185 = vmatpush.msra.mxu0 %v5982_v37  ;;  %1205 = vmatpush.msra.mxu1 %v5965_v22 }
 0x1ac   :  { %1227 = vmatpush.msra.mxu2 %v5983_v0  ;;  %1245 = vmatpush.msra.mxu3 %v5984_v28 }
 0x1ad   :  { %1186 = vmatpush.msra.mxu0 %v5985_v45  ;;  %1206 = vmatpush.msra.mxu1 %v3716_v50 }
 0x1ae   :  { %1228 = vmatpush.msra.mxu2 %v5986_v39  ;;  %1246 = vmatpush.msra.mxu3 %v5987_v5 }
 0x1af   :  { %1187 = vmatpush.msra.mxu0 %v5988_v55  ;;  %1207 = vmatpush.msra.mxu1 %v3741_v10 }
 0x1b0   :  { %1229 = vmatpush.msra.mxu2 %v3747_v11  ;;  %1247 = vmatpush.msra.mxu3 %v3753_v12 }
 0x1b1   :  { %1188 = vmatpush.msra.mxu0 %v3759_v14  ;;  %1208 = vmatpush.msra.mxu1 %v3766_v15 }
 0x1b2   :  { %1230 = vmatpush.msra.mxu2 %v5974_v6  ;;  %1248 = vmatpush.msra.mxu3 %v3787_v20 }
 0x1b3   :  { %1189 = vmatpush.msra.mxu0 %v3793_v21  ;;  %1209 = vmatpush.msra.mxu1 %v3799_v23  ;;  %v5994_v21 = vld [vmem:[#allocation36_spill] sm:$0xff] }
 0x1b4   :  { %1231 = vmatpush.msra.mxu2 %v5989_v56  ;;  %1249 = vmatpush.msra.mxu3 %v3811_v27 }
 0x1b5   :  { %1190 = vmatpush.msra.mxu0 %v3827_v35  ;;  %1210 = vmatpush.msra.mxu1 %v5990_v53 }
 0x1b6   :  { %1232 = vmatpush.msra.mxu2 %v5991_v26  ;;  %1250 = vmatpush.msra.mxu3 %v5992_v7 }
 0x1b7   :  { %2526 = vrot.lane.b32.xlu2 %v5977_v16, %s2706_s9  ;;  %1191 = vmatpush.msra.mxu0 %v5993_v61 }
 0x1b8   :  { %1211 = vmatpush.msra.mxu1 %v5994_v21  ;;  %1233 = vmatpush.msra.mxu2 %v3866_v62 }
 0x1b9   :  { %1251 = vmatpush.msra.mxu3 %v3872_v19  ;;  %1192 = vmatpush.msra.mxu0 %v3878_v2 }
 0x1ba   :  { %1212 = vmatpush.msra.mxu1 %v3884_v30  ;;  %1234 = vmatpush.msra.mxu2 %v3893_v34 }
 0x1bb   :  { %1252 = vmatpush.msra.mxu3 %v3899_v52  ;;  %1193 = vmatpush.msra.mxu0 %v3905_v51 }
 0x1bc   :  { %1213 = vmatpush.msra.mxu1 %v3911_v33  ;;  %1235 = vmatpush.msra.mxu2 %v3917_v54 }
 0x1bd   :  { %1253 = vmatpush.msra.mxu3 %v3923_v29  ;;  %1194 = vmatpush.msra.mxu0 %v3930_v42 }
 0x1be   :  { %1318 = vmatpush.msrb.mxu2 %v3533_v32  ;;  %1214 = vmatpush.msra.mxu1 %v5946_v13 }
 0x1bf   :  { %1254 = vmatpush.msra.mxu3 %v3942_v49  ;;  %1195 = vmatpush.msra.mxu0 %v3951_v1 }
 0x1c0   :  { %1319 = vmatpush.msrb.mxu2 %v5952_v46  ;;  %1215 = vmatpush.msra.mxu1 %v3957_v18  ;;  %v4348_v46 = vld [vmem:[%s5676_s3 + $0x178] sm:$0xff] }
 0x1c1   :  { %1255 = vmatpush.msra.mxu3 %v3963_v38  ;;  %1278 = vmatpush.msrb.mxu0 %v3554_v41 }
 0x1c2   :  { %1298 = vmatpush.msrb.mxu1 %v3561_v43  ;;  %1320 = vmatpush.msrb.mxu2 %v3567_v47 }
 0x1c3   :  { %1338 = vmatpush.msrb.mxu3 %v3573_v48  ;;  %1279 = vmatpush.msrb.mxu0 %v3583_v57 }
 0x1c4   :  { %1299 = vmatpush.msrb.mxu1 %v3589_v58  ;;  %1321 = vmatpush.msrb.mxu2 %v3595_v59 }
 0x1c5   :  { %1339 = vmatpush.msrb.mxu3 %v3601_v60  ;;  %1280 = vmatpush.msrb.mxu0 %v3609_v8  ;;  %v2502_v32 = vpop.permute.xlu0 %2501 }
 0x1c6   :  { %1300 = vmatpush.msrb.mxu1 %v3615_v4  ;;  %1322 = vmatpush.msrb.mxu2 %v5957_v36  ;;  %v2504_v57 = vunpack.i.h.bf16 %v2502_v32  ;;  %v2503_v58 = vunpack.i.l.bf16 %v2502_v32  ;;  %v5995_v4 = vld [vmem:[#allocation18_spill] sm:$0xff]  ;;  %v4392_v36 = vld [vmem:[%s5676_s3 + $0x1f8] sm:$0xff]  ;;  %v4502_v32 = vld [vmem:[%s5676_s3 + $0xd0] sm:$0xff] }
 0x1c7   :  { %1340 = vmatpush.msrb.mxu3 %v3629_v9  ;;  %1281 = vmatpush.msrb.mxu0 %v5958_v24  ;;  %v5998_v24 = vld [vmem:[#allocation11_spill] sm:$0xff]  ;;  %6003 = vst [vmem:[#allocation6_spill] sm:$0xff] %v4502_v32 }
 0x1c8   :  { %1301 = vmatpush.msrb.mxu1 %v5959_v40  ;;  %1323 = vmatpush.msrb.mxu2 %v5978_v25  ;;  %v2507_v59 = vpop.permute.xlu1 %2506  ;;  %v4400_v40 = vld [vmem:[%s5676_s3 + $0x70] sm:$0xff]  ;;  %v4424_v25 = vld [vmem:[%s5676_s3 + $0x68] sm:$0xff] }
 0x1c9   :  { %1341 = vmatpush.msrb.mxu3 %v5960_v17  ;;  %1282 = vmatpush.msrb.mxu0 %v5979_v31  ;;  %v2508_v9 = vunpack.i.l.bf16 %v2507_v59  ;;  %v4406_v17 = vld [vmem:[%s5676_s3 + $0xf0] sm:$0xff]  ;;  %v4430_v31 = vld [vmem:[%s5676_s3 + $0xe8] sm:$0xff] }
 0x1ca   :  { %1302 = vmatpush.msrb.mxu1 %v5980_v63  ;;  %1324 = vmatpush.msrb.mxu2 %v3672_v44  ;;  %v4436_v63 = vld [vmem:[%s5676_s3 + $0x158] sm:$0xff] }
 0x1cb   :  { %1342 = vmatpush.msrb.mxu3 %v5981_v3  ;;  %1283 = vmatpush.msrb.mxu0 %v5982_v37  ;;  %v4442_v3 = vld [vmem:[%s5676_s3 + $0x1e8] sm:$0xff]  ;;  %v4448_v37 = vld [vmem:[%s5676_s3 + $0x60] sm:$0xff] }
 0x1cc   :  { %1303 = vmatpush.msrb.mxu1 %v5965_v22  ;;  %1325 = vmatpush.msrb.mxu2 %v5983_v0  ;;  %v4361_v22 = vld [vmem:[%s5676_s3 + $0x170] sm:$0xff]  ;;  %v4454_v0 = vld [vmem:[%s5676_s3 + $0xe0] sm:$0xff] }
 0x1cd   :  { %1343 = vmatpush.msrb.mxu3 %v5984_v28  ;;  %1284 = vmatpush.msrb.mxu0 %v5985_v45  ;;  %v801_v41 = vpop.f32.mrf.mxu0  ;;  %v4460_v28 = vld [vmem:[%s5676_s3 + $0x150] sm:$0xff]  ;;  %v4466_v45 = vld [vmem:[%s5676_s3 + $0x1e0] sm:$0xff] }
 0x1ce   :  { %1304 = vmatpush.msrb.mxu1 %v3716_v50  ;;  %1326 = vmatpush.msrb.mxu2 %v5986_v39  ;;  %v821_v43 = vpop.f32.mrf.mxu1  ;;  %v841_v48 = vpop.f32.mrf.mxu2  ;;  %v1173_v50 = vsel %vm1170_vm1, %v2503_v58, %v2504_v57  ;;  %5999 = vst [vmem:[#allocation24_spill] sm:$0xff] %v4460_v28  ;;  %v4472_v39 = vld [vmem:[%s5676_s3 + $0x58] sm:$0xff] }
 0x1cf   :  { %1344 = vmatpush.msrb.mxu3 %v5987_v5  ;;  %1285 = vmatpush.msrb.mxu0 %v5988_v55  ;;  %v822_v47 = vadd.f32 %v821_v43, %v801_v41  ;;  %6000 = vst [vmem:[#allocation26_spill] sm:$0xff] %v4472_v39  ;;  %v4478_v5 = vld [vmem:[%s5676_s3 + $0xd8] sm:$0xff]  ;;  %v4484_v55 = vld [vmem:[%s5676_s3 + $0x148] sm:$0xff]  ;;  %v4508_v41 = vld [vmem:[%s5676_s3 + $0x140] sm:$0xff] }
 0x1d0   :  { %1305 = vmatpush.msrb.mxu1 %v3741_v10  ;;  %1327 = vmatpush.msrb.mxu2 %v3747_v11  ;;  %v2509_v10 = vunpack.i.h.bf16 %v2507_v59  ;;  %6001 = vst [vmem:[#allocation31_spill] sm:$0xff] %v4478_v5  ;;  %v4514_v43 = vld [vmem:[%s5676_s3 + $0x1d0] sm:$0xff]  ;;  %v4544_v59 = vld [vmem:[%s5676_s3 + $0x40] sm:$0xff] }
 0x1d1   :  { %1345 = vmatpush.msrb.mxu3 %v3753_v12  ;;  %1286 = vmatpush.msrb.mxu0 %v3759_v14  ;;  %v842_v60 = vadd.f32 %v841_v48, %v822_v47  ;;  %v861_v8 = vpop.f32.mrf.mxu3  ;;  %v2512_v11 = vpop.permute.xlu2 %2511  ;;  %6004 = vst [vmem:[#allocation25_spill] sm:$0xff] %v4508_v41  ;;  %v4520_v47 = vld [vmem:[%s5676_s3 + $0x48] sm:$0xff] }
 0x1d2   :  { %1306 = vmatpush.msrb.mxu1 %v3766_v15  ;;  %1328 = vmatpush.msrb.mxu2 %v5974_v6  ;;  %v1179_v6 = vsel %vm1170_vm1, %v2504_v57, %v2508_v9  ;;  %6005 = vst [vmem:[#allocation27_spill] sm:$0xff] %v4514_v43  ;;  %v4526_v48 = vld [vmem:[%s5676_s3 + $0xc8] sm:$0xff]  ;;  %v4532_v57 = vld [vmem:[%s5676_s3 + $0x138] sm:$0xff] }
 0x1d3   :  { %1346 = vmatpush.msrb.mxu3 %v3787_v20  ;;  %1287 = vmatpush.msrb.mxu0 %v5995_v4  ;;  %v862_v44 = vadd.f32 %v861_v8, %v842_v60  ;;  %v1171_v20 = vsel %vm1170_vm1, %v2508_v9, %v2509_v10  ;;  %6006 = vst [vmem:[#allocation28_spill] sm:$0xff] %v4520_v47  ;;  %v4550_v60 = vld [vmem:[%s5676_s3 + $0xc0] sm:$0xff]  ;;  %v4556_v8 = vld [vmem:[%s5676_s3 + $0x130] sm:$0xff]  ;;  %v4570_v9 = vld [vmem:[%s5676_s3 + $0x38] sm:$0xff] }
 0x1d4   :  { %1307 = vmatpush.msrb.mxu1 %v3799_v23  ;;  %1329 = vmatpush.msrb.mxu2 %v5989_v56  ;;  %v1172_v23 = vsel %vm1170_vm1, %v2509_v10, %v2503_v58  ;;  %v4490_v56 = vld [vmem:[%s5676_s3 + $0x1d8] sm:$0xff]  ;;  %6007 = vst [vmem:[#allocation29_spill] sm:$0xff] %v4532_v57  ;;  %v4538_v58 = vld [vmem:[%s5676_s3 + $0x1c8] sm:$0xff]  ;;  %v4562_v4 = vld [vmem:[%s5676_s3 + $0x1c0] sm:$0xff] }
 0x1d5   :  { %1347 = vmatpush.msrb.mxu3 %v3811_v27  ;;  %1288 = vmatpush.msrb.mxu0 %v3827_v35  ;;  %v2517_v35 = vpop.permute.xlu0 %2516  ;;  %6008 = vst [vmem:[#allocation30_spill] sm:$0xff] %v4544_v59  ;;  %v4588_v10 = vld [vmem:[%s5676_s3 + $0x1b8] sm:$0xff] }
 0x1d6   :  { %1308 = vmatpush.msrb.mxu1 %v5990_v53  ;;  %1330 = vmatpush.msrb.mxu2 %v5991_v26  ;;  %v4418_v26 = vld [vmem:[%s5676_s3 + $0x1f0] sm:$0xff] }
 0x1d7   :  { %1348 = vmatpush.msrb.mxu3 %v5992_v7  ;;  %1236 = vmatmul.f32.vlgmr.msra.gmra.mxu2 %v1173_v50  ;;  %v4412_v7 = vld [vmem:[%s5676_s3 + $0x160] sm:$0xff]  ;;  %v4496_v53 = vld [vmem:[%s5676_s3 + $0x50] sm:$0xff]  ;;  %v4582_v50 = vld [vmem:[%s5676_s3 + $0x128] sm:$0xff] }
 0x1d8   :  { %1289 = vmatpush.msrb.mxu0 %v5993_v61  ;;  %1309 = vmatpush.msrb.mxu1 %v5994_v21  ;;  %v899_v12 = vpop.f32.mrf.mxu0  ;;  %v2514_v61 = vunpack.i.h.bf16 %v2512_v11  ;;  %v2513_v21 = vunpack.i.l.bf16 %v2512_v11  ;;  %6002 = vst [vmem:[#allocation16_spill] sm:$0xff] %v4496_v53  ;;  %v4600_v11 = vld [vmem:[%s5676_s3 + $0xb0] sm:$0xff] }
 0x1d9   :  { %1331 = vmatpush.msrb.mxu2 %v3866_v62  ;;  %1349 = vmatpush.msrb.mxu3 %v3872_v19  ;;  %v919_v14 = vpop.f32.mrf.mxu1  ;;  %v939_v15 = vpop.f32.mrf.mxu2  ;;  %v2518_v19 = vunpack.i.l.bf16 %v2517_v35 }
 0x1da   :  { %1256 = vmatmul.f32.vlgmr.msra.gmra.mxu3 %v1179_v6  ;;  %1290 = vmatpush.msrb.mxu0 %v3878_v2  ;;  %v920_v27 = vadd.f32 %v919_v14, %v899_v12  ;;  %v4594_v6 = vld [vmem:[%s5676_s3 + $0x30] sm:$0xff]  ;;  %v4606_v12 = vld [vmem:[%s5676_s3 + $0x120] sm:$0xff] }
 0x1db   :  { %1310 = vmatpush.msrb.mxu1 %v3884_v30  ;;  %1332 = vmatpush.msrb.mxu2 %v3893_v34  ;;  %v2519_v30 = vunpack.i.h.bf16 %v2517_v35  ;;  %v4612_v14 = vld [vmem:[%s5676_s3 + $0x1b0] sm:$0xff] }
 0x1dc   :  { %1350 = vmatpush.msrb.mxu3 %v3899_v52  ;;  %2546 = vrot.lane.b32.xlu0 %v5977_v16, %s2708_s11  ;;  %v940_v2 = vadd.f32 %v939_v15, %v920_v27  ;;  %v959_v62 = vpop.f32.mrf.mxu3  ;;  %v1271_v52 = vsel %vm1268_vm4, %v2513_v21, %v2514_v61  ;;  %v4618_v15 = vld [vmem:[%s5676_s3 + $0x28] sm:$0xff]  ;;  %v4654_v35 = vld [vmem:[%s5676_s3 + $0x110] sm:$0xff] }
 0x1dd   :  { %1196 = vmatmul.f32.vlgmr.msra.gmra.mxu0 %v1171_v20  ;;  %1216 = vmatmul.f32.vlgmr.msra.gmra.mxu1 %v1172_v23  ;;  %v4624_v20 = vld [vmem:[%s5676_s3 + $0xa8] sm:$0xff]  ;;  %v4630_v23 = vld [vmem:[%s5676_s3 + $0x118] sm:$0xff] }
 0x1de   :  { %1291 = vmatpush.msrb.mxu0 %v3905_v51  ;;  %1311 = vmatpush.msrb.mxu1 %v3911_v33  ;;  %v960_v34 = vadd.f32 %v959_v62, %v940_v2  ;;  %v4636_v27 = vld [vmem:[%s5676_s3 + $0x1a8] sm:$0xff]  ;;  %v4660_v2 = vld [vmem:[%s5676_s3 + $0x1a0] sm:$0xff]  ;;  %v4666_v62 = vld [vmem:[%s5676_s3 + $0x18] sm:$0xff] }
 0x1df   :  { %1333 = vmatpush.msrb.mxu2 %v3917_v54  ;;  %1351 = vmatpush.msrb.mxu3 %v3923_v29  ;;  %v1277_v54 = vsel %vm1268_vm4, %v2514_v61, %v2518_v19  ;;  %6009 = vst [vmem:[#allocation2_spill] sm:$0xff] %v4636_v27  ;;  %v4642_v61 = vld [vmem:[%s5676_s3 + $0x20] sm:$0xff] }
 0x1e0   :  { %1292 = vmatpush.msrb.mxu0 %v3930_v42  ;;  %v964_v33 = vsel %vm4038_vm13, %v960_v34, 0.0  ;;  %1312 = vmatpush.msrb.mxu1 %v5946_v13  ;;  %v4379_v13 = vld [vmem:[%s5676_s3 + $0xf8] sm:$0xff]  ;;  %v4678_v34 = vld [vmem:[%s5676_s3 + $0x108] sm:$0xff]  ;;  %v4748_v51 = vld [vmem:[%s5676_s3 + $0x180] sm:$0xff] }
 0x1e1   :  { %1417 = vmatpush.msra.mxu2 %v4348_v46  ;;  %1352 = vmatpush.msrb.mxu3 %v3942_v49  ;;  %v1774_v29 = vrot.slane %v964_v33, 4  ;;  %v1269_v49 = vsel %vm1268_vm4, %v2518_v19, %v2519_v30  ;;  %v4672_v19 = vld [vmem:[%s5676_s3 + $0x98] sm:$0xff]  ;;  %v4696_v33 = vld [vmem:[%s5676_s3 + $0x90] sm:$0xff] }
 0x1e2   :  { %1334 = vmatmul.f32.vlgmr.msrb.gmra.mxu2 %v1271_v52  ;;  %1293 = vmatpush.msrb.mxu0 %v3951_v1  ;;  %v4372_v1 = vld [vmem:[%s5676_s3 + $0x78] sm:$0xff] }
 0x1e3   :  { %1418 = vmatpush.msra.mxu2 %v4361_v22  ;;  %1313 = vmatpush.msrb.mxu1 %v3957_v18  ;;  %v4366_v42 = vsel %vm1788_vm10, %v862_v44, %v1774_v29  ;;  %v1270_v18 = vsel %vm1268_vm4, %v2519_v30, %v2513_v21  ;;  %v4576_v44 = vld [vmem:[%s5676_s3 + $0xb8] sm:$0xff]  ;;  %v4648_v21 = vld [vmem:[%s5676_s3 + $0xa0] sm:$0xff]  ;;  %v4690_v30 = vld [vmem:[%s5676_s3 + $0x10] sm:$0xff] }
 0x1e4   :  { %5997 = vst [vmem:[#allocation23_spill] sm:$0xff] %v4366_v42  ;;  %1353 = vmatpush.msrb.mxu3 %v3963_v38  ;;  %1377 = vmatpush.msra.mxu0 %v4372_v1  ;;  %v4386_v38 = vld [vmem:[%s5676_s3 + $0x168] sm:$0xff]  ;;  %v4684_v52 = vld [vmem:[%s5676_s3 + $0x198] sm:$0xff]  ;;  %v4702_v29 = vld [vmem:[%s5676_s3 + $0x100] sm:$0xff] }
 0x1e5   :  { %1354 = vmatmul.f32.vlgmr.msrb.gmra.mxu3 %v1277_v54  ;;  %1397 = vmatpush.msra.mxu1 %v4379_v13  ;;  %v4708_v54 = vld [vmem:[%s5676_s3 + $0x190] sm:$0xff]  ;;  %v4742_v42 = vld [vmem:[%s5676_s3 + $0x80] sm:$0xff] }
 0x1e6   :  { %1419 = vmatpush.msra.mxu2 %v4386_v38  ;;  %1437 = vmatpush.msra.mxu3 %v4392_v36 }
 0x1e7   :  { %2551 = vrot.lane.b32.xlu1 %v5998_v24, %s2709_s30  ;;  %1294 = vmatmul.f32.vlgmr.msrb.gmra.mxu0 %v1269_v49  ;;  %v4717_v49 = vld [vmem:[%s5676_s3 + $0x8] sm:$0xff] }
 0x1e8   :  { %1314 = vmatmul.f32.vlgmr.msrb.gmra.mxu1 %v1270_v18  ;;  %1378 = vmatpush.msra.mxu0 %v4400_v40  ;;  %v4723_v18 = vld [vmem:[%s5676_s3 + $0x88] sm:$0xff] }
 0x1e9   :  { %1398 = vmatpush.msra.mxu1 %v4406_v17  ;;  %1420 = vmatpush.msra.mxu2 %v4412_v7 }
 0x1ea   :  { %1438 = vmatpush.msra.mxu3 %v4418_v26  ;;  %1379 = vmatpush.msra.mxu0 %v4424_v25 }
 0x1eb   :  { %1399 = vmatpush.msra.mxu1 %v4430_v31  ;;  %1421 = vmatpush.msra.mxu2 %v4436_v63 }
 0x1ec   :  { %1439 = vmatpush.msra.mxu3 %v4442_v3  ;;  %1380 = vmatpush.msra.mxu0 %v4448_v37 }
 0x1ed   :  { %1400 = vmatpush.msra.mxu1 %v4454_v0  ;;  %1422 = vmatpush.msra.mxu2 %v4460_v28 }
 0x1ee   :  { %1440 = vmatpush.msra.mxu3 %v4466_v45  ;;  %1381 = vmatpush.msra.mxu0 %v4472_v39 }
 0x1ef   :  { %1401 = vmatpush.msra.mxu1 %v4478_v5  ;;  %1423 = vmatpush.msra.mxu2 %v4484_v55 }
 0x1f0   :  { %1441 = vmatpush.msra.mxu3 %v4490_v56  ;;  %1382 = vmatpush.msra.mxu0 %v4496_v53 }
 0x1f1   :  { %1402 = vmatpush.msra.mxu1 %v4502_v32  ;;  %1424 = vmatpush.msra.mxu2 %v4508_v41 }
 0x1f2   :  { %1442 = vmatpush.msra.mxu3 %v4514_v43  ;;  %1383 = vmatpush.msra.mxu0 %v4520_v47 }
 0x1f3   :  { %1403 = vmatpush.msra.mxu1 %v4526_v48  ;;  %1425 = vmatpush.msra.mxu2 %v4532_v57 }
 0x1f4   :  { %1443 = vmatpush.msra.mxu3 %v4538_v58  ;;  %1384 = vmatpush.msra.mxu0 %v4544_v59 }
 0x1f5   :  { %1404 = vmatpush.msra.mxu1 %v4550_v60  ;;  %1426 = vmatpush.msra.mxu2 %v4556_v8 }
 0x1f6   :  { %1444 = vmatpush.msra.mxu3 %v4562_v4  ;;  %2541 = vrot.lane.b32.xlu2 %v5998_v24, %s2708_s11  ;;  %v4729_v24 = vld [vmem:[%s5676_s3 + $0x188] sm:$0xff] }
 0x1f7   :  { %1385 = vmatpush.msra.mxu0 %v4570_v9  ;;  %1405 = vmatpush.msra.mxu1 %v4576_v44 }
 0x1f8   :  { %1427 = vmatpush.msra.mxu2 %v4582_v50  ;;  %1445 = vmatpush.msra.mxu3 %v4588_v10 }
 0x1f9   :  { %1386 = vmatpush.msra.mxu0 %v4594_v6  ;;  %1406 = vmatpush.msra.mxu1 %v4600_v11 }
 0x1fa   :  { %1428 = vmatpush.msra.mxu2 %v4606_v12  ;;  %1446 = vmatpush.msra.mxu3 %v4612_v14 }
 0x1fb   :  { %1387 = vmatpush.msra.mxu0 %v4618_v15  ;;  %1407 = vmatpush.msra.mxu1 %v4624_v20 }
 0x1fc   :  { %1429 = vmatpush.msra.mxu2 %v4630_v23  ;;  %1447 = vmatpush.msra.mxu3 %v4636_v27 }
 0x1fd   :  { %1388 = vmatpush.msra.mxu0 %v4642_v61  ;;  %1408 = vmatpush.msra.mxu1 %v4648_v21 }
 0x1fe   :  { %1430 = vmatpush.msra.mxu2 %v4654_v35  ;;  %1448 = vmatpush.msra.mxu3 %v4660_v2 }
 0x1ff   :  { %1389 = vmatpush.msra.mxu0 %v4666_v62  ;;  %1409 = vmatpush.msra.mxu1 %v4672_v19 }
 0x200   :  { %1431 = vmatpush.msra.mxu2 %v4678_v34  ;;  %1449 = vmatpush.msra.mxu3 %v4684_v52 }
 0x201   :  { %1390 = vmatpush.msra.mxu0 %v4690_v30  ;;  %1410 = vmatpush.msra.mxu1 %v4696_v33 }
 0x202   :  { %1432 = vmatpush.msra.mxu2 %v4702_v29  ;;  %1450 = vmatpush.msra.mxu3 %v4708_v54 }
 0x203   :  { %2556 = vrot.lane.b32.xlu2 %v5977_v16, %s2709_s30  ;;  %1391 = vmatpush.msra.mxu0 %v4717_v49  ;;  %v4736_v16 = vld [vmem:[%s5676_s3] sm:$0xff] }
 0x204   :  { %1520 = vmatpush.msrb.mxu2 %v4348_v46  ;;  %1411 = vmatpush.msra.mxu1 %v4723_v18 }
 0x205   :  { %1451 = vmatpush.msra.mxu3 %v4729_v24  ;;  %1392 = vmatpush.msra.mxu0 %v4736_v16 }
 0x206   :  { %1521 = vmatpush.msrb.mxu2 %v4361_v22  ;;  %1412 = vmatpush.msra.mxu1 %v4742_v42 }
 0x207   :  { %1452 = vmatpush.msra.mxu3 %v4748_v51  ;;  %1480 = vmatpush.msrb.mxu0 %v4372_v1 }
 0x208   :  { %1500 = vmatpush.msrb.mxu1 %v4379_v13  ;;  %1522 = vmatpush.msrb.mxu2 %v4386_v38 }
 0x209   :  { %1540 = vmatpush.msrb.mxu3 %v4392_v36  ;;  %1481 = vmatpush.msrb.mxu0 %v4400_v40 }
 0x20a   :  { %1501 = vmatpush.msrb.mxu1 %v4406_v17  ;;  %1523 = vmatpush.msrb.mxu2 %v4412_v7 }
 0x20b   :  { %1541 = vmatpush.msrb.mxu3 %v4418_v26  ;;  %1482 = vmatpush.msrb.mxu0 %v4424_v25 }
 0x20c   :  { %1502 = vmatpush.msrb.mxu1 %v4430_v31  ;;  %1524 = vmatpush.msrb.mxu2 %v4436_v63 }
 0x20d   :  { %1542 = vmatpush.msrb.mxu3 %v4442_v3  ;;  %1483 = vmatpush.msrb.mxu0 %v4448_v37 }
 0x20e   :  { %1503 = vmatpush.msrb.mxu1 %v4454_v0  ;;  %1525 = vmatpush.msrb.mxu2 %v4460_v28  ;;  %v2522_v28 = vpop.permute.xlu1 %2521 }
 0x20f   :  { %1543 = vmatpush.msrb.mxu3 %v4466_v45  ;;  %1484 = vmatpush.msrb.mxu0 %v4472_v39 }
 0x210   :  { %1504 = vmatpush.msrb.mxu1 %v4478_v5  ;;  %1526 = vmatpush.msrb.mxu2 %v4484_v55 }
 0x211   :  { %1544 = vmatpush.msrb.mxu3 %v4490_v56  ;;  %1485 = vmatpush.msrb.mxu0 %v4496_v53 }
 0x212   :  { %1505 = vmatpush.msrb.mxu1 %v4502_v32  ;;  %1527 = vmatpush.msrb.mxu2 %v4508_v41  ;;  %v2524_v41 = vunpack.i.h.bf16 %v2522_v28  ;;  %v2527_v32 = vpop.permute.xlu2 %2526 }
 0x213   :  { %1545 = vmatpush.msrb.mxu3 %v4514_v43  ;;  %1486 = vmatpush.msrb.mxu0 %v4520_v47  ;;  %v1000_v5 = vpop.f32.mrf.mxu0  ;;  %v2523_v43 = vunpack.i.l.bf16 %v2522_v28 }
 0x214   :  { %1506 = vmatpush.msrb.mxu1 %v4526_v48  ;;  %1528 = vmatpush.msrb.mxu2 %v4532_v57  ;;  %v1020_v39 = vpop.f32.mrf.mxu1  ;;  %v1040_v47 = vpop.f32.mrf.mxu2 }
 0x215   :  { %1546 = vmatpush.msrb.mxu3 %v4538_v58  ;;  %1487 = vmatpush.msrb.mxu0 %v4544_v59  ;;  %v1021_v53 = vadd.f32 %v1020_v39, %v1000_v5  ;;  %v2528_v39 = vunpack.i.l.bf16 %v2527_v32  ;;  %v1370_v28 = vsel %vm1367_vm5, %v2523_v43, %v2524_v41 }
 0x216   :  { %1507 = vmatpush.msrb.mxu1 %v4550_v60  ;;  %1529 = vmatpush.msrb.mxu2 %v4556_v8 }
 0x217   :  { %1547 = vmatpush.msrb.mxu3 %v4562_v4  ;;  %1488 = vmatpush.msrb.mxu0 %v4570_v9  ;;  %v1041_v57 = vadd.f32 %v1040_v47, %v1021_v53  ;;  %v1060_v59 = vpop.f32.mrf.mxu3  ;;  %v2529_v53 = vunpack.i.h.bf16 %v2527_v32  ;;  %v1376_v47 = vsel %vm1367_vm5, %v2524_v41, %v2528_v39 }
 0x218   :  { %1508 = vmatpush.msrb.mxu1 %v4576_v44  ;;  %1530 = vmatpush.msrb.mxu2 %v4582_v50 }
 0x219   :  { %1548 = vmatpush.msrb.mxu3 %v4588_v10  ;;  %1489 = vmatpush.msrb.mxu0 %v4594_v6  ;;  %v4788_v5 = vadd.f32 %v1060_v59, %v1041_v57  ;;  %v2532_v57 = vpop.permute.xlu0 %2531  ;;  %v1368_v32 = vsel %vm1367_vm5, %v2528_v39, %v2529_v53 }
 0x21a   :  { %1509 = vmatpush.msrb.mxu1 %v4600_v11  ;;  %1531 = vmatpush.msrb.mxu2 %v4606_v12  ;;  %v2534_v59 = vunpack.i.h.bf16 %v2532_v57 }
 0x21b   :  { %6010 = vst [vmem:[#allocation8_spill] sm:$0xff] %v4788_v5  ;;  %1549 = vmatpush.msrb.mxu3 %v4612_v14  ;;  %1490 = vmatpush.msrb.mxu0 %v4618_v15  ;;  %v2533_v5 = vunpack.i.l.bf16 %v2532_v57  ;;  %v6012_v57 = vld [vmem:[#allocation26_spill] sm:$0xff] }
 0x21c   :  { %1510 = vmatpush.msrb.mxu1 %v4624_v20  ;;  %1532 = vmatpush.msrb.mxu2 %v4630_v23 }
 0x21d   :  { %1550 = vmatpush.msrb.mxu3 %v4636_v27  ;;  %1433 = vmatmul.f32.vlgmr.msra.gmra.mxu2 %v1370_v28  ;;  %v1369_v28 = vsel %vm1367_vm5, %v2529_v53, %v2523_v43  ;;  %v2537_v27 = vpop.permute.xlu1 %2536  ;;  %v1473_v39 = vsel %vm1470_vm11, %v2533_v5, %v2534_v59  ;;  %vm1798_vm5 = vcmask 523264  }
 0x21e   :  { %1491 = vmatpush.msrb.mxu0 %v4642_v61  ;;  %1511 = vmatpush.msrb.mxu1 %v4648_v21  ;;  %v2538_v41 = vunpack.i.l.bf16 %v2537_v27  ;;  %v2539_v43 = vunpack.i.h.bf16 %v2537_v27 }
 0x21f   :  { %1533 = vmatpush.msrb.mxu2 %v4654_v35  ;;  %1551 = vmatpush.msrb.mxu3 %v4660_v2 }
 0x220   :  { %1453 = vmatmul.f32.vlgmr.msra.gmra.mxu3 %v1376_v47  ;;  %1492 = vmatpush.msrb.mxu0 %v4666_v62  ;;  %v1479_v53 = vsel %vm1470_vm11, %v2534_v59, %v2538_v41  ;;  %v1471_v27 = vsel %vm1470_vm11, %v2538_v41, %v2539_v43  ;;  %v1472_v47 = vsel %vm1470_vm11, %v2539_v43, %v2533_v5  ;;  %v6011_v5 = vld [vmem:[#allocation24_spill] sm:$0xff]  ;;  %v6016_v41 = vld [vmem:[#allocation25_spill] sm:$0xff] }
 0x221   :  { %1512 = vmatpush.msrb.mxu1 %v4672_v19  ;;  %1534 = vmatpush.msrb.mxu2 %v4678_v34  ;;  %v6014_v59 = vld [vmem:[#allocation16_spill] sm:$0xff] }
 0x222   :  { %1552 = vmatpush.msrb.mxu3 %v4684_v52  ;;  %1393 = vmatmul.f32.vlgmr.msra.gmra.mxu0 %v1368_v32  ;;  %v6013_v32 = vld [vmem:[#allocation31_spill] sm:$0xff]  ;;  %v6018_v43 = vld [vmem:[#allocation28_spill] sm:$0xff] }
 0x223   :  { %1413 = vmatmul.f32.vlgmr.msra.gmra.mxu1 %v1369_v28  ;;  %1493 = vmatpush.msrb.mxu0 %v4690_v30  ;;  %v6015_v28 = vld [vmem:[#allocation6_spill] sm:$0xff] }
 0x224   :  { %1513 = vmatpush.msrb.mxu1 %v4696_v33  ;;  %1535 = vmatpush.msrb.mxu2 %v4702_v29 }
 0x225   :  { %1553 = vmatpush.msrb.mxu3 %v4708_v54  ;;  %1494 = vmatpush.msrb.mxu0 %v4717_v49 }
 0x226   :  { %1621 = vmatpush.msra.mxu2 %v4348_v46  ;;  %1514 = vmatpush.msrb.mxu1 %v4723_v18 }
 0x227   :  { %1554 = vmatpush.msrb.mxu3 %v4729_v24  ;;  %1536 = vmatmul.f32.vlgmr.msrb.gmra.mxu2 %v1473_v39  ;;  %v6017_v39 = vld [vmem:[#allocation27_spill] sm:$0xff] }
 0x228   :  { %1622 = vmatpush.msra.mxu2 %v4361_v22  ;;  %1495 = vmatpush.msrb.mxu0 %v4736_v16 }
 0x229   :  { %1515 = vmatpush.msrb.mxu1 %v4742_v42  ;;  %1555 = vmatpush.msrb.mxu3 %v4748_v51 }
 0x22a   :  { %1556 = vmatmul.f32.vlgmr.msrb.gmra.mxu3 %v1479_v53  ;;  %1581 = vmatpush.msra.mxu0 %v4372_v1  ;;  %v6019_v53 = vld [vmem:[#allocation29_spill] sm:$0xff] }
 0x22b   :  { %1601 = vmatpush.msra.mxu1 %v4379_v13  ;;  %1623 = vmatpush.msra.mxu2 %v4386_v38 }
 0x22c   :  { %1641 = vmatpush.msra.mxu3 %v4392_v36  ;;  %1496 = vmatmul.f32.vlgmr.msrb.gmra.mxu0 %v1471_v27  ;;  %v6020_v27 = vld [vmem:[#allocation30_spill] sm:$0xff] }
 0x22d   :  { %1516 = vmatmul.f32.vlgmr.msrb.gmra.mxu1 %v1472_v47  ;;  %1582 = vmatpush.msra.mxu0 %v4400_v40  ;;  %v6021_v47 = vld [vmem:[#allocation2_spill] sm:$0xff] }
 0x22e   :  { %1602 = vmatpush.msra.mxu1 %v4406_v17  ;;  %1624 = vmatpush.msra.mxu2 %v4412_v7 }
 0x22f   :  { %1642 = vmatpush.msra.mxu3 %v4418_v26  ;;  %1583 = vmatpush.msra.mxu0 %v4424_v25 }
 0x230   :  { %1603 = vmatpush.msra.mxu1 %v4430_v31  ;;  %1625 = vmatpush.msra.mxu2 %v4436_v63 }
 0x231   :  { %1643 = vmatpush.msra.mxu3 %v4442_v3  ;;  %1584 = vmatpush.msra.mxu0 %v4448_v37 }
 0x232   :  { %1604 = vmatpush.msra.mxu1 %v4454_v0  ;;  %1626 = vmatpush.msra.mxu2 %v6011_v5 }
 0x233   :  { %1644 = vmatpush.msra.mxu3 %v4466_v45  ;;  %1585 = vmatpush.msra.mxu0 %v6012_v57 }
 0x234   :  { %1605 = vmatpush.msra.mxu1 %v6013_v32  ;;  %1627 = vmatpush.msra.mxu2 %v4484_v55 }
 0x235   :  { %1645 = vmatpush.msra.mxu3 %v4490_v56  ;;  %1586 = vmatpush.msra.mxu0 %v6014_v59 }
 0x236   :  { %1606 = vmatpush.msra.mxu1 %v6015_v28  ;;  %1628 = vmatpush.msra.mxu2 %v6016_v41 }
 0x237   :  { %1646 = vmatpush.msra.mxu3 %v6017_v39  ;;  %1587 = vmatpush.msra.mxu0 %v6018_v43 }
 0x238   :  { %1607 = vmatpush.msra.mxu1 %v4526_v48  ;;  %1629 = vmatpush.msra.mxu2 %v6019_v53 }
 0x239   :  { %1647 = vmatpush.msra.mxu3 %v4538_v58  ;;  %1588 = vmatpush.msra.mxu0 %v6020_v27 }
 0x23a   :  { %1608 = vmatpush.msra.mxu1 %v4550_v60  ;;  %1630 = vmatpush.msra.mxu2 %v4556_v8 }
 0x23b   :  { %1648 = vmatpush.msra.mxu3 %v4562_v4  ;;  %1589 = vmatpush.msra.mxu0 %v4570_v9 }
 0x23c   :  { %1609 = vmatpush.msra.mxu1 %v4576_v44  ;;  %1631 = vmatpush.msra.mxu2 %v4582_v50 }
 0x23d   :  { %1649 = vmatpush.msra.mxu3 %v4588_v10  ;;  %1590 = vmatpush.msra.mxu0 %v4594_v6 }
 0x23e   :  { %1610 = vmatpush.msra.mxu1 %v4600_v11  ;;  %1632 = vmatpush.msra.mxu2 %v4606_v12 }
 0x23f   :  { %1650 = vmatpush.msra.mxu3 %v4612_v14  ;;  %1591 = vmatpush.msra.mxu0 %v4618_v15 }
 0x240   :  { %1611 = vmatpush.msra.mxu1 %v4624_v20  ;;  %1633 = vmatpush.msra.mxu2 %v4630_v23 }
 0x241   :  { %1651 = vmatpush.msra.mxu3 %v6021_v47  ;;  %1592 = vmatpush.msra.mxu0 %v4642_v61 }
 0x242   :  { %1612 = vmatpush.msra.mxu1 %v4648_v21  ;;  %1634 = vmatpush.msra.mxu2 %v4654_v35 }
 0x243   :  { %1652 = vmatpush.msra.mxu3 %v4660_v2  ;;  %1593 = vmatpush.msra.mxu0 %v4666_v62 }
 0x244   :  { %1613 = vmatpush.msra.mxu1 %v4672_v19  ;;  %1635 = vmatpush.msra.mxu2 %v4678_v34 }
 0x245   :  { %1653 = vmatpush.msra.mxu3 %v4684_v52  ;;  %1594 = vmatpush.msra.mxu0 %v4690_v30 }
 0x246   :  { %1614 = vmatpush.msra.mxu1 %v4696_v33  ;;  %1636 = vmatpush.msra.mxu2 %v4702_v29 }
 0x247   :  { %1654 = vmatpush.msra.mxu3 %v4708_v54  ;;  %1595 = vmatpush.msra.mxu0 %v4717_v49 }
 0x248   :  { %1720 = vmatpush.msrb.mxu2 %v4348_v46  ;;  %1615 = vmatpush.msra.mxu1 %v4723_v18 }
 0x249   :  { %1655 = vmatpush.msra.mxu3 %v4729_v24  ;;  %1596 = vmatpush.msra.mxu0 %v4736_v16 }
 0x24a   :  { %1721 = vmatpush.msrb.mxu2 %v4361_v22  ;;  %1616 = vmatpush.msra.mxu1 %v4742_v42 }
 0x24b   :  { %1656 = vmatpush.msra.mxu3 %v4748_v51  ;;  %1680 = vmatpush.msrb.mxu0 %v4372_v1 }
 0x24c   :  { %1700 = vmatpush.msrb.mxu1 %v4379_v13  ;;  %1722 = vmatpush.msrb.mxu2 %v4386_v38 }
 0x24d   :  { %1740 = vmatpush.msrb.mxu3 %v4392_v36  ;;  %1681 = vmatpush.msrb.mxu0 %v4400_v40 }
 0x24e   :  { %1701 = vmatpush.msrb.mxu1 %v4406_v17  ;;  %1723 = vmatpush.msrb.mxu2 %v4412_v7  ;;  %v2547_v13 = vpop.permute.xlu0 %2546 }
 0x24f   :  { %1741 = vmatpush.msrb.mxu3 %v4418_v26  ;;  %1682 = vmatpush.msrb.mxu0 %v4424_v25  ;;  %v2548_v38 = vunpack.i.l.bf16 %v2547_v13  ;;  %v2549_v40 = vunpack.i.h.bf16 %v2547_v13 }
 0x250   :  { %1702 = vmatpush.msrb.mxu1 %v4430_v31  ;;  %1724 = vmatpush.msrb.mxu2 %v4436_v63  ;;  %v2542_v46 = vpop.permute.xlu2 %2541 }
 0x251   :  { %1742 = vmatpush.msrb.mxu3 %v4442_v3  ;;  %1683 = vmatpush.msrb.mxu0 %v4448_v37  ;;  %v2544_v22 = vunpack.i.h.bf16 %v2542_v46  ;;  %v2543_v1 = vunpack.i.l.bf16 %v2542_v46  ;;  %v1572_v7 = vsel %vm1571_vm12, %v2548_v38, %v2549_v40  ;;  %v5176_v46 = vld [vmem:[%s5678_s4 + $0xf0] sm:$0xff] }
 0x252   :  { %1703 = vmatpush.msrb.mxu1 %v4454_v0  ;;  %1725 = vmatpush.msrb.mxu2 %v6011_v5 }
 0x253   :  { %1743 = vmatpush.msrb.mxu3 %v4466_v45  ;;  %1684 = vmatpush.msrb.mxu0 %v6012_v57  ;;  %v1574_v36 = vsel %vm1571_vm12, %v2543_v1, %v2544_v22  ;;  %v1580_v17 = vsel %vm1571_vm12, %v2544_v22, %v2548_v38  ;;  %v1573_v25 = vsel %vm1571_vm12, %v2549_v40, %v2543_v1  ;;  %v5183_v22 = vld [vmem:[%s5678_s4 + $0xc0] sm:$0xff] }
 0x254   :  { %1704 = vmatpush.msrb.mxu1 %v6013_v32  ;;  %1726 = vmatpush.msrb.mxu2 %v4484_v55 }
 0x255   :  { %1744 = vmatpush.msrb.mxu3 %v4490_v56  ;;  %1685 = vmatpush.msrb.mxu0 %v6014_v59 }
 0x256   :  { %1705 = vmatpush.msrb.mxu1 %v6015_v28  ;;  %1727 = vmatpush.msrb.mxu2 %v6016_v41 }
 0x257   :  { %1745 = vmatpush.msrb.mxu3 %v6017_v39  ;;  %1686 = vmatpush.msrb.mxu0 %v6018_v43  ;;  %v6022_v39 = vld [vmem:[#allocation10_spill] sm:$0xff] }
 0x258   :  { %1706 = vmatpush.msrb.mxu1 %v4526_v48  ;;  %1728 = vmatpush.msrb.mxu2 %v6019_v53  ;;  %vm1457_vm0 = vcmp.le.s32.totalorder %v6022_v39, 6  ;;  %v5246_v39 = vld [vmem:[%s5678_s4 + $0x90] sm:$0xff] }
 0x259   :  { %1746 = vmatpush.msrb.mxu3 %v4538_v58  ;;  %1687 = vmatpush.msrb.mxu0 %v6020_v27  ;;  %v2552_v26 = vpop.permute.xlu1 %2551  ;;  %v1099_v58 = vpop.f32.mrf.mxu0  ;;  %vm4964_vm1 = vmand %vm1457_vm0, %vm4038_vm13 }
 0x25a   :  { %1707 = vmatpush.msrb.mxu1 %v4550_v60  ;;  %1729 = vmatpush.msrb.mxu2 %v4556_v8  ;;  %v2554_v31 = vunpack.i.h.bf16 %v2552_v26  ;;  %v2553_v63 = vunpack.i.l.bf16 %v2552_v26  ;;  %v1119_v60 = vpop.f32.mrf.mxu1  ;;  %v1139_v8 = vpop.f32.mrf.mxu2  ;;  %vm4978_vm4 = vmand %vm1457_vm0, %vm3777_vm8 }
 0x25b   :  { %1747 = vmatpush.msrb.mxu3 %v4562_v4  ;;  %1688 = vmatpush.msrb.mxu0 %v4570_v9  ;;  %v1159_v4 = vpop.f32.mrf.mxu3  ;;  %v1120_v5 = vadd.f32 %v1119_v60, %v1099_v58 }
 0x25c   :  { %1708 = vmatpush.msrb.mxu1 %v4576_v44  ;;  %1730 = vmatpush.msrb.mxu2 %v4582_v50  ;;  %v1673_v37 = vsel %vm1670_vm15, %v2553_v63, %v2554_v31 }
 0x25d   :  { %1748 = vmatpush.msrb.mxu3 %v4588_v10  ;;  %1637 = vmatmul.f32.vlgmr.msra.gmra.mxu2 %v1574_v36  ;;  %v2557_v3 = vpop.permute.xlu2 %2556  ;;  %v1140_v53 = vadd.f32 %v1139_v8, %v1120_v5  ;;  %v6029_v8 = vld [vmem:[#allocation8_spill] sm:$0xff]  ;;  %v5126_v5 = vld [vmem:[%s5678_s4 + $0x120] sm:$0xff] }
 0x25e   :  { %1689 = vmatpush.msrb.mxu0 %v4594_v6  ;;  %1709 = vmatpush.msrb.mxu1 %v4600_v11  ;;  %v2559_v0 = vunpack.i.h.bf16 %v2557_v3  ;;  %v2558_v45 = vunpack.i.l.bf16 %v2557_v3 }
 0x25f   :  { %1731 = vmatpush.msrb.mxu2 %v4606_v12  ;;  %1749 = vmatpush.msrb.mxu3 %v4612_v14 }
 0x260   :  { %1657 = vmatmul.f32.vlgmr.msra.gmra.mxu3 %v1580_v17  ;;  %1690 = vmatpush.msrb.mxu0 %v4618_v15  ;;  %v1671_v55 = vsel %vm1670_vm15, %v2558_v45, %v2559_v0  ;;  %v1672_v56 = vsel %vm1670_vm15, %v2559_v0, %v2553_v63  ;;  %v1679_v48 = vsel %vm1670_vm15, %v2554_v31, %v2558_v45  ;;  %v1856_v31 = vld [vmem:[%s5679_s2] sm:$0xff] }
 0x261   :  { %1710 = vmatpush.msrb.mxu1 %v4624_v20  ;;  %1732 = vmatpush.msrb.mxu2 %v4630_v23  ;;  %v1197_v9 = vpop.f32.mrf.mxu0 }
 0x262   :  { %1750 = vmatpush.msrb.mxu3 %v6021_v47  ;;  %1597 = vmatmul.f32.vlgmr.msra.gmra.mxu0 %v1572_v7  ;;  %v1217_v44 = vpop.f32.mrf.mxu1  ;;  %v1237_v50 = vpop.f32.mrf.mxu2  ;;  %v1160_v7 = vadd.f32 %v1159_v4, %v1140_v53  ;;  %v1063_v4 = vsel %vm3777_vm8, %v6029_v8, 0.0  ;;  %v5157_v53 = vld [vmem:[%s5678_s4 + $0x110] sm:$0xff]  ;;  %v5288_v8 = vld [vmem:[%s5678_s4 + $0x1b8] sm:$0xff] }
 0x263   :  { %1617 = vmatmul.f32.vlgmr.msra.gmra.mxu1 %v1573_v25  ;;  %1691 = vmatpush.msrb.mxu0 %v4642_v61  ;;  %v1257_v10 = vpop.f32.mrf.mxu3  ;;  %v1218_v27 = vadd.f32 %v1217_v44, %v1197_v9  ;;  %v6030_v44 = vld [vmem:[#allocation23_spill] sm:$0xff]  ;;  %v5223_v25 = vld [vmem:[%s5678_s4 + $0x80] sm:$0xff] }
 0x264   :  { %1711 = vmatpush.msrb.mxu1 %v4648_v21  ;;  %1733 = vmatpush.msrb.mxu2 %v4654_v35 }
 0x265   :  { %1751 = vmatpush.msrb.mxu3 %v4660_v2  ;;  %1692 = vmatpush.msrb.mxu0 %v4666_v62  ;;  %v1238_v26 = vadd.f32 %v1237_v50, %v1218_v27  ;;  %v6031_v50 = vld [vmem:[#allocation21_spill] sm:$0xff]  ;;  %v5164_v27 = vld [vmem:[%s5678_s4 + $0xe0] sm:$0xff] }
 0x266   :  { %1712 = vmatpush.msrb.mxu1 %v4672_v19  ;;  %1734 = vmatpush.msrb.mxu2 %v4678_v34 }
 0x267   :  { %1752 = vmatpush.msrb.mxu3 %v4684_v52  ;;  %1693 = vmatpush.msrb.mxu0 %v4690_v30 }
 0x268   :  { %1713 = vmatpush.msrb.mxu1 %v4696_v33  ;;  %1735 = vmatpush.msrb.mxu2 %v4702_v29 }
 0x269   :  { %1753 = vmatpush.msrb.mxu3 %v4708_v54  ;;  %1736 = vmatmul.f32.vlgmr.msrb.gmra.mxu2 %v1673_v37  ;;  %v1295_v6 = vpop.f32.mrf.mxu0 }
 0x26a   :  { %1694 = vmatpush.msrb.mxu0 %v4717_v49  ;;  %1714 = vmatpush.msrb.mxu1 %v4723_v18  ;;  %v1315_v11 = vpop.f32.mrf.mxu1 }
 0x26b   :  { %1754 = vmatpush.msrb.mxu3 %v4729_v24  ;;  %v1355_v12 = vpop.f32.mrf.mxu3  ;;  %v1316_v52 = vadd.f32 %v1315_v11, %v1295_v6  ;;  %v6032_v6 = vld [vmem:[#allocation20_spill] sm:$0xff]  ;;  %v6033_v11 = vld [vmem:[#allocation37_spill] sm:$0xff] }
 0x26c   :  { %1695 = vmatpush.msrb.mxu0 %v4736_v16  ;;  %1715 = vmatpush.msrb.mxu1 %v4742_v42  ;;  %v1335_v42 = vpop.f32.mrf.mxu2 }
 0x26d   :  { %1755 = vmatpush.msrb.mxu3 %v4748_v51  ;;  %1696 = vmatmul.f32.vlgmr.msrb.gmra.mxu0 %v1671_v55  ;;  %v1336_v18 = vadd.f32 %v1335_v42, %v1316_v52  ;;  %v5074_v52 = vld [vmem:[%s5678_s4 + $0x188] sm:$0xff] }
 0x26e   :  { %1716 = vmatmul.f32.vlgmr.msrb.gmra.mxu1 %v1672_v56  ;;  %1756 = vmatmul.f32.vlgmr.msrb.gmra.mxu3 %v1679_v48  ;;  %v1777_v56 = vrot.slane %v1160_v7, 4  ;;  %v1258_v48 = vadd.f32 %v1257_v10, %v1238_v26  ;;  %v1797_v10 = vld [vmem:[%s5677_s1] sm:$0xff]  ;;  %s2714_s1 = smov 9   ;;  %v5216_v7 = vld [vmem:[%s5678_s4 + $0xb0] sm:$0xff] }
 0x26f   :  { %v1356_v28 = vadd.f32 %v1355_v12, %v1336_v18  ;;  %v5106_v18 = vld [vmem:[%s5678_s4 + $0x140] sm:$0xff] }
 0x270   :  { %v1793_v9 = vsel %vm1788_vm10, %v1063_v4, %v1777_v56  ;;  %v5265_v56 = vld [vmem:[%s5678_s4 + $0x1d8] sm:$0xff]  ;;  %v5295_v4 = vld [vmem:[%s5678_s4 + $0x50] sm:$0xff] }
 0x271   :  { %v1358_v36 = vsel %vm4038_vm13, %v1356_v28, 0.0 }
 0x272   :  { %v1780_v0 = vrot.slane %v1358_v36, 4  ;;  %v5203_v36 = vld [vmem:[%s5678_s4 + $0xa0] sm:$0xff] }
 0x274   :  { %v1794_v60 = vsel %vm1788_vm10, %v1258_v48, %v1780_v0  ;;  %v5271_v48 = vld [vmem:[%s5678_s4 + $0x70] sm:$0xff]  ;;  %v5434_v0 = vld [vmem:[%s5678_s4 + $0x38] sm:$0xff] }
 0x29f   :  { %v1394_v51 = vpop.f32.mrf.mxu0 }
 0x2a0   :  { %v1414_v14 = vpop.f32.mrf.mxu1  ;;  %v1434_v15 = vpop.f32.mrf.mxu2 }
 0x2a1   :  { %v1415_v24 = vadd.f32 %v1414_v14, %v1394_v51  ;;  %v5015_v51 = vld [vmem:[%s5678_s4 + $0x1e0] sm:$0xff]  ;;  %v5020_v14 = vld [vmem:[%s5678_s4 + $0x1e8] sm:$0xff] }
 0x2a2   :  { %1891 = vmatpush.msra.mxu2 %v5015_v51  ;;  %1911 = vmatpush.msra.mxu3 %v5020_v14 }
 0x2a3   :  { %v1454_v20 = vpop.f32.mrf.mxu3  ;;  %v1435_v41 = vadd.f32 %v1434_v15, %v1415_v24  ;;  %v5025_v15 = vld [vmem:[%s5678_s4 + $0x1f0] sm:$0xff]  ;;  %v5114_v24 = vld [vmem:[%s5678_s4 + $0x148] sm:$0xff] }
 0x2a5   :  { %v1455_v40 = vadd.f32 %v1454_v20, %v1435_v41  ;;  %v5032_v20 = vld [vmem:[%s5678_s4 + $0x1c0] sm:$0xff] }
 0x2a6   :  { %1892 = vmatpush.msra.mxu2 %v5032_v20  ;;  %v5144_v41 = vld [vmem:[%s5678_s4 + $0x100] sm:$0xff] }
 0x2a7   :  { %v1461_v55 = vsel %vm4978_vm4, %v1455_v40, 0.0  ;;  %v5398_v40 = vld [vmem:[%s5678_s4 + $0xb8] sm:$0xff] }
 0x2a9   :  { %v1497_v23 = vpop.f32.mrf.mxu0 }
 0x2aa   :  { %v1517_v61 = vpop.f32.mrf.mxu1  ;;  %v1537_v21 = vpop.f32.mrf.mxu2 }
 0x2ab   :  { %v1518_v34 = vadd.f32 %v1517_v61, %v1497_v23  ;;  %v5037_v23 = vld [vmem:[%s5678_s4 + $0x1c8] sm:$0xff]  ;;  %v5043_v61 = vld [vmem:[%s5678_s4 + $0x1d0] sm:$0xff] }
 0x2ac   :  { %1912 = vmatpush.msra.mxu3 %v5037_v23 }
 0x2ad   :  { %v1557_v35 = vpop.f32.mrf.mxu3  ;;  %v1538_v33 = vadd.f32 %v1537_v21, %v1518_v34  ;;  %v5048_v21 = vld [vmem:[%s5678_s4 + $0x1a0] sm:$0xff] }
 0x2ae   :  { %v5066_v34 = vld [vmem:[%s5678_s4 + $0x180] sm:$0xff]  ;;  %1893 = vmatpush.msra.mxu2 %v5048_v21 }
 0x2af   :  { %v1558_v32 = vadd.f32 %v1557_v35, %v1538_v33  ;;  %v5086_v33 = vld [vmem:[%s5678_s4 + $0x160] sm:$0xff] }
 0x2b0   :  { %1894 = vmatpush.msra.mxu2 %v5066_v34 }
 0x2b1   :  { %v1562_v1 = vsel %vm1457_vm0, %v1558_v32, 0.0  ;;  %v5137_v32 = vld [vmem:[%s5678_s4 + $0x130] sm:$0xff] }
 0x2b2   :  { %v1783_v63 = vrot.slane %v1562_v1, 4  ;;  %1895 = vmatpush.msra.mxu2 %v5086_v33  ;;  %v5191_v1 = vld [vmem:[%s5678_s4 + $0xc8] sm:$0xff] }
 0x2b4   :  { %v1795_v58 = vsel %vm1788_vm10, %v1461_v55, %v1783_v63  ;;  %1896 = vmatpush.msra.mxu2 %v5106_v18  ;;  %v5234_v63 = vld [vmem:[%s5678_s4 + $0x88] sm:$0xff] }
 0x2b5   :  { %v5259_v55 = vld [vmem:[%s5678_s4 + $0x68] sm:$0xff] }
 0x2b6   :  { %1897 = vmatpush.msra.mxu2 %v5126_v5 }
 0x2b8   :  { %1898 = vmatpush.msra.mxu2 %v5144_v41 }
 0x2ba   :  { %1899 = vmatpush.msra.mxu2 %v5164_v27 }
 0x2bc   :  { %1900 = vmatpush.msra.mxu2 %v5183_v22 }
 0x2be   :  { %1901 = vmatpush.msra.mxu2 %v5203_v36 }
 0x2c0   :  { %1902 = vmatpush.msra.mxu2 %v5223_v25 }
 0x2df   :  { %v1598_v2 = vpop.f32.mrf.mxu0 }
 0x2e0   :  { %v1618_v62 = vpop.f32.mrf.mxu1  ;;  %v1638_v19 = vpop.f32.mrf.mxu2 }
 0x2e1   :  { %v1619_v29 = vadd.f32 %v1618_v62, %v1598_v2  ;;  %v5055_v2 = vld [vmem:[%s5678_s4 + $0x1a8] sm:$0xff]  ;;  %v5060_v62 = vld [vmem:[%s5678_s4 + $0x1b0] sm:$0xff] }
 0x2e2   :  { %1913 = vmatpush.msra.mxu3 %v5055_v2 }
 0x2e3   :  { %v1658_v30 = vpop.f32.mrf.mxu3  ;;  %v1639_v59 = vadd.f32 %v1638_v19, %v1619_v29  ;;  %v5094_v29 = vld [vmem:[%s5678_s4 + $0x168] sm:$0xff] }
 0x2e4   :  { %1914 = vmatpush.msra.mxu3 %v5074_v52 }
 0x2e5   :  { %v1659_v13 = vadd.f32 %v1658_v30, %v1639_v59  ;;  %v5079_v30 = vld [vmem:[%s5678_s4 + $0x190] sm:$0xff] }
 0x2e6   :  { %1915 = vmatpush.msra.mxu3 %v5094_v29 }
 0x2e7   :  { %v1661_v37 = vsel %vm1457_vm0, %v1659_v13, 0.0  ;;  %v5196_v13 = vld [vmem:[%s5678_s4 + $0xd0] sm:$0xff] }
 0x2e8   :  { %1916 = vmatpush.msra.mxu3 %v5114_v24 }
 0x2ea   :  { %v1697_v54 = vpop.f32.mrf.mxu0 }
 0x2eb   :  { %v1717_v49 = vpop.f32.mrf.mxu1 }
 0x2ec   :  { %v1718_v16 = vadd.f32 %v1717_v49, %v1697_v54  ;;  %v1737_v57 = vpop.f32.mrf.mxu2  ;;  %v5099_v54 = vld [vmem:[%s5678_s4 + $0x170] sm:$0xff] }
 0x2ee   :  { %v1738_v43 = vadd.f32 %v1737_v57, %v1718_v16  ;;  %v5119_v16 = vld [vmem:[%s5678_s4 + $0x150] sm:$0xff]  ;;  %v5132_v57 = vld [vmem:[%s5678_s4 + $0x128] sm:$0xff] }
 0x2ef   :  { %1917 = vmatpush.msra.mxu3 %v5132_v57 }
 0x2f1   :  { %v1757_v47 = vpop.f32.mrf.mxu3 }
 0x2f2   :  { %v1758_v38 = vadd.f32 %v1757_v47, %v1738_v43  ;;  %v5152_v43 = vld [vmem:[%s5678_s4 + $0x108] sm:$0xff] }
 0x2f3   :  { %v5171_v47 = vld [vmem:[%s5678_s4 + $0xe8] sm:$0xff]  ;;  %1918 = vmatpush.msra.mxu3 %v5152_v43 }
 0x2f4   :  { %v1763_v17 = vsel %vm4964_vm1, %v1758_v38, 0.0 }
 0x2f5   :  { %v1786_v3 = vrot.slane %v1763_v17, 4  ;;  %1919 = vmatpush.msra.mxu3 %v5171_v47  ;;  %v5211_v17 = vld [vmem:[%s5678_s4 + $0xa8] sm:$0xff] }
 0x2f7   :  { %v1796_v45 = vsel %vm1788_vm10, %v1661_v37, %v1786_v3  ;;  %1920 = vmatpush.msra.mxu3 %v5191_v1  ;;  %v5239_v37 = vld [vmem:[%s5678_s4 + $0x1f8] sm:$0xff] }
 0x2f8   :  { %1810 = vmatpush.msra.mxu0 %v1796_v45  ;;  %v5254_v45 = vld [vmem:[%s5678_s4 + $0x60] sm:$0xff] }
 0x2f9   :  { %1921 = vmatpush.msra.mxu3 %v5211_v17  ;;  %1903 = vmatpush.msra.mxu2 %v5254_v45 }
 0x2fa   :  { %1811 = vmatpush.msra.mxu0 %v1795_v58  ;;  %v5278_v58 = vld [vmem:[%s5678_s4 + $0x40] sm:$0xff] }
 0x2fb   :  { %1922 = vmatpush.msra.mxu3 %v5234_v63  ;;  %6036 = vst [vmem:[#allocation9_spill] sm:$0xff] %v5278_v58  ;;  %1904 = vmatpush.msra.mxu2 %v5278_v58 }
 0x2fc   :  { %1812 = vmatpush.msra.mxu0 %v1794_v60  ;;  %v5283_v60 = vld [vmem:[%s5678_s4 + $0x48] sm:$0xff] }
 0x2fd   :  { %1923 = vmatpush.msra.mxu3 %v5259_v55 }
 0x2fe   :  { %1813 = vmatpush.msra.mxu0 %v1793_v9  ;;  %v5302_v9 = vld [vmem:[%s5678_s4 + $0x20] sm:$0xff] }
 0x2ff   :  { %1924 = vmatpush.msra.mxu3 %v5283_v60  ;;  %1905 = vmatpush.msra.mxu2 %v5302_v9 }
 0x300   :  { %1814 = vmatpush.msra.mxu0 %v6030_v44  ;;  %v5307_v44 = vld [vmem:[%s5678_s4 + $0x28] sm:$0xff] }
 0x301   :  { %1925 = vmatpush.msra.mxu3 %v5307_v44 }
 0x302   :  { %1815 = vmatpush.msra.mxu0 %v6031_v50  ;;  %v5312_v50 = vld [vmem:[%s5678_s4 + $0x198] sm:$0xff] }
 0x304   :  { %1816 = vmatpush.msra.mxu0 %v6032_v6  ;;  %v5319_v6 = vld [vmem:[%s5678_s4 + $0x30] sm:$0xff] }
 0x306   :  { %1817 = vmatpush.msra.mxu0 %v6033_v11  ;;  %v5329_v11 = vld [vmem:[%s5678_s4] sm:$0xff] }
 0x307   :  { %2375 = vmatmul.msk.f32.vlgmr.msra.gmra.mxu0 %vm1798_vm5, %v1797_v10  ;;  %v1857_v10 = vld [vmem:[%s5679_s2 + $0x8] sm:$0xff]  ;;  %1906 = vmatpush.msra.mxu2 %v5329_v11 }
 0x308   :  { %1931 = vmatpush.msrb.mxu0 %v5025_v15 }
 0x309   :  { %1992 = vmatpush.msrb.mxu2 %v5015_v51 }
 0x30a   :  { %1932 = vmatpush.msrb.mxu0 %v5043_v61 }
 0x30b   :  { %1993 = vmatpush.msrb.mxu2 %v5032_v20 }
 0x30c   :  { %1933 = vmatpush.msrb.mxu0 %v5060_v62 }
 0x30d   :  { %1994 = vmatpush.msrb.mxu2 %v5048_v21 }
 0x30e   :  { %1934 = vmatpush.msrb.mxu0 %v5079_v30 }
 0x30f   :  { %1995 = vmatpush.msrb.mxu2 %v5066_v34 }
 0x310   :  { %1935 = vmatpush.msrb.mxu0 %v5099_v54 }
 0x311   :  { %1996 = vmatpush.msrb.mxu2 %v5086_v33 }
 0x312   :  { %1936 = vmatpush.msrb.mxu0 %v5119_v16 }
 0x313   :  { %1997 = vmatpush.msrb.mxu2 %v5106_v18 }
 0x314   :  { %1937 = vmatpush.msrb.mxu0 %v5137_v32 }
 0x315   :  { %1998 = vmatpush.msrb.mxu2 %v5126_v5 }
 0x316   :  { %1938 = vmatpush.msrb.mxu0 %v5157_v53 }
 0x317   :  { %1999 = vmatpush.msrb.mxu2 %v5144_v41 }
 0x318   :  { %1939 = vmatpush.msrb.mxu0 %v5176_v46 }
 0x319   :  { %2000 = vmatpush.msrb.mxu2 %v5164_v27 }
 0x31a   :  { %1940 = vmatpush.msrb.mxu0 %v5196_v13 }
 0x31b   :  { %2001 = vmatpush.msrb.mxu2 %v5183_v22 }
 0x31c   :  { %1941 = vmatpush.msrb.mxu0 %v5216_v7 }
 0x31d   :  { %2002 = vmatpush.msrb.mxu2 %v5203_v36 }
 0x31e   :  { %1942 = vmatpush.msrb.mxu0 %v5246_v39 }
 0x31f   :  { %2003 = vmatpush.msrb.mxu2 %v5223_v25 }
 0x320   :  { %1943 = vmatpush.msrb.mxu0 %v5271_v48 }
 0x321   :  { %2004 = vmatpush.msrb.mxu2 %v5254_v45 }
 0x322   :  { %1944 = vmatpush.msrb.mxu0 %v5295_v4 }
 0x323   :  { %2005 = vmatpush.msrb.mxu2 %v5278_v58 }
 0x324   :  { %1945 = vmatpush.msrb.mxu0 %v5319_v6 }
 0x325   :  { %2006 = vmatpush.msrb.mxu2 %v5302_v9 }
 0x327   :  { %2007 = vmatpush.msrb.mxu2 %v5329_v11 }
 0x384   :  { %v1819_v42 = vpop.f32.mrf.mxu0 }
 0x385   :  { %v5000_v12 = vmax.f32 %v1819_v42, 0.0  ;;  %v5334_v42 = vld [vmem:[%s5678_s4 + $0x178] sm:$0xff] }
 0x387   :  { %1844 = vrot.lane.b32.xlu2 %v5000_v12, %s2710_s27  ;;  %1848 = vrot.lane.b32.xlu1 %v5000_v12, %s2711_s0 }
 0x388   :  { %1852 = vrot.lane.b32.xlu0 %v5000_v12, %s2712_s7 }
 0x38f   :  { %1832 = vrot.lane.b32.xlu2 %v5000_v12, %s2713_s8  ;;  %1836 = vrot.lane.b32.xlu1 %v5000_v12, %s2699_s16 }
 0x390   :  { %1840 = vrot.lane.b32.xlu0 %v5000_v12, %s2700_s24 }
 0x397   :  { %1824 = vrot.lane.b32.xlu1 %v5000_v12, %s2714_s1 }
 0x398   :  { %1828 = vrot.lane.b32.xlu0 %v5000_v12, %s2715_s18 }
 0x3e1   :  { %v1845_v49 = vpop.permute.xlu2 %1844 }
 0x3e9   :  { %v1833_v38 = vpop.permute.xlu2 %1832 }
 0x3f9   :  { %v1849_v35 = vpop.permute.xlu1 %1848 }
 0x3fa   :  { %v1853_v19 = vpop.permute.xlu0 %1852 }
 0x3fb   :  { %2376 = vmatpush.msk.msra.mxu1 %vm4964_vm1, %v1853_v19  ;;  %v5354_v19 = vld [vmem:[%s5678_s4 + $0x158] sm:$0xff] }
 0x3fd   :  { %2377 = vmatpush.msk.msra.mxu1 %vm1457_vm0, %v1849_v35  ;;  %v5348_v35 = vld [vmem:[%s5678_s4 + $0x10] sm:$0xff] }
 0x3fe   :  { %6038 = vst [vmem:[#allocation13_spill] sm:$0xff] %v5348_v35  ;;  %1946 = vmatpush.msrb.mxu0 %v5348_v35 }
 0x3ff   :  { %2378 = vmatpush.msk.msra.mxu1 %vm4978_vm4, %v1845_v49  ;;  %v5362_v49 = vld [vmem:[%s5678_s4 + $0x138] sm:$0xff] }
 0x400   :  { %2032 = vmatpush.msra.mxu0 %v5025_v15 }
 0x401   :  { %v1837_v59 = vpop.permute.xlu1 %1836 }
 0x402   :  { %v1841_v28 = vpop.permute.xlu0 %1840  ;;  %2033 = vmatpush.msra.mxu0 %v5043_v61 }
 0x403   :  { %2379 = vmatpush.msk.msra.mxu1 %vm4038_vm13, %v1841_v28  ;;  %v5380_v28 = vld [vmem:[%s5678_s4 + $0xf8] sm:$0xff] }
 0x404   :  { %2034 = vmatpush.msra.mxu0 %v5060_v62 }
 0x405   :  { %1876 = vmatpush.msra.mxu1 %v5000_v12  ;;  %v5341_v12 = vld [vmem:[%s5678_s4 + $0x8] sm:$0xff] }
 0x406   :  { %6037 = vst [vmem:[#allocation12_spill] sm:$0xff] %v5341_v12  ;;  %1926 = vmatpush.msra.mxu3 %v5341_v12  ;;  %2035 = vmatpush.msra.mxu0 %v5079_v30 }
 0x407   :  { %2380 = vmatpush.msk.msra.mxu1 %vm3777_vm8, %v1837_v59  ;;  %vm1858_vm8 = vcmask 588800   ;;  %v5371_v59 = vld [vmem:[%s5678_s4 + $0x118] sm:$0xff] }
 0x408   :  { %2012 = vmatpush.msrb.mxu3 %v5020_v14  ;;  %2036 = vmatpush.msra.mxu0 %v5099_v54 }
 0x409   :  { %2381 = vmatpush.msk.msra.mxu1 %vm4053_vm14, %v1833_v38  ;;  %v1825_v3 = vpop.permute.xlu1 %1824  ;;  %v5389_v38 = vld [vmem:[%s5678_s4 + $0xd8] sm:$0xff] }
 0x40a   :  { %v1829_v26 = vpop.permute.xlu0 %1828  ;;  %2013 = vmatpush.msrb.mxu3 %v5037_v23  ;;  %2037 = vmatpush.msra.mxu0 %v5119_v16 }
 0x40b   :  { %2382 = vmatpush.msk.msra.mxu1 %vm276_vm7, %v1829_v26  ;;  %v5407_v26 = vld [vmem:[%s5678_s4 + $0x98] sm:$0xff] }
 0x40c   :  { %2014 = vmatpush.msrb.mxu3 %v5055_v2  ;;  %2038 = vmatpush.msra.mxu0 %v5137_v32 }
 0x40d   :  { %2383 = vmatpush.msk.msra.mxu1 %vm3820_vm9, %v1825_v3  ;;  %v5425_v3 = vld [vmem:[%s5678_s4 + $0x58] sm:$0xff] }
 0x40e   :  { %2384 = vmatmul.msk.f32.vlgmr.msra.gmra.mxu1 %vm1858_vm8, %v1856_v31  ;;  %2015 = vmatpush.msrb.mxu3 %v5074_v52  ;;  %v5416_v31 = vld [vmem:[%s5678_s4 + $0x78] sm:$0xff] }
 0x40f   :  { %1951 = vmatpush.msrb.mxu1 %v5239_v37  ;;  %2039 = vmatpush.msra.mxu0 %v5157_v53 }
 0x410   :  { %2016 = vmatpush.msrb.mxu3 %v5094_v29 }
 0x411   :  { %1952 = vmatpush.msrb.mxu1 %v5265_v56  ;;  %2040 = vmatpush.msra.mxu0 %v5176_v46 }
 0x412   :  { %2017 = vmatpush.msrb.mxu3 %v5114_v24 }
 0x413   :  { %1953 = vmatpush.msrb.mxu1 %v5288_v8  ;;  %2041 = vmatpush.msra.mxu0 %v5196_v13 }
 0x414   :  { %2018 = vmatpush.msrb.mxu3 %v5132_v57 }
 0x415   :  { %1954 = vmatpush.msrb.mxu1 %v5312_v50  ;;  %2042 = vmatpush.msra.mxu0 %v5216_v7 }
 0x416   :  { %2385 = vmatmul.msk.f32.gmra.mxu1 %vm1858_vm8, %v1857_v10  ;;  %2019 = vmatpush.msrb.mxu3 %v5152_v43  ;;  %v5443_v10 = vld [vmem:[%s5678_s4 + $0x18] sm:$0xff] }
 0x417   :  { %1955 = vmatpush.msrb.mxu1 %v5334_v42  ;;  %2043 = vmatpush.msra.mxu0 %v5246_v39 }
 0x418   :  { %2020 = vmatpush.msrb.mxu3 %v5171_v47 }
 0x419   :  { %1956 = vmatpush.msrb.mxu1 %v5354_v19  ;;  %2044 = vmatpush.msra.mxu0 %v5271_v48 }
 0x41a   :  { %2021 = vmatpush.msrb.mxu3 %v5191_v1 }
 0x41b   :  { %1957 = vmatpush.msrb.mxu1 %v5362_v49  ;;  %2045 = vmatpush.msra.mxu0 %v5295_v4 }
 0x41c   :  { %2022 = vmatpush.msrb.mxu3 %v5211_v17 }
 0x41d   :  { %1958 = vmatpush.msrb.mxu1 %v5371_v59  ;;  %2046 = vmatpush.msra.mxu0 %v5319_v6 }
 0x41e   :  { %2023 = vmatpush.msrb.mxu3 %v5234_v63 }
 0x41f   :  { %1959 = vmatpush.msrb.mxu1 %v5380_v28  ;;  %2047 = vmatpush.msra.mxu0 %v5348_v35 }
 0x420   :  { %2024 = vmatpush.msrb.mxu3 %v5259_v55 }
 0x421   :  { %1960 = vmatpush.msrb.mxu1 %v5389_v38 }
 0x422   :  { %2025 = vmatpush.msrb.mxu3 %v5283_v60 }
 0x423   :  { %1961 = vmatpush.msrb.mxu1 %v5398_v40 }
 0x424   :  { %2026 = vmatpush.msrb.mxu3 %v5307_v44 }
 0x425   :  { %1962 = vmatpush.msrb.mxu1 %v5407_v26 }
 0x426   :  { %2027 = vmatpush.msrb.mxu3 %v5341_v12 }
 0x427   :  { %1963 = vmatpush.msrb.mxu1 %v5416_v31 }
 0x429   :  { %1964 = vmatpush.msrb.mxu1 %v5425_v3 }
 0x42b   :  { %1965 = vmatpush.msrb.mxu1 %v5434_v0 }
 0x42d   :  { %1966 = vmatpush.msrb.mxu1 %v5443_v10 }
 0x42f   :  { %2052 = vmatpush.msra.mxu1 %v5239_v37 }
 0x431   :  { %2053 = vmatpush.msra.mxu1 %v5265_v56 }
 0x433   :  { %2054 = vmatpush.msra.mxu1 %v5288_v8 }
 0x435   :  { %2055 = vmatpush.msra.mxu1 %v5312_v50 }
 0x437   :  { %2056 = vmatpush.msra.mxu1 %v5334_v42 }
 0x439   :  { %2057 = vmatpush.msra.mxu1 %v5354_v19 }
 0x43b   :  { %2058 = vmatpush.msra.mxu1 %v5362_v49 }
 0x43d   :  { %2059 = vmatpush.msra.mxu1 %v5371_v59 }
 0x43f   :  { %2060 = vmatpush.msra.mxu1 %v5380_v28 }
 0x441   :  { %2061 = vmatpush.msra.mxu1 %v5389_v38 }
 0x443   :  { %2062 = vmatpush.msra.mxu1 %v5398_v40 }
 0x445   :  { %2063 = vmatpush.msra.mxu1 %v5407_v26 }
 0x447   :  { %2064 = vmatpush.msra.mxu1 %v5416_v31 }
 0x449   :  { %2065 = vmatpush.msra.mxu1 %v5425_v3 }
 0x44b   :  { %2066 = vmatpush.msra.mxu1 %v5434_v0 }
 0x44d   :  { %2067 = vmatpush.msra.mxu1 %v5443_v10 }
 0x48b   :  { %v1882_v35 = vpop.f32.mrf.mxu1 }
 0x48c   :  { %v1889_v12 = vrot.slane %v1882_v35, 4 }
 0x48e   :  { %1907 = vmatmul.f32.vlgmr.msra.gmra.mxu2 %v1889_v12  ;;  %1927 = vmatmul.f32.vlgmr.msra.gmra.mxu3 %v1889_v12 }
 0x48f   :  { %1947 = vmatmul.f32.vlgmr.msrb.gmra.mxu0 %v1889_v12  ;;  %1967 = vmatmul.f32.vlgmr.msrb.gmra.mxu1 %v1889_v12 }
 0x490   :  { %2072 = vmatpush.msra.mxu2 %v5015_v51  ;;  %2092 = vmatpush.msra.mxu3 %v5020_v14 }
 0x491   :  { %2112 = vmatpush.msrb.mxu0 %v5025_v15  ;;  %2132 = vmatpush.msrb.mxu1 %v5239_v37 }
 0x492   :  { %2073 = vmatpush.msra.mxu2 %v5032_v20  ;;  %2093 = vmatpush.msra.mxu3 %v5037_v23 }
 0x493   :  { %2113 = vmatpush.msrb.mxu0 %v5043_v61  ;;  %2133 = vmatpush.msrb.mxu1 %v5265_v56  ;;  %v5545_v12 = vpop.f32.mrf.mxu1 }
 0x494   :  { %2074 = vmatpush.msra.mxu2 %v5048_v21  ;;  %2094 = vmatpush.msra.mxu3 %v5055_v2 }
 0x495   :  { %2114 = vmatpush.msrb.mxu0 %v5060_v62  ;;  %2134 = vmatpush.msrb.mxu1 %v5288_v8 }
 0x496   :  { %2075 = vmatpush.msra.mxu2 %v5066_v34  ;;  %2095 = vmatpush.msra.mxu3 %v5074_v52 }
 0x497   :  { %2115 = vmatpush.msrb.mxu0 %v5079_v30  ;;  %2135 = vmatpush.msrb.mxu1 %v5312_v50 }
 0x498   :  { %2008 = vmatmul.f32.vlgmr.msrb.gmra.mxu2 %v1882_v35  ;;  %2028 = vmatmul.f32.vlgmr.msrb.gmra.mxu3 %v1882_v35 }
 0x499   :  { %2048 = vmatmul.f32.vlgmr.msra.gmra.mxu0 %v1882_v35  ;;  %2068 = vmatmul.f32.vlgmr.msra.gmra.mxu1 %v1882_v35  ;;  %v6039_v35 = vld [vmem:[#allocation12_spill] sm:$0xff] }
 0x49a   :  { %2076 = vmatpush.msra.mxu2 %v5086_v33  ;;  %2096 = vmatpush.msra.mxu3 %v5094_v29 }
 0x49b   :  { %2116 = vmatpush.msrb.mxu0 %v5099_v54  ;;  %2136 = vmatpush.msrb.mxu1 %v5334_v42 }
 0x49c   :  { %2077 = vmatpush.msra.mxu2 %v5106_v18  ;;  %2097 = vmatpush.msra.mxu3 %v5114_v24 }
 0x49d   :  { %2117 = vmatpush.msrb.mxu0 %v5119_v16  ;;  %2137 = vmatpush.msrb.mxu1 %v5354_v19 }
 0x49e   :  { %2078 = vmatpush.msra.mxu2 %v5126_v5  ;;  %2098 = vmatpush.msra.mxu3 %v5132_v57 }
 0x49f   :  { %2118 = vmatpush.msrb.mxu0 %v5137_v32  ;;  %2138 = vmatpush.msrb.mxu1 %v5362_v49 }
 0x4a0   :  { %2079 = vmatpush.msra.mxu2 %v5144_v41  ;;  %2099 = vmatpush.msra.mxu3 %v5152_v43 }
 0x4a1   :  { %2119 = vmatpush.msrb.mxu0 %v5157_v53  ;;  %2139 = vmatpush.msrb.mxu1 %v5371_v59 }
 0x4a2   :  { %2080 = vmatpush.msra.mxu2 %v5164_v27  ;;  %2100 = vmatpush.msra.mxu3 %v5171_v47 }
 0x4a3   :  { %2120 = vmatpush.msrb.mxu0 %v5176_v46  ;;  %2140 = vmatpush.msrb.mxu1 %v5380_v28 }
 0x4a4   :  { %2081 = vmatpush.msra.mxu2 %v5183_v22  ;;  %2101 = vmatpush.msra.mxu3 %v5191_v1 }
 0x4a5   :  { %2121 = vmatpush.msrb.mxu0 %v5196_v13  ;;  %2141 = vmatpush.msrb.mxu1 %v5389_v38 }
 0x4a6   :  { %2082 = vmatpush.msra.mxu2 %v5203_v36  ;;  %2102 = vmatpush.msra.mxu3 %v5211_v17 }
 0x4a7   :  { %2122 = vmatpush.msrb.mxu0 %v5216_v7  ;;  %2142 = vmatpush.msrb.mxu1 %v5398_v40 }
 0x4a8   :  { %2083 = vmatpush.msra.mxu2 %v5223_v25  ;;  %2103 = vmatpush.msra.mxu3 %v5234_v63 }
 0x4a9   :  { %2123 = vmatpush.msrb.mxu0 %v5246_v39  ;;  %2143 = vmatpush.msrb.mxu1 %v5407_v26 }
 0x4aa   :  { %2084 = vmatpush.msra.mxu2 %v5254_v45  ;;  %2104 = vmatpush.msra.mxu3 %v5259_v55 }
 0x4ab   :  { %2124 = vmatpush.msrb.mxu0 %v5271_v48  ;;  %2144 = vmatpush.msrb.mxu1 %v5416_v31 }
 0x4ac   :  { %2085 = vmatpush.msra.mxu2 %v5278_v58  ;;  %2105 = vmatpush.msra.mxu3 %v5283_v60  ;;  %v6040_v58 = vld [vmem:[#allocation13_spill] sm:$0xff] }
 0x4ad   :  { %2125 = vmatpush.msrb.mxu0 %v5295_v4  ;;  %2145 = vmatpush.msrb.mxu1 %v5425_v3 }
 0x4ae   :  { %2086 = vmatpush.msra.mxu2 %v5302_v9  ;;  %2106 = vmatpush.msra.mxu3 %v5307_v44 }
 0x4af   :  { %2126 = vmatpush.msrb.mxu0 %v5319_v6  ;;  %2146 = vmatpush.msrb.mxu1 %v5434_v0 }
 0x4b0   :  { %2087 = vmatpush.msra.mxu2 %v5329_v11  ;;  %2107 = vmatpush.msra.mxu3 %v6039_v35 }
 0x4b1   :  { %2127 = vmatpush.msrb.mxu0 %v6040_v58  ;;  %2147 = vmatpush.msrb.mxu1 %v5443_v10 }
 0x4b2   :  { %2088 = vmatmul.f32.vlgmr.msra.gmra.mxu2 %v5545_v12  ;;  %2148 = vmatmul.f32.vlgmr.msrb.gmra.mxu1 %v5545_v12 }
 0x4b3   :  { %2180 = vmatpush.msrb.mxu2 %v5015_v51  ;;  %2200 = vmatpush.msrb.mxu3 %v5020_v14  ;;  %v6041_v51 = vld [vmem:[#allocation9_spill] sm:$0xff]  ;;  %v2178_v14 = vrot.slane %v5545_v12, 4 }
 0x4b4   :  { %2220 = vmatpush.msra.mxu0 %v5025_v15  ;;  %2240 = vmatpush.msra.mxu1 %v5239_v37 }
 0x4b5   :  { %2181 = vmatpush.msrb.mxu2 %v5032_v20  ;;  %2201 = vmatpush.msrb.mxu3 %v5037_v23 }
 0x4b6   :  { %2221 = vmatpush.msra.mxu0 %v5043_v61  ;;  %2241 = vmatpush.msra.mxu1 %v5265_v56 }
 0x4b7   :  { %2182 = vmatpush.msrb.mxu2 %v5048_v21  ;;  %2202 = vmatpush.msrb.mxu3 %v5055_v2 }
 0x4b8   :  { %2222 = vmatpush.msra.mxu0 %v5060_v62  ;;  %2242 = vmatpush.msra.mxu1 %v5288_v8 }
 0x4b9   :  { %2183 = vmatpush.msrb.mxu2 %v5066_v34  ;;  %2203 = vmatpush.msrb.mxu3 %v5074_v52 }
 0x4ba   :  { %2223 = vmatpush.msra.mxu0 %v5079_v30  ;;  %2243 = vmatpush.msra.mxu1 %v5312_v50 }
 0x4bb   :  { %2128 = vmatmul.f32.vlgmr.msrb.gmra.mxu0 %v5545_v12  ;;  %2184 = vmatpush.msrb.mxu2 %v5086_v33 }
 0x4bc   :  { %2204 = vmatpush.msrb.mxu3 %v5094_v29  ;;  %2224 = vmatpush.msra.mxu0 %v5099_v54 }
 0x4bd   :  { %2244 = vmatpush.msra.mxu1 %v5334_v42  ;;  %2185 = vmatpush.msrb.mxu2 %v5106_v18 }
 0x4be   :  { %2205 = vmatpush.msrb.mxu3 %v5114_v24  ;;  %2225 = vmatpush.msra.mxu0 %v5119_v16 }
 0x4bf   :  { %2245 = vmatpush.msra.mxu1 %v5354_v19  ;;  %2186 = vmatpush.msrb.mxu2 %v5126_v5 }
 0x4c0   :  { %2206 = vmatpush.msrb.mxu3 %v5132_v57  ;;  %2226 = vmatpush.msra.mxu0 %v5137_v32 }
 0x4c1   :  { %2246 = vmatpush.msra.mxu1 %v5362_v49  ;;  %2187 = vmatpush.msrb.mxu2 %v5144_v41 }
 0x4c2   :  { %2207 = vmatpush.msrb.mxu3 %v5152_v43  ;;  %2227 = vmatpush.msra.mxu0 %v5157_v53 }
 0x4c3   :  { %2247 = vmatpush.msra.mxu1 %v5371_v59  ;;  %2188 = vmatpush.msrb.mxu2 %v5164_v27 }
 0x4c4   :  { %2208 = vmatpush.msrb.mxu3 %v5171_v47  ;;  %2228 = vmatpush.msra.mxu0 %v5176_v46 }
 0x4c5   :  { %2248 = vmatpush.msra.mxu1 %v5380_v28  ;;  %2108 = vmatmul.f32.vlgmr.msra.gmra.mxu3 %v5545_v12 }
 0x4c6   :  { %2189 = vmatpush.msrb.mxu2 %v5183_v22  ;;  %2209 = vmatpush.msrb.mxu3 %v5191_v1 }
 0x4c7   :  { %2229 = vmatpush.msra.mxu0 %v5196_v13  ;;  %2249 = vmatpush.msra.mxu1 %v5389_v38 }
 0x4c8   :  { %2190 = vmatpush.msrb.mxu2 %v5203_v36  ;;  %2210 = vmatpush.msrb.mxu3 %v5211_v17 }
 0x4c9   :  { %2230 = vmatpush.msra.mxu0 %v5216_v7  ;;  %2250 = vmatpush.msra.mxu1 %v5398_v40 }
 0x4ca   :  { %2191 = vmatpush.msrb.mxu2 %v5223_v25  ;;  %2211 = vmatpush.msrb.mxu3 %v5234_v63 }
 0x4cb   :  { %2231 = vmatpush.msra.mxu0 %v5246_v39  ;;  %2251 = vmatpush.msra.mxu1 %v5407_v26 }
 0x4cc   :  { %2192 = vmatpush.msrb.mxu2 %v5254_v45  ;;  %2212 = vmatpush.msrb.mxu3 %v5259_v55 }
 0x4cd   :  { %2232 = vmatpush.msra.mxu0 %v5271_v48  ;;  %2252 = vmatpush.msra.mxu1 %v5416_v31 }
 0x4ce   :  { %2193 = vmatpush.msrb.mxu2 %v6041_v51  ;;  %2213 = vmatpush.msrb.mxu3 %v5283_v60 }
 0x4cf   :  { %2233 = vmatpush.msra.mxu0 %v5295_v4  ;;  %2253 = vmatpush.msra.mxu1 %v5425_v3 }
 0x4d0   :  { %2194 = vmatpush.msrb.mxu2 %v5302_v9  ;;  %2214 = vmatpush.msrb.mxu3 %v5307_v44 }
 0x4d1   :  { %2234 = vmatpush.msra.mxu0 %v5319_v6  ;;  %2254 = vmatpush.msra.mxu1 %v5434_v0 }
 0x4d2   :  { %2195 = vmatpush.msrb.mxu2 %v5329_v11  ;;  %2215 = vmatpush.msrb.mxu3 %v6039_v35 }
 0x4d3   :  { %2235 = vmatpush.msra.mxu0 %v6040_v58  ;;  %2255 = vmatpush.msra.mxu1 %v5443_v10  ;;  %v2716_v10 = vmov 512.0  }
 0x4d4   :  { %2196 = vmatmul.f32.vlgmr.msrb.gmra.mxu2 %v2178_v14  ;;  %2216 = vmatmul.f32.vlgmr.msrb.gmra.mxu3 %v2178_v14  ;;  %2563 = vrcp.f32 %v2716_v10 }
 0x4d5   :  { %2236 = vmatmul.f32.vlgmr.msra.gmra.mxu0 %v2178_v14  ;;  %2256 = vmatmul.f32.vlgmr.msra.gmra.mxu1 %v2178_v14 }
 0x4da   :  { %v2564_v12 = vpop.eup %2563 }
 0x4db   :  { %v2295_v35 = vmul.f32 512.0, %v2564_v12 }
 0x4dd   :  { %v2296_v51 = vsub.f32 1.0, %v2295_v35 }
 0x4df   :  { %v2297_v14 = vmul.f32 %v2564_v12, %v2296_v51 }
 0x50c   :  { %v1968_v15 = vpop.f32.mrf.mxu1  ;;  %v1948_v61 = vpop.f32.mrf.mxu0 }
 0x50d   :  { %1972 = vrot.lane.b32.xlu2 %v1968_v15, %s2699_s16  ;;  %v2298_v15 = vadd.f32 %v2564_v12, %v2297_v14 }
 0x511   :  { %v1908_v20 = vpop.f32.mrf.mxu2  ;;  %v1928_v23 = vpop.f32.mrf.mxu3 }
 0x512   :  { %1980 = vrot.lane.b32.xlu1 %v1928_v23, %s2699_s16  ;;  %1978 = vrot.lane.b32.xlu0 %v1908_v20, %s2699_s16 }
 0x515   :  { %1982 = vrot.lane.b32.xlu2 %v1948_v61, %s2699_s16 }
 0x516   :  { %v2069_v21 = vpop.f32.mrf.mxu1  ;;  %v2049_v34 = vpop.f32.mrf.mxu0 }
 0x51b   :  { %v2009_v2 = vpop.f32.mrf.mxu2  ;;  %v2029_v33 = vpop.f32.mrf.mxu3 }
 0x52f   :  { %v2149_v62 = vpop.f32.mrf.mxu1 }
 0x530   :  { %2153 = vrot.lane.b32.xlu0 %v2149_v62, %s2696_s29 }
 0x535   :  { %v2089_v52 = vpop.f32.mrf.mxu2 }
 0x536   :  { %2159 = vrot.lane.b32.xlu1 %v2089_v52, %s2696_s29 }
 0x538   :  { %v2129_v30 = vpop.f32.mrf.mxu0 }
 0x539   :  { %2163 = vrot.lane.b32.xlu0 %v2129_v30, %s2696_s29 }
 0x548   :  { %v2109_v29 = vpop.f32.mrf.mxu3 }
 0x549   :  { %2161 = vrot.lane.b32.xlu2 %v2109_v29, %s2696_s29 }
 0x552   :  { %v2257_v54 = vpop.f32.mrf.mxu1  ;;  %v2237_v16 = vpop.f32.mrf.mxu0 }
 0x553   :  { %2261 = vrot.lane.b32.xlu1 %v2257_v54, %s2695_s28 }
 0x557   :  { %v2197_v18 = vpop.f32.mrf.mxu2  ;;  %v2217_v24 = vpop.f32.mrf.mxu3 }
 0x558   :  { %2267 = vrot.lane.b32.xlu2 %v2197_v18, %s2695_s28  ;;  %2269 = vrot.lane.b32.xlu0 %v2217_v24, %s2695_s28 }
 0x55b   :  { %2271 = vrot.lane.b32.xlu1 %v2237_v16, %s2695_s28 }
 0x567   :  { %v1973_v5 = vpop.permute.xlu2 %1972 }
 0x56f   :  { %v1983_v41 = vpop.permute.xlu2 %1982 }
 0x570   :  { %v1986_v63 = vsel %vm594_vm6, %v1983_v41, %v1973_v5 }
 0x571   :  { %v2070_v8 = vadd.f32 %v2069_v21, %v1986_v63 }
 0x584   :  { %v1979_v57 = vpop.permute.xlu0 %1978  ;;  %v1981_v32 = vpop.permute.xlu1 %1980 }
 0x585   :  { %v1991_v46 = vsel %vm594_vm6, %v1973_v5, %v1979_v57  ;;  %v1984_v22 = vsel %vm594_vm6, %v1979_v57, %v1981_v32  ;;  %v1985_v37 = vsel %vm594_vm6, %v1981_v32, %v1983_v41  ;;  %v2717_v41 = vmov 0  }
 0x586   :  { %v2010_v36 = vadd.f32 %v2009_v2, %v1991_v46  ;;  %v2030_v39 = vadd.f32 %v2029_v33, %v1984_v22  ;;  %v2050_v4 = vadd.f32 %v2049_v34, %v1985_v37  ;;  %2560 = vset.pattern.permute.xlu1 %v2717_v41 }
 0x5a2   :  { %v2154_v43 = vpop.permute.xlu0 %2153 }
 0x5a3   :  { %v2162_v27 = vpop.permute.xlu2 %2161 }
 0x5a8   :  { %v2160_v53 = vpop.permute.xlu1 %2159 }
 0x5a9   :  { %v2172_v1 = vsel %vm291_vm3, %v2154_v43, %v2160_v53  ;;  %v2165_v7 = vsel %vm291_vm3, %v2160_v53, %v2162_v27 }
 0x5aa   :  { %v2173_v45 = vadd.f32 %v2172_v1, %v2010_v36  ;;  %v2174_v55 = vadd.f32 %v2165_v7, %v2030_v39  ;;  %v2331_v7 = vld [vmem:[%s5680_s5] sm:$0xf] }
 0x5ab   :  { %v2164_v47 = vpop.permute.xlu0 %2163 }
 0x5ac   :  { %v2166_v56 = vsel %vm291_vm3, %v2162_v27, %v2164_v47  ;;  %v2167_v48 = vsel %vm291_vm3, %v2164_v47, %v2154_v43  ;;  %vm2299_vm3 = vweird.f32 %v2564_v12  ;;  %v2718_v43 = vmov 1  }
 0x5ad   :  { %v2175_v50 = vadd.f32 %v2166_v56, %v2050_v4  ;;  %v2176_v6 = vadd.f32 %v2167_v48, %v2070_v8  ;;  %v2300_v20 = vsel %vm2299_vm3, %v2564_v12, %v2298_v15  ;;  %2562 = vset.pattern.permute.xlu0 %v2718_v43 }
 0x5b2   :  { %v2268_v17 = vpop.permute.xlu2 %2267 }
 0x5c5   :  { %v2262_v13 = vpop.permute.xlu1 %2261 }
 0x5c6   :  { %v2280_v25 = vsel %vm187_vm2, %v2262_v13, %v2268_v17 }
 0x5c7   :  { %v2281_v58 = vadd.f32 %v2280_v25, %v2173_v45 }
 0x5c9   :  { %v2285_v42 = vsel %vm1788_vm10, %v2281_v58, 0.0 }
 0x5ca   :  { %v2270_v60 = vpop.permute.xlu0 %2269 }
 0x5cb   :  { %v2273_v9 = vsel %vm187_vm2, %v2268_v17, %v2270_v60 }
 0x5cc   :  { %v2282_v44 = vadd.f32 %v2273_v9, %v2174_v55 }
 0x5cd   :  { %v2272_v11 = vpop.permute.xlu1 %2271 }
 0x5ce   :  { %v2286_v19 = vsel %vm1788_vm10, %v2282_v44, 0.0  ;;  %v2274_v49 = vsel %vm187_vm2, %v2270_v60, %v2272_v11  ;;  %v2275_v59 = vsel %vm187_vm2, %v2272_v11, %v2262_v13  ;;  %v6042_v11 = vld [vmem:[#allocation3_spill] sm:$0xff] }
 0x5cf   :  { %v2283_v28 = vadd.f32 %v2274_v49, %v2175_v50  ;;  %v2284_v38 = vadd.f32 %v2275_v59, %v2176_v6  ;;  %v2287_v40 = vadd.f32 %v2286_v19, %v2285_v42  ;;  %v6043_v19 = vld [vmem:[#allocation4_spill] sm:$0xff]  ;;  %v6044_v59 = vld [vmem:[#allocation5_spill] sm:$0xff] }
 0x5d1   :  { %v2288_v26 = vsel %vm1788_vm10, %v2283_v28, 0.0  ;;  %v2290_v3 = vsel %vm1788_vm10, %v2284_v38, 0.0 }
 0x5d2   :  { %v2289_v31 = vadd.f32 %v2288_v26, %v2287_v40 }
 0x5d4   :  { %v2291_v0 = vadd.f32 %v2290_v3, %v2289_v31 }
 0x5d6   :  { %2292 = vadd.xlane.f32.xlu2 %v2291_v0 }
 0x649   :  { %v2293_v23 = vpop.xlane.xlu2 %2292 }
 0x64a   :  { %v2301_v61 = vmul.f32 %v2300_v20, %v2293_v23 }
 0x64c   :  { %v2302_v21 = vsub.f32 %v2281_v58, %v2301_v61  ;;  %v2303_v2 = vsub.f32 %v2282_v44, %v2301_v61  ;;  %v2304_v62 = vsub.f32 %v2283_v28, %v2301_v61  ;;  %v2305_v34 = vsub.f32 %v2284_v38, %v2301_v61  ;;  %v6045_v38 = vld [vmem:[#allocation7_spill] sm:$0xff] }
 0x64e   :  { %v2306_v52 = vmul.f32 %v2302_v21, %v2302_v21  ;;  %v2307_v30 = vmul.f32 %v2303_v2, %v2303_v2  ;;  %v2308_v33 = vmul.f32 %v2304_v62, %v2304_v62  ;;  %v2309_v29 = vmul.f32 %v2305_v34, %v2305_v34 }
 0x650   :  { %v2310_v54 = vsel %vm1788_vm10, %v2306_v52, 0.0  ;;  %v2311_v18 = vsel %vm1788_vm10, %v2307_v30, 0.0  ;;  %v2313_v16 = vsel %vm1788_vm10, %v2308_v33, 0.0  ;;  %v2315_v57 = vsel %vm1788_vm10, %v2309_v29, 0.0 }
 0x651   :  { %v2312_v24 = vadd.f32 %v2311_v18, %v2310_v54 }
 0x653   :  { %v2314_v5 = vadd.f32 %v2313_v16, %v2312_v24 }
 0x655   :  { %v2316_v32 = vadd.f32 %v2315_v57, %v2314_v5 }
 0x657   :  { %2317 = vadd.xlane.f32.xlu0 %v2316_v32 }
 0x6ca   :  { %v2318_v53 = vpop.xlane.xlu0 %2317 }
 0x6cb   :  { %v2319_v27 = vmul.f32 %v2318_v53, %v2300_v20 }
 0x6cd   :  { %v2320_v47 = vadd.f32 1e-05, %v2319_v27 }
 0x6cf   :  { %2565 = vrsqrt.f32 %v2320_v47  ;;  %vm2327_vm6 = vweird.f32 %v2320_v47 }
 0x6d5   :  { %v2566_v46 = vpop.eup %2565 }
 0x6d6   :  { %v2322_v22 = vmul.f32 %v2566_v46, %v2320_v47  ;;  %vm2328_vm2 = vweird.f32 %v2566_v46 }
 0x6d7   :  { %vm2329_vm7 = vmor %vm2327_vm6, %vm2328_vm2 }
 0x6d8   :  { %v2323_v1 = vmul.f32 %v2566_v46, %v2322_v22 }
 0x6da   :  { %v2324_v13 = vmul.f32 0.5, %v2323_v1 }
 0x6dc   :  { %v2325_v36 = vsub.f32 1.5, %v2324_v13 }
 0x6de   :  { %v2326_v17 = vmul.f32 %v2566_v46, %v2325_v36 }
 0x6e0   :  { %v2330_v25 = vsel %vm2329_vm7, %v2566_v46, %v2326_v17 }
 0x6e1   :  { %v2332_v63 = vmul.f32 %v2331_v7, %v2330_v25 }
 0x6e3   :  { %2335 = vperm.xlu1 %2560, %v2332_v63  }
 0x6eb   :  { %2561 = vset.pattern.permute.xlu1 %v2718_v43 }
 0x6ec   :  { %2344 = vperm.xlu1 %2561, %v2331_v7  }
 0x755   :  { %v2336_v37 = vpop.permute.xlu1 %2335 }
 0x756   :  { %v2338_v39 = vmul.f32 %v2336_v37, %v2302_v21  ;;  %v2339_v45 = vmul.f32 %v2336_v37, %v2303_v2  ;;  %v2340_v55 = vmul.f32 %v2336_v37, %v2304_v62  ;;  %v2341_v56 = vmul.f32 %v2336_v37, %v2305_v34 }
 0x75e   :  { %v2345_v48 = vpop.permute.xlu1 %2344 }
 0x75f   :  { %v2347_v58 = vadd.f32 %v2345_v48, %v2338_v39  ;;  %v2348_v60 = vadd.f32 %v2345_v48, %v2339_v45  ;;  %v2349_v8 = vadd.f32 %v2345_v48, %v2340_v55  ;;  %v2350_v4 = vadd.f32 %v2345_v48, %v2341_v56 }
 0x761   :  { %v2353_v9 = vrot.slane %v2347_v58, 4  ;;  %v2354_v44 = vrot.slane %v2348_v60, 4  ;;  %v2359_v50 = vrot.slane %v2349_v8, 4  ;;  %v2360_v6 = vrot.slane %v2350_v4, 4 }
 0x763   :  { %v2363_v42 = vsel %vm1788_vm10, %v6042_v11, %v2353_v9  ;;  %v2364_v49 = vsel %vm1788_vm10, %v6043_v19, %v2354_v44  ;;  %v2365_v28 = vsel %vm1788_vm10, %v6044_v59, %v2359_v50  ;;  %v2366_v40 = vsel %vm1788_vm10, %v6045_v38, %v2360_v6 }
 0x764   :  { %2367 = vst [vmem:[%s5681_s6] sm:$0xff] %v2363_v42 }
 0x765   :  { %2368 = vst [vmem:[%s5681_s6 + $0x8] sm:$0xff] %v2364_v49 }
 0x766   :  { %2369 = vst [vmem:[%s5681_s6 + $0x10] sm:$0xff] %v2365_v28 }
 0x767   :  { %2370 = vst [vmem:[%s5681_s6 + $0x18] sm:$0xff] %v2366_v40 }

</bundles_post_ra>
